<compile_context>
chip_gen: v5e
topology: v5e:2x2
jax: 0.10.0
libtpu: 0.0.40
codegen_flags: <defaults>
</compile_context>

<pallas_src>
import jax
import jax.numpy as jnp
from jax.experimental import pallas as pl
from jax.experimental.pallas import tpu as pltpu
import numpy as np


def _lstm_forward_kernel(x_ref,       # (B*T, I)   batch-major rows: row = b*T + t
                         wih0_ref,    # (I, 4H)
                         b0_ref,      # (1, 4H)  = b_ih_l0 + b_hh_l0
                         wh0cat_ref,  # (H, 8H)  = [whh0 | wih1]
                         whh1_ref,    # (H, 4H)
                         b1_ref,      # (1, 4H)  = b_ih_l1 + b_hh_l1
                         w2_ref,      # (H, O)
                         b2_ref,      # (1, O)
                         out_ref):    # (B, O)
    B = out_ref.shape[0]
    BT = x_ref.shape[0]
    T = BT // B
    H = whh1_ref.shape[0]
    H4 = 4 * H

    wh0cat = wh0cat_ref[...]
    whh1 = whh1_ref[...]
    # Pre-broadcast layer-1 bias once so the in-loop add is plain elementwise
    # (JAX does not CSE broadcast_in_dim inside the unrolled loop).
    b1 = jnp.broadcast_to(b1_ref[...], (B, H4))

    # Hoisted layer-0 input projection: ONE (B*T, I) @ (I, 4H) matmul + bias.
    xg0 = (jnp.dot(x_ref[...], wih0_ref[...], preferred_element_type=jnp.float32)
           + b0_ref[...])
    xg0 = xg0.reshape(B, T, H4)     # leading-dim split: layout no-op

    def activate(gates):
        # PyTorch LSTM gate order: i, f, g, o.
        # 2 EUP launches on the full 128-lane gate vector, then cheap lane slices.
        sig = jax.nn.sigmoid(gates)
        tnh = jnp.tanh(gates)
        i = sig[:, 0 * H:1 * H]
        f = sig[:, 1 * H:2 * H]
        g = tnh[:, 2 * H:3 * H]
        o = sig[:, 3 * H:4 * H]
        return i, f, g, o

    zeros = jnp.zeros((B, H), jnp.float32)
    c0 = zeros
    h1 = zeros
    c1 = zeros
    hh0 = jnp.zeros((B, H4), jnp.float32)   # h0(t-1) @ whh0   (h0(-1) == 0)

    # Fully unrolled static time loop: static slices + scheduler visibility.
    for t in range(T):
        # ---- layer 0, step t: recurrent matmul was produced by previous step ----
        gates0 = xg0[:, t, :] + hh0
        i0, f0, g0, o0 = activate(gates0)
        c0 = f0 * c0 + i0 * g0
        h0 = o0 * jnp.tanh(c0)

        # One 256-wide MXU op from h0(t): layer-0 recurrent gates for step t+1
        # (first 4H lanes) and layer-1 input gates for step t (last 4H lanes).
        fused = jnp.dot(h0, wh0cat, preferred_element_type=jnp.float32)  # (B, 8H)
        hh0 = fused[:, :H4]
        ih1 = fused[:, H4:]

        # ---- layer 1, step t ----
        gates1 = ih1 + jnp.dot(h1, whh1, preferred_element_type=jnp.float32) + b1
        i1, f1, g1, o1 = activate(gates1)
        c1 = f1 * c1 + i1 * g1
        h1 = o1 * jnp.tanh(c1)

    # Linear head on the top layer's last hidden state, then softmax over dim=1.
    logits = jnp.dot(h1, w2_ref[...], preferred_element_type=jnp.float32) + b2_ref[...]
    m = jnp.max(logits, axis=1, keepdims=True)
    e = jnp.exp(logits - m)
    out_ref[...] = e / jnp.sum(e, axis=1, keepdims=True)


def lstm_classify_forward(x_bti, params):
    """x_bti: (batch, seq, input) float32.  Returns (batch, output)."""
    B, T, I = x_bti.shape
    O = params["w2"].shape[1]

    # Flatten (B, T, I) -> (B*T, I): metadata-only reshape, no transpose / HBM pass.
    x2d = x_bti.reshape(B * T, I).astype(jnp.float32)
    # Pre-concatenate [whh0 | wih1] -> (H, 8H) for the wavefront-fused matmul.
    wh0cat = jnp.concatenate([params["whh0"], params["wih1"]], axis=1)

    vmem = pl.BlockSpec(memory_space=pltpu.MemorySpace.VMEM)
    return pl.pallas_call(
        _lstm_forward_kernel,
        out_shape=jax.ShapeDtypeStruct((B, O), jnp.float32),
        in_specs=[vmem] * 8,
        out_specs=vmem,
    )(x2d,
      params["wih0"], params["b0"],
      wh0cat, params["whh1"], params["b1"],
      params["w2"], params["b2"])


def _reference_forward(x_bti, params):
    """Pure-JAX reference mirroring PyTorch LSTM(2 layers) + Linear + softmax."""
    B, T, I = x_bti.shape
    H = params["whh0"].shape[0]

    def cell(x_t, h, c, wih, whh, b):
        gates = x_t @ wih + h @ whh + b
        i = jax.nn.sigmoid(gates[:, 0 * H:1 * H])
        f = jax.nn.sigmoid(gates[:, 1 * H:2 * H])
        g = jnp.tanh(gates[:, 2 * H:3 * H])
        o = jax.nn.sigmoid(gates[:, 3 * H:4 * H])
        c = f * c + i * g
        return o * jnp.tanh(c), c

    h0 = c0 = h1 = c1 = jnp.zeros((B, H), jnp.float32)
    for t in range(T):
        x_t = x_bti[:, t, :]
        h0, c0 = cell(x_t, h0, c0, params["wih0"], params["whh0"], params["b0"])
        h1, c1 = cell(h0, h1, c1, params["wih1"], params["whh1"], params["b1"])
    logits = h1 @ params["w2"] + params["b2"]
    return jax.nn.softmax(logits, axis=1)


def init_params(key, input_size, hidden_size, output_size):
    """Deterministic synthetic parameters with PyTorch LSTM/Linear shapes,
    pre-transposed to (in, out) and with b_ih + b_hh folded together."""
    ks = jax.random.split(key, 10)
    H4 = 4 * hidden_size
    s = 0.1

    def rnd(k, shape):
        return (s * jax.random.normal(k, shape)).astype(jnp.float32)

    return {
        # layer 0: weight_ih_l0 (4H, I) -> (I, 4H); weight_hh_l0 (4H, H) -> (H, 4H)
        "wih0": rnd(ks[0], (input_size, H4)),
        "whh0": rnd(ks[1], (hidden_size, H4)),
        "b0":   rnd(ks[2], (1, H4)) + rnd(ks[3], (1, H4)),   # b_ih_l0 + b_hh_l0
        # layer 1: weight_ih_l1 (4H, H) -> (H, 4H)
        "wih1": rnd(ks[4], (hidden_size, H4)),
        "whh1": rnd(ks[5], (hidden_size, H4)),
        "b1":   rnd(ks[6], (1, H4)) + rnd(ks[7], (1, H4)),   # b_ih_l1 + b_hh_l1
        # Linear: weight (O, H) -> (H, O); bias (O,) -> (1, O)
        "w2":   rnd(ks[8], (hidden_size, output_size)),
        "b2":   rnd(ks[9], (1, output_size)),
    }


if __name__ == "__main__":
    # Small, TPU-friendly sizes consistent with the module's forward
    # (nn.LSTM(I, H, 2, batch_first=True) -> last step -> Linear(H, O) -> softmax dim=1).
    BATCH, SEQ, INPUT, HIDDEN, OUTPUT = 4, 8, 8, 32, 4

    key = jax.random.PRNGKey(0)
    kx, kp = jax.random.split(key)
    x = jax.random.normal(kx, (BATCH, SEQ, INPUT), dtype=jnp.float32)
    params = init_params(kp, INPUT, HIDDEN, OUTPUT)

    out = lstm_classify_forward(x, params)
    out = jax.block_until_ready(out)

    ref = _reference_forward(x, params)
    np.testing.assert_allclose(np.asarray(out), np.asarray(ref), rtol=1e-5, atol=1e-5)
    assert out.shape == (BATCH, OUTPUT)

    print("KERNEL_OK")
</pallas_src>

<mosaic_0001>
module attributes {stable_mosaic.version = 11 : i64} {
  func.func @_lstm_forward_kernel(%arg0: memref<32x8xf32, #tpu.memory_space<vmem>>, %arg1: memref<8x128xf32, #tpu.memory_space<vmem>>, %arg2: memref<1x128xf32, #tpu.memory_space<vmem>>, %arg3: memref<32x256xf32, #tpu.memory_space<vmem>>, %arg4: memref<32x128xf32, #tpu.memory_space<vmem>>, %arg5: memref<1x128xf32, #tpu.memory_space<vmem>>, %arg6: memref<32x4xf32, #tpu.memory_space<vmem>>, %arg7: memref<1x4xf32, #tpu.memory_space<vmem>>, %arg8: memref<4x4xf32, #tpu.memory_space<vmem>>) attributes {dimension_semantics = [], scalar_prefetch = 0 : i64, scratch_operands = 0 : i64, tpu.core_type = #tpu.core_type<tc>} {
    %c0 = arith.constant 0 : index
    %c0_0 = arith.constant 0 : index
    %0 = vector.load %arg3[%c0, %c0_0] : memref<32x256xf32, #tpu.memory_space<vmem>>, vector<32x256xf32>
    %c0_1 = arith.constant 0 : index
    %c0_2 = arith.constant 0 : index
    %1 = vector.load %arg4[%c0_1, %c0_2] : memref<32x128xf32, #tpu.memory_space<vmem>>, vector<32x128xf32>
    %c0_3 = arith.constant 0 : index
    %c0_4 = arith.constant 0 : index
    %2 = vector.load %arg5[%c0_3, %c0_4] : memref<1x128xf32, #tpu.memory_space<vmem>>, vector<1x128xf32>
    %3 = vector.shape_cast %2 : vector<1x128xf32> to vector<1x128xf32>
    %4 = vector.broadcast %3 : vector<1x128xf32> to vector<4x128xf32>
    %c0_5 = arith.constant 0 : index
    %c0_6 = arith.constant 0 : index
    %5 = vector.load %arg0[%c0_5, %c0_6] : memref<32x8xf32, #tpu.memory_space<vmem>>, vector<32x8xf32>
    %c0_7 = arith.constant 0 : index
    %c0_8 = arith.constant 0 : index
    %6 = vector.load %arg1[%c0_7, %c0_8] : memref<8x128xf32, #tpu.memory_space<vmem>>, vector<8x128xf32>
    %cst = arith.constant dense<0.000000e+00> : vector<32x128xf32>
    %7 = tpu.matmul %5, %6, %cst {dimension_numbers = #tpu.dot_dimension_numbers<[1], [0], [0], [1], [0, 0, 1, 1], [], []>} : vector<32x8xf32>, vector<8x128xf32>, vector<32x128xf32> -> vector<32x128xf32>
    %c0_9 = arith.constant 0 : index
    %c0_10 = arith.constant 0 : index
    %8 = vector.load %arg2[%c0_9, %c0_10] : memref<1x128xf32, #tpu.memory_space<vmem>>, vector<1x128xf32>
    %9 = vector.broadcast %8 : vector<1x128xf32> to vector<32x128xf32>
    %10 = arith.addf %7, %9 : vector<32x128xf32>
    %11 = vector.shape_cast %10 : vector<32x128xf32> to vector<4x8x128xf32>
    %cst_11 = arith.constant 0.000000e+00 : f32
    %12 = vector.broadcast %cst_11 : f32 to vector<4x32xf32>
    %cst_12 = arith.constant 0.000000e+00 : f32
    %13 = vector.broadcast %cst_12 : f32 to vector<4x128xf32>
    %14 = vector.extract_strided_slice %11 {offsets = [0, 0, 0], sizes = [4, 1, 128], strides = [1, 1, 1]} : vector<4x8x128xf32> to vector<4x1x128xf32>
    %15 = vector.shape_cast %14 : vector<4x1x128xf32> to vector<4x128xf32>
    %16 = arith.addf %15, %13 : vector<4x128xf32>
    %17 = arith.negf %16 : vector<4x128xf32>
    %18 = math.exp %17 : vector<4x128xf32>
    %cst_13 = arith.constant 1.000000e+00 : f32
    %19 = vector.broadcast %cst_13 : f32 to vector<4x128xf32>
    %20 = arith.addf %19, %18 : vector<4x128xf32>
    %21 = arith.divf %19, %20 : vector<4x128xf32>
    %22 = math.tanh %16 : vector<4x128xf32>
    %23 = vector.extract_strided_slice %21 {offsets = [0, 0], sizes = [4, 32], strides = [1, 1]} : vector<4x128xf32> to vector<4x32xf32>
    %24 = vector.extract_strided_slice %21 {offsets = [0, 32], sizes = [4, 32], strides = [1, 1]} : vector<4x128xf32> to vector<4x32xf32>
    %25 = vector.extract_strided_slice %22 {offsets = [0, 64], sizes = [4, 32], strides = [1, 1]} : vector<4x128xf32> to vector<4x32xf32>
    %26 = vector.extract_strided_slice %21 {offsets = [0, 96], sizes = [4, 32], strides = [1, 1]} : vector<4x128xf32> to vector<4x32xf32>
    %27 = arith.mulf %24, %12 : vector<4x32xf32>
    %28 = arith.mulf %23, %25 : vector<4x32xf32>
    %29 = arith.addf %27, %28 : vector<4x32xf32>
    %30 = math.tanh %29 : vector<4x32xf32>
    %31 = arith.mulf %26, %30 : vector<4x32xf32>
    %cst_14 = arith.constant dense<0.000000e+00> : vector<4x256xf32>
    %32 = tpu.matmul %31, %0, %cst_14 {dimension_numbers = #tpu.dot_dimension_numbers<[1], [0], [0], [1], [0, 0, 1, 1], [], []>} : vector<4x32xf32>, vector<32x256xf32>, vector<4x256xf32> -> vector<4x256xf32>
    %33 = vector.extract_strided_slice %32 {offsets = [0, 0], sizes = [4, 128], strides = [1, 1]} : vector<4x256xf32> to vector<4x128xf32>
    %34 = vector.extract_strided_slice %32 {offsets = [0, 128], sizes = [4, 128], strides = [1, 1]} : vector<4x256xf32> to vector<4x128xf32>
    %cst_15 = arith.constant dense<0.000000e+00> : vector<4x128xf32>
    %35 = tpu.matmul %12, %1, %cst_15 {dimension_numbers = #tpu.dot_dimension_numbers<[1], [0], [0], [1], [0, 0, 1, 1], [], []>} : vector<4x32xf32>, vector<32x128xf32>, vector<4x128xf32> -> vector<4x128xf32>
    %36 = arith.addf %34, %35 : vector<4x128xf32>
    %37 = arith.addf %36, %4 : vector<4x128xf32>
    %38 = arith.negf %37 : vector<4x128xf32>
    %39 = math.exp %38 : vector<4x128xf32>
    %cst_16 = arith.constant 1.000000e+00 : f32
    %40 = vector.broadcast %cst_16 : f32 to vector<4x128xf32>
    %41 = arith.addf %40, %39 : vector<4x128xf32>
    %42 = arith.divf %40, %41 : vector<4x128xf32>
    %43 = math.tanh %37 : vector<4x128xf32>
    %44 = vector.extract_strided_slice %42 {offsets = [0, 0], sizes = [4, 32], strides = [1, 1]} : vector<4x128xf32> to vector<4x32xf32>
    %45 = vector.extract_strided_slice %42 {offsets = [0, 32], sizes = [4, 32], strides = [1, 1]} : vector<4x128xf32> to vector<4x32xf32>
    %46 = vector.extract_strided_slice %43 {offsets = [0, 64], sizes = [4, 32], strides = [1, 1]} : vector<4x128xf32> to vector<4x32xf32>
    %47 = vector.extract_strided_slice %42 {offsets = [0, 96], sizes = [4, 32], strides = [1, 1]} : vector<4x128xf32> to vector<4x32xf32>
    %48 = arith.mulf %45, %12 : vector<4x32xf32>
    %49 = arith.mulf %44, %46 : vector<4x32xf32>
    %50 = arith.addf %48, %49 : vector<4x32xf32>
    %51 = math.tanh %50 : vector<4x32xf32>
    %52 = arith.mulf %47, %51 : vector<4x32xf32>
    %53 = vector.extract_strided_slice %11 {offsets = [0, 1, 0], sizes = [4, 1, 128], strides = [1, 1, 1]} : vector<4x8x128xf32> to vector<4x1x128xf32>
    %54 = vector.shape_cast %53 : vector<4x1x128xf32> to vector<4x128xf32>
    %55 = arith.addf %54, %33 : vector<4x128xf32>
    %56 = arith.negf %55 : vector<4x128xf32>
    %57 = math.exp %56 : vector<4x128xf32>
    %cst_17 = arith.constant 1.000000e+00 : f32
    %58 = vector.broadcast %cst_17 : f32 to vector<4x128xf32>
    %59 = arith.addf %58, %57 : vector<4x128xf32>
    %60 = arith.divf %58, %59 : vector<4x128xf32>
    %61 = math.tanh %55 : vector<4x128xf32>
    %62 = vector.extract_strided_slice %60 {offsets = [0, 0], sizes = [4, 32], strides = [1, 1]} : vector<4x128xf32> to vector<4x32xf32>
    %63 = vector.extract_strided_slice %60 {offsets = [0, 32], sizes = [4, 32], strides = [1, 1]} : vector<4x128xf32> to vector<4x32xf32>
    %64 = vector.extract_strided_slice %61 {offsets = [0, 64], sizes = [4, 32], strides = [1, 1]} : vector<4x128xf32> to vector<4x32xf32>
    %65 = vector.extract_strided_slice %60 {offsets = [0, 96], sizes = [4, 32], strides = [1, 1]} : vector<4x128xf32> to vector<4x32xf32>
    %66 = arith.mulf %63, %29 : vector<4x32xf32>
    %67 = arith.mulf %62, %64 : vector<4x32xf32>
    %68 = arith.addf %66, %67 : vector<4x32xf32>
    %69 = math.tanh %68 : vector<4x32xf32>
    %70 = arith.mulf %65, %69 : vector<4x32xf32>
    %cst_18 = arith.constant dense<0.000000e+00> : vector<4x256xf32>
    %71 = tpu.matmul %70, %0, %cst_18 {dimension_numbers = #tpu.dot_dimension_numbers<[1], [0], [0], [1], [0, 0, 1, 1], [], []>} : vector<4x32xf32>, vector<32x256xf32>, vector<4x256xf32> -> vector<4x256xf32>
    %72 = vector.extract_strided_slice %71 {offsets = [0, 0], sizes = [4, 128], strides = [1, 1]} : vector<4x256xf32> to vector<4x128xf32>
    %73 = vector.extract_strided_slice %71 {offsets = [0, 128], sizes = [4, 128], strides = [1, 1]} : vector<4x256xf32> to vector<4x128xf32>
    %cst_19 = arith.constant dense<0.000000e+00> : vector<4x128xf32>
    %74 = tpu.matmul %52, %1, %cst_19 {dimension_numbers = #tpu.dot_dimension_numbers<[1], [0], [0], [1], [0, 0, 1, 1], [], []>} : vector<4x32xf32>, vector<32x128xf32>, vector<4x128xf32> -> vector<4x128xf32>
    %75 = arith.addf %73, %74 : vector<4x128xf32>
    %76 = arith.addf %75, %4 : vector<4x128xf32>
    %77 = arith.negf %76 : vector<4x128xf32>
    %78 = math.exp %77 : vector<4x128xf32>
    %cst_20 = arith.constant 1.000000e+00 : f32
    %79 = vector.broadcast %cst_20 : f32 to vector<4x128xf32>
    %80 = arith.addf %79, %78 : vector<4x128xf32>
    %81 = arith.divf %79, %80 : vector<4x128xf32>
    %82 = math.tanh %76 : vector<4x128xf32>
    %83 = vector.extract_strided_slice %81 {offsets = [0, 0], sizes = [4, 32], strides = [1, 1]} : vector<4x128xf32> to vector<4x32xf32>
    %84 = vector.extract_strided_slice %81 {offsets = [0, 32], sizes = [4, 32], strides = [1, 1]} : vector<4x128xf32> to vector<4x32xf32>
    %85 = vector.extract_strided_slice %82 {offsets = [0, 64], sizes = [4, 32], strides = [1, 1]} : vector<4x128xf32> to vector<4x32xf32>
    %86 = vector.extract_strided_slice %81 {offsets = [0, 96], sizes = [4, 32], strides = [1, 1]} : vector<4x128xf32> to vector<4x32xf32>
    %87 = arith.mulf %84, %50 : vector<4x32xf32>
    %88 = arith.mulf %83, %85 : vector<4x32xf32>
    %89 = arith.addf %87, %88 : vector<4x32xf32>
    %90 = math.tanh %89 : vector<4x32xf32>
    %91 = arith.mulf %86, %90 : vector<4x32xf32>
    %92 = vector.extract_strided_slice %11 {offsets = [0, 2, 0], sizes = [4, 1, 128], strides = [1, 1, 1]} : vector<4x8x128xf32> to vector<4x1x128xf32>
    %93 = vector.shape_cast %92 : vector<4x1x128xf32> to vector<4x128xf32>
    %94 = arith.addf %93, %72 : vector<4x128xf32>
    %95 = arith.negf %94 : vector<4x128xf32>
    %96 = math.exp %95 : vector<4x128xf32>
    %cst_21 = arith.constant 1.000000e+00 : f32
    %97 = vector.broadcast %cst_21 : f32 to vector<4x128xf32>
    %98 = arith.addf %97, %96 : vector<4x128xf32>
    %99 = arith.divf %97, %98 : vector<4x128xf32>
    %100 = math.tanh %94 : vector<4x128xf32>
    %101 = vector.extract_strided_slice %99 {offsets = [0, 0], sizes = [4, 32], strides = [1, 1]} : vector<4x128xf32> to vector<4x32xf32>
    %102 = vector.extract_strided_slice %99 {offsets = [0, 32], sizes = [4, 32], strides = [1, 1]} : vector<4x128xf32> to vector<4x32xf32>
    %103 = vector.extract_strided_slice %100 {offsets = [0, 64], sizes = [4, 32], strides = [1, 1]} : vector<4x128xf32> to vector<4x32xf32>
    %104 = vector.extract_strided_slice %99 {offsets = [0, 96], sizes = [4, 32], strides = [1, 1]} : vector<4x128xf32> to vector<4x32xf32>
    %105 = arith.mulf %102, %68 : vector<4x32xf32>
    %106 = arith.mulf %101, %103 : vector<4x32xf32>
    %107 = arith.addf %105, %106 : vector<4x32xf32>
    %108 = math.tanh %107 : vector<4x32xf32>
    %109 = arith.mulf %104, %108 : vector<4x32xf32>
    %cst_22 = arith.constant dense<0.000000e+00> : vector<4x256xf32>
    %110 = tpu.matmul %109, %0, %cst_22 {dimension_numbers = #tpu.dot_dimension_numbers<[1], [0], [0], [1], [0, 0, 1, 1], [], []>} : vector<4x32xf32>, vector<32x256xf32>, vector<4x256xf32> -> vector<4x256xf32>
    %111 = vector.extract_strided_slice %110 {offsets = [0, 0], sizes = [4, 128], strides = [1, 1]} : vector<4x256xf32> to vector<4x128xf32>
    %112 = vector.extract_strided_slice %110 {offsets = [0, 128], sizes = [4, 128], strides = [1, 1]} : vector<4x256xf32> to vector<4x128xf32>
    %cst_23 = arith.constant dense<0.000000e+00> : vector<4x128xf32>
    %113 = tpu.matmul %91, %1, %cst_23 {dimension_numbers = #tpu.dot_dimension_numbers<[1], [0], [0], [1], [0, 0, 1, 1], [], []>} : vector<4x32xf32>, vector<32x128xf32>, vector<4x128xf32> -> vector<4x128xf32>
    %114 = arith.addf %112, %113 : vector<4x128xf32>
    %115 = arith.addf %114, %4 : vector<4x128xf32>
    %116 = arith.negf %115 : vector<4x128xf32>
    %117 = math.exp %116 : vector<4x128xf32>
    %cst_24 = arith.constant 1.000000e+00 : f32
    %118 = vector.broadcast %cst_24 : f32 to vector<4x128xf32>
    %119 = arith.addf %118, %117 : vector<4x128xf32>
    %120 = arith.divf %118, %119 : vector<4x128xf32>
    %121 = math.tanh %115 : vector<4x128xf32>
    %122 = vector.extract_strided_slice %120 {offsets = [0, 0], sizes = [4, 32], strides = [1, 1]} : vector<4x128xf32> to vector<4x32xf32>
    %123 = vector.extract_strided_slice %120 {offsets = [0, 32], sizes = [4, 32], strides = [1, 1]} : vector<4x128xf32> to vector<4x32xf32>
    %124 = vector.extract_strided_slice %121 {offsets = [0, 64], sizes = [4, 32], strides = [1, 1]} : vector<4x128xf32> to vector<4x32xf32>
    %125 = vector.extract_strided_slice %120 {offsets = [0, 96], sizes = [4, 32], strides = [1, 1]} : vector<4x128xf32> to vector<4x32xf32>
    %126 = arith.mulf %123, %89 : vector<4x32xf32>
    %127 = arith.mulf %122, %124 : vector<4x32xf32>
    %128 = arith.addf %126, %127 : vector<4x32xf32>
    %129 = math.tanh %128 : vector<4x32xf32>
    %130 = arith.mulf %125, %129 : vector<4x32xf32>
    %131 = vector.extract_strided_slice %11 {offsets = [0, 3, 0], sizes = [4, 1, 128], strides = [1, 1, 1]} : vector<4x8x128xf32> to vector<4x1x128xf32>
    %132 = vector.shape_cast %131 : vector<4x1x128xf32> to vector<4x128xf32>
    %133 = arith.addf %132, %111 : vector<4x128xf32>
    %134 = arith.negf %133 : vector<4x128xf32>
    %135 = math.exp %134 : vector<4x128xf32>
    %cst_25 = arith.constant 1.000000e+00 : f32
    %136 = vector.broadcast %cst_25 : f32 to vector<4x128xf32>
    %137 = arith.addf %136, %135 : vector<4x128xf32>
    %138 = arith.divf %136, %137 : vector<4x128xf32>
    %139 = math.tanh %133 : vector<4x128xf32>
    %140 = vector.extract_strided_slice %138 {offsets = [0, 0], sizes = [4, 32], strides = [1, 1]} : vector<4x128xf32> to vector<4x32xf32>
    %141 = vector.extract_strided_slice %138 {offsets = [0, 32], sizes = [4, 32], strides = [1, 1]} : vector<4x128xf32> to vector<4x32xf32>
    %142 = vector.extract_strided_slice %139 {offsets = [0, 64], sizes = [4, 32], strides = [1, 1]} : vector<4x128xf32> to vector<4x32xf32>
    %143 = vector.extract_strided_slice %138 {offsets = [0, 96], sizes = [4, 32], strides = [1, 1]} : vector<4x128xf32> to vector<4x32xf32>
    %144 = arith.mulf %141, %107 : vector<4x32xf32>
    %145 = arith.mulf %140, %142 : vector<4x32xf32>
    %146 = arith.addf %144, %145 : vector<4x32xf32>
    %147 = math.tanh %146 : vector<4x32xf32>
    %148 = arith.mulf %143, %147 : vector<4x32xf32>
    %cst_26 = arith.constant dense<0.000000e+00> : vector<4x256xf32>
    %149 = tpu.matmul %148, %0, %cst_26 {dimension_numbers = #tpu.dot_dimension_numbers<[1], [0], [0], [1], [0, 0, 1, 1], [], []>} : vector<4x32xf32>, vector<32x256xf32>, vector<4x256xf32> -> vector<4x256xf32>
    %150 = vector.extract_strided_slice %149 {offsets = [0, 0], sizes = [4, 128], strides = [1, 1]} : vector<4x256xf32> to vector<4x128xf32>
    %151 = vector.extract_strided_slice %149 {offsets = [0, 128], sizes = [4, 128], strides = [1, 1]} : vector<4x256xf32> to vector<4x128xf32>
    %cst_27 = arith.constant dense<0.000000e+00> : vector<4x128xf32>
    %152 = tpu.matmul %130, %1, %cst_27 {dimension_numbers = #tpu.dot_dimension_numbers<[1], [0], [0], [1], [0, 0, 1, 1], [], []>} : vector<4x32xf32>, vector<32x128xf32>, vector<4x128xf32> -> vector<4x128xf32>
    %153 = arith.addf %151, %152 : vector<4x128xf32>
    %154 = arith.addf %153, %4 : vector<4x128xf32>
    %155 = arith.negf %154 : vector<4x128xf32>
    %156 = math.exp %155 : vector<4x128xf32>
    %cst_28 = arith.constant 1.000000e+00 : f32
    %157 = vector.broadcast %cst_28 : f32 to vector<4x128xf32>
    %158 = arith.addf %157, %156 : vector<4x128xf32>
    %159 = arith.divf %157, %158 : vector<4x128xf32>
    %160 = math.tanh %154 : vector<4x128xf32>
    %161 = vector.extract_strided_slice %159 {offsets = [0, 0], sizes = [4, 32], strides = [1, 1]} : vector<4x128xf32> to vector<4x32xf32>
    %162 = vector.extract_strided_slice %159 {offsets = [0, 32], sizes = [4, 32], strides = [1, 1]} : vector<4x128xf32> to vector<4x32xf32>
    %163 = vector.extract_strided_slice %160 {offsets = [0, 64], sizes = [4, 32], strides = [1, 1]} : vector<4x128xf32> to vector<4x32xf32>
    %164 = vector.extract_strided_slice %159 {offsets = [0, 96], sizes = [4, 32], strides = [1, 1]} : vector<4x128xf32> to vector<4x32xf32>
    %165 = arith.mulf %162, %128 : vector<4x32xf32>
    %166 = arith.mulf %161, %163 : vector<4x32xf32>
    %167 = arith.addf %165, %166 : vector<4x32xf32>
    %168 = math.tanh %167 : vector<4x32xf32>
    %169 = arith.mulf %164, %168 : vector<4x32xf32>
    %170 = vector.extract_strided_slice %11 {offsets = [0, 4, 0], sizes = [4, 1, 128], strides = [1, 1, 1]} : vector<4x8x128xf32> to vector<4x1x128xf32>
    %171 = vector.shape_cast %170 : vector<4x1x128xf32> to vector<4x128xf32>
    %172 = arith.addf %171, %150 : vector<4x128xf32>
    %173 = arith.negf %172 : vector<4x128xf32>
    %174 = math.exp %173 : vector<4x128xf32>
    %cst_29 = arith.constant 1.000000e+00 : f32
    %175 = vector.broadcast %cst_29 : f32 to vector<4x128xf32>
    %176 = arith.addf %175, %174 : vector<4x128xf32>
    %177 = arith.divf %175, %176 : vector<4x128xf32>
    %178 = math.tanh %172 : vector<4x128xf32>
    %179 = vector.extract_strided_slice %177 {offsets = [0, 0], sizes = [4, 32], strides = [1, 1]} : vector<4x128xf32> to vector<4x32xf32>
    %180 = vector.extract_strided_slice %177 {offsets = [0, 32], sizes = [4, 32], strides = [1, 1]} : vector<4x128xf32> to vector<4x32xf32>
    %181 = vector.extract_strided_slice %178 {offsets = [0, 64], sizes = [4, 32], strides = [1, 1]} : vector<4x128xf32> to vector<4x32xf32>
    %182 = vector.extract_strided_slice %177 {offsets = [0, 96], sizes = [4, 32], strides = [1, 1]} : vector<4x128xf32> to vector<4x32xf32>
    %183 = arith.mulf %180, %146 : vector<4x32xf32>
    %184 = arith.mulf %179, %181 : vector<4x32xf32>
    %185 = arith.addf %183, %184 : vector<4x32xf32>
    %186 = math.tanh %185 : vector<4x32xf32>
    %187 = arith.mulf %182, %186 : vector<4x32xf32>
    %cst_30 = arith.constant dense<0.000000e+00> : vector<4x256xf32>
    %188 = tpu.matmul %187, %0, %cst_30 {dimension_numbers = #tpu.dot_dimension_numbers<[1], [0], [0], [1], [0, 0, 1, 1], [], []>} : vector<4x32xf32>, vector<32x256xf32>, vector<4x256xf32> -> vector<4x256xf32>
    %189 = vector.extract_strided_slice %188 {offsets = [0, 0], sizes = [4, 128], strides = [1, 1]} : vector<4x256xf32> to vector<4x128xf32>
    %190 = vector.extract_strided_slice %188 {offsets = [0, 128], sizes = [4, 128], strides = [1, 1]} : vector<4x256xf32> to vector<4x128xf32>
    %cst_31 = arith.constant dense<0.000000e+00> : vector<4x128xf32>
    %191 = tpu.matmul %169, %1, %cst_31 {dimension_numbers = #tpu.dot_dimension_numbers<[1], [0], [0], [1], [0, 0, 1, 1], [], []>} : vector<4x32xf32>, vector<32x128xf32>, vector<4x128xf32> -> vector<4x128xf32>
    %192 = arith.addf %190, %191 : vector<4x128xf32>
    %193 = arith.addf %192, %4 : vector<4x128xf32>
    %194 = arith.negf %193 : vector<4x128xf32>
    %195 = math.exp %194 : vector<4x128xf32>
    %cst_32 = arith.constant 1.000000e+00 : f32
    %196 = vector.broadcast %cst_32 : f32 to vector<4x128xf32>
    %197 = arith.addf %196, %195 : vector<4x128xf32>
    %198 = arith.divf %196, %197 : vector<4x128xf32>
    %199 = math.tanh %193 : vector<4x128xf32>
    %200 = vector.extract_strided_slice %198 {offsets = [0, 0], sizes = [4, 32], strides = [1, 1]} : vector<4x128xf32> to vector<4x32xf32>
    %201 = vector.extract_strided_slice %198 {offsets = [0, 32], sizes = [4, 32], strides = [1, 1]} : vector<4x128xf32> to vector<4x32xf32>
    %202 = vector.extract_strided_slice %199 {offsets = [0, 64], sizes = [4, 32], strides = [1, 1]} : vector<4x128xf32> to vector<4x32xf32>
    %203 = vector.extract_strided_slice %198 {offsets = [0, 96], sizes = [4, 32], strides = [1, 1]} : vector<4x128xf32> to vector<4x32xf32>
    %204 = arith.mulf %201, %167 : vector<4x32xf32>
    %205 = arith.mulf %200, %202 : vector<4x32xf32>
    %206 = arith.addf %204, %205 : vector<4x32xf32>
    %207 = math.tanh %206 : vector<4x32xf32>
    %208 = arith.mulf %203, %207 : vector<4x32xf32>
    %209 = vector.extract_strided_slice %11 {offsets = [0, 5, 0], sizes = [4, 1, 128], strides = [1, 1, 1]} : vector<4x8x128xf32> to vector<4x1x128xf32>
    %210 = vector.shape_cast %209 : vector<4x1x128xf32> to vector<4x128xf32>
    %211 = arith.addf %210, %189 : vector<4x128xf32>
    %212 = arith.negf %211 : vector<4x128xf32>
    %213 = math.exp %212 : vector<4x128xf32>
    %cst_33 = arith.constant 1.000000e+00 : f32
    %214 = vector.broadcast %cst_33 : f32 to vector<4x128xf32>
    %215 = arith.addf %214, %213 : vector<4x128xf32>
    %216 = arith.divf %214, %215 : vector<4x128xf32>
    %217 = math.tanh %211 : vector<4x128xf32>
    %218 = vector.extract_strided_slice %216 {offsets = [0, 0], sizes = [4, 32], strides = [1, 1]} : vector<4x128xf32> to vector<4x32xf32>
    %219 = vector.extract_strided_slice %216 {offsets = [0, 32], sizes = [4, 32], strides = [1, 1]} : vector<4x128xf32> to vector<4x32xf32>
    %220 = vector.extract_strided_slice %217 {offsets = [0, 64], sizes = [4, 32], strides = [1, 1]} : vector<4x128xf32> to vector<4x32xf32>
    %221 = vector.extract_strided_slice %216 {offsets = [0, 96], sizes = [4, 32], strides = [1, 1]} : vector<4x128xf32> to vector<4x32xf32>
    %222 = arith.mulf %219, %185 : vector<4x32xf32>
    %223 = arith.mulf %218, %220 : vector<4x32xf32>
    %224 = arith.addf %222, %223 : vector<4x32xf32>
    %225 = math.tanh %224 : vector<4x32xf32>
    %226 = arith.mulf %221, %225 : vector<4x32xf32>
    %cst_34 = arith.constant dense<0.000000e+00> : vector<4x256xf32>
    %227 = tpu.matmul %226, %0, %cst_34 {dimension_numbers = #tpu.dot_dimension_numbers<[1], [0], [0], [1], [0, 0, 1, 1], [], []>} : vector<4x32xf32>, vector<32x256xf32>, vector<4x256xf32> -> vector<4x256xf32>
    %228 = vector.extract_strided_slice %227 {offsets = [0, 0], sizes = [4, 128], strides = [1, 1]} : vector<4x256xf32> to vector<4x128xf32>
    %229 = vector.extract_strided_slice %227 {offsets = [0, 128], sizes = [4, 128], strides = [1, 1]} : vector<4x256xf32> to vector<4x128xf32>
    %cst_35 = arith.constant dense<0.000000e+00> : vector<4x128xf32>
    %230 = tpu.matmul %208, %1, %cst_35 {dimension_numbers = #tpu.dot_dimension_numbers<[1], [0], [0], [1], [0, 0, 1, 1], [], []>} : vector<4x32xf32>, vector<32x128xf32>, vector<4x128xf32> -> vector<4x128xf32>
    %231 = arith.addf %229, %230 : vector<4x128xf32>
    %232 = arith.addf %231, %4 : vector<4x128xf32>
    %233 = arith.negf %232 : vector<4x128xf32>
    %234 = math.exp %233 : vector<4x128xf32>
    %cst_36 = arith.constant 1.000000e+00 : f32
    %235 = vector.broadcast %cst_36 : f32 to vector<4x128xf32>
    %236 = arith.addf %235, %234 : vector<4x128xf32>
    %237 = arith.divf %235, %236 : vector<4x128xf32>
    %238 = math.tanh %232 : vector<4x128xf32>
    %239 = vector.extract_strided_slice %237 {offsets = [0, 0], sizes = [4, 32], strides = [1, 1]} : vector<4x128xf32> to vector<4x32xf32>
    %240 = vector.extract_strided_slice %237 {offsets = [0, 32], sizes = [4, 32], strides = [1, 1]} : vector<4x128xf32> to vector<4x32xf32>
    %241 = vector.extract_strided_slice %238 {offsets = [0, 64], sizes = [4, 32], strides = [1, 1]} : vector<4x128xf32> to vector<4x32xf32>
    %242 = vector.extract_strided_slice %237 {offsets = [0, 96], sizes = [4, 32], strides = [1, 1]} : vector<4x128xf32> to vector<4x32xf32>
    %243 = arith.mulf %240, %206 : vector<4x32xf32>
    %244 = arith.mulf %239, %241 : vector<4x32xf32>
    %245 = arith.addf %243, %244 : vector<4x32xf32>
    %246 = math.tanh %245 : vector<4x32xf32>
    %247 = arith.mulf %242, %246 : vector<4x32xf32>
    %248 = vector.extract_strided_slice %11 {offsets = [0, 6, 0], sizes = [4, 1, 128], strides = [1, 1, 1]} : vector<4x8x128xf32> to vector<4x1x128xf32>
    %249 = vector.shape_cast %248 : vector<4x1x128xf32> to vector<4x128xf32>
    %250 = arith.addf %249, %228 : vector<4x128xf32>
    %251 = arith.negf %250 : vector<4x128xf32>
    %252 = math.exp %251 : vector<4x128xf32>
    %cst_37 = arith.constant 1.000000e+00 : f32
    %253 = vector.broadcast %cst_37 : f32 to vector<4x128xf32>
    %254 = arith.addf %253, %252 : vector<4x128xf32>
    %255 = arith.divf %253, %254 : vector<4x128xf32>
    %256 = math.tanh %250 : vector<4x128xf32>
    %257 = vector.extract_strided_slice %255 {offsets = [0, 0], sizes = [4, 32], strides = [1, 1]} : vector<4x128xf32> to vector<4x32xf32>
    %258 = vector.extract_strided_slice %255 {offsets = [0, 32], sizes = [4, 32], strides = [1, 1]} : vector<4x128xf32> to vector<4x32xf32>
    %259 = vector.extract_strided_slice %256 {offsets = [0, 64], sizes = [4, 32], strides = [1, 1]} : vector<4x128xf32> to vector<4x32xf32>
    %260 = vector.extract_strided_slice %255 {offsets = [0, 96], sizes = [4, 32], strides = [1, 1]} : vector<4x128xf32> to vector<4x32xf32>
    %261 = arith.mulf %258, %224 : vector<4x32xf32>
    %262 = arith.mulf %257, %259 : vector<4x32xf32>
    %263 = arith.addf %261, %262 : vector<4x32xf32>
    %264 = math.tanh %263 : vector<4x32xf32>
    %265 = arith.mulf %260, %264 : vector<4x32xf32>
    %cst_38 = arith.constant dense<0.000000e+00> : vector<4x256xf32>
    %266 = tpu.matmul %265, %0, %cst_38 {dimension_numbers = #tpu.dot_dimension_numbers<[1], [0], [0], [1], [0, 0, 1, 1], [], []>} : vector<4x32xf32>, vector<32x256xf32>, vector<4x256xf32> -> vector<4x256xf32>
    %267 = vector.extract_strided_slice %266 {offsets = [0, 0], sizes = [4, 128], strides = [1, 1]} : vector<4x256xf32> to vector<4x128xf32>
    %268 = vector.extract_strided_slice %266 {offsets = [0, 128], sizes = [4, 128], strides = [1, 1]} : vector<4x256xf32> to vector<4x128xf32>
    %cst_39 = arith.constant dense<0.000000e+00> : vector<4x128xf32>
    %269 = tpu.matmul %247, %1, %cst_39 {dimension_numbers = #tpu.dot_dimension_numbers<[1], [0], [0], [1], [0, 0, 1, 1], [], []>} : vector<4x32xf32>, vector<32x128xf32>, vector<4x128xf32> -> vector<4x128xf32>
    %270 = arith.addf %268, %269 : vector<4x128xf32>
    %271 = arith.addf %270, %4 : vector<4x128xf32>
    %272 = arith.negf %271 : vector<4x128xf32>
    %273 = math.exp %272 : vector<4x128xf32>
    %cst_40 = arith.constant 1.000000e+00 : f32
    %274 = vector.broadcast %cst_40 : f32 to vector<4x128xf32>
    %275 = arith.addf %274, %273 : vector<4x128xf32>
    %276 = arith.divf %274, %275 : vector<4x128xf32>
    %277 = math.tanh %271 : vector<4x128xf32>
    %278 = vector.extract_strided_slice %276 {offsets = [0, 0], sizes = [4, 32], strides = [1, 1]} : vector<4x128xf32> to vector<4x32xf32>
    %279 = vector.extract_strided_slice %276 {offsets = [0, 32], sizes = [4, 32], strides = [1, 1]} : vector<4x128xf32> to vector<4x32xf32>
    %280 = vector.extract_strided_slice %277 {offsets = [0, 64], sizes = [4, 32], strides = [1, 1]} : vector<4x128xf32> to vector<4x32xf32>
    %281 = vector.extract_strided_slice %276 {offsets = [0, 96], sizes = [4, 32], strides = [1, 1]} : vector<4x128xf32> to vector<4x32xf32>
    %282 = arith.mulf %279, %245 : vector<4x32xf32>
    %283 = arith.mulf %278, %280 : vector<4x32xf32>
    %284 = arith.addf %282, %283 : vector<4x32xf32>
    %285 = math.tanh %284 : vector<4x32xf32>
    %286 = arith.mulf %281, %285 : vector<4x32xf32>
    %287 = vector.extract_strided_slice %11 {offsets = [0, 7, 0], sizes = [4, 1, 128], strides = [1, 1, 1]} : vector<4x8x128xf32> to vector<4x1x128xf32>
    %288 = vector.shape_cast %287 : vector<4x1x128xf32> to vector<4x128xf32>
    %289 = arith.addf %288, %267 : vector<4x128xf32>
    %290 = arith.negf %289 : vector<4x128xf32>
    %291 = math.exp %290 : vector<4x128xf32>
    %cst_41 = arith.constant 1.000000e+00 : f32
    %292 = vector.broadcast %cst_41 : f32 to vector<4x128xf32>
    %293 = arith.addf %292, %291 : vector<4x128xf32>
    %294 = arith.divf %292, %293 : vector<4x128xf32>
    %295 = math.tanh %289 : vector<4x128xf32>
    %296 = vector.extract_strided_slice %294 {offsets = [0, 0], sizes = [4, 32], strides = [1, 1]} : vector<4x128xf32> to vector<4x32xf32>
    %297 = vector.extract_strided_slice %294 {offsets = [0, 32], sizes = [4, 32], strides = [1, 1]} : vector<4x128xf32> to vector<4x32xf32>
    %298 = vector.extract_strided_slice %295 {offsets = [0, 64], sizes = [4, 32], strides = [1, 1]} : vector<4x128xf32> to vector<4x32xf32>
    %299 = vector.extract_strided_slice %294 {offsets = [0, 96], sizes = [4, 32], strides = [1, 1]} : vector<4x128xf32> to vector<4x32xf32>
    %300 = arith.mulf %297, %263 : vector<4x32xf32>
    %301 = arith.mulf %296, %298 : vector<4x32xf32>
    %302 = arith.addf %300, %301 : vector<4x32xf32>
    %303 = math.tanh %302 : vector<4x32xf32>
    %304 = arith.mulf %299, %303 : vector<4x32xf32>
    %cst_42 = arith.constant dense<0.000000e+00> : vector<4x256xf32>
    %305 = tpu.matmul %304, %0, %cst_42 {dimension_numbers = #tpu.dot_dimension_numbers<[1], [0], [0], [1], [0, 0, 1, 1], [], []>} : vector<4x32xf32>, vector<32x256xf32>, vector<4x256xf32> -> vector<4x256xf32>
    %306 = vector.extract_strided_slice %305 {offsets = [0, 128], sizes = [4, 128], strides = [1, 1]} : vector<4x256xf32> to vector<4x128xf32>
    %cst_43 = arith.constant dense<0.000000e+00> : vector<4x128xf32>
    %307 = tpu.matmul %286, %1, %cst_43 {dimension_numbers = #tpu.dot_dimension_numbers<[1], [0], [0], [1], [0, 0, 1, 1], [], []>} : vector<4x32xf32>, vector<32x128xf32>, vector<4x128xf32> -> vector<4x128xf32>
    %308 = arith.addf %306, %307 : vector<4x128xf32>
    %309 = arith.addf %308, %4 : vector<4x128xf32>
    %310 = arith.negf %309 : vector<4x128xf32>
    %311 = math.exp %310 : vector<4x128xf32>
    %cst_44 = arith.constant 1.000000e+00 : f32
    %312 = vector.broadcast %cst_44 : f32 to vector<4x128xf32>
    %313 = arith.addf %312, %311 : vector<4x128xf32>
    %314 = arith.divf %312, %313 : vector<4x128xf32>
    %315 = math.tanh %309 : vector<4x128xf32>
    %316 = vector.extract_strided_slice %314 {offsets = [0, 0], sizes = [4, 32], strides = [1, 1]} : vector<4x128xf32> to vector<4x32xf32>
    %317 = vector.extract_strided_slice %314 {offsets = [0, 32], sizes = [4, 32], strides = [1, 1]} : vector<4x128xf32> to vector<4x32xf32>
    %318 = vector.extract_strided_slice %315 {offsets = [0, 64], sizes = [4, 32], strides = [1, 1]} : vector<4x128xf32> to vector<4x32xf32>
    %319 = vector.extract_strided_slice %314 {offsets = [0, 96], sizes = [4, 32], strides = [1, 1]} : vector<4x128xf32> to vector<4x32xf32>
    %320 = arith.mulf %317, %284 : vector<4x32xf32>
    %321 = arith.mulf %316, %318 : vector<4x32xf32>
    %322 = arith.addf %320, %321 : vector<4x32xf32>
    %323 = math.tanh %322 : vector<4x32xf32>
    %324 = arith.mulf %319, %323 : vector<4x32xf32>
    %c0_45 = arith.constant 0 : index
    %c0_46 = arith.constant 0 : index
    %325 = vector.load %arg6[%c0_45, %c0_46] : memref<32x4xf32, #tpu.memory_space<vmem>>, vector<32x4xf32>
    %cst_47 = arith.constant dense<0.000000e+00> : vector<4x4xf32>
    %326 = tpu.matmul %324, %325, %cst_47 {dimension_numbers = #tpu.dot_dimension_numbers<[1], [0], [0], [1], [0, 0, 1, 1], [], []>} : vector<4x32xf32>, vector<32x4xf32>, vector<4x4xf32> -> vector<4x4xf32>
    %c0_48 = arith.constant 0 : index
    %c0_49 = arith.constant 0 : index
    %327 = vector.load %arg7[%c0_48, %c0_49] : memref<1x4xf32, #tpu.memory_space<vmem>>, vector<1x4xf32>
    %328 = vector.broadcast %327 : vector<1x4xf32> to vector<4x4xf32>
    %329 = arith.addf %326, %328 : vector<4x4xf32>
    %cst_50 = arith.constant dense<0xFF800000> : vector<4xf32>
    %330 = vector.multi_reduction <maximumf>, %329, %cst_50 [1] : vector<4x4xf32> to vector<4xf32>
    %331 = vector.shape_cast %330 : vector<4xf32> to vector<4x1xf32>
    %332 = vector.broadcast %331 : vector<4x1xf32> to vector<4x4xf32>
    %333 = arith.subf %329, %332 : vector<4x4xf32>
    %334 = math.exp %333 : vector<4x4xf32>
    %cst_51 = arith.constant dense<0.000000e+00> : vector<4xf32>
    %335 = vector.multi_reduction <add>, %334, %cst_51 [1] : vector<4x4xf32> to vector<4xf32>
    %336 = vector.shape_cast %335 : vector<4xf32> to vector<4x1xf32>
    %337 = vector.broadcast %336 : vector<4x1xf32> to vector<4x4xf32>
    %338 = arith.divf %334, %337 : vector<4x4xf32>
    %c0_52 = arith.constant 0 : index
    %c0_53 = arith.constant 0 : index
    %339 = vector.load %arg8[%c0_52, %c0_53] : memref<4x4xf32, #tpu.memory_space<vmem>>, vector<4x4xf32>
    tpu.vector_store %arg8[%c0_52, %c0_53], %338 {strides = array<i32>} : memref<4x4xf32, #tpu.memory_space<vmem>>, vector<4x4xf32>,
    return
  }
}

</mosaic_0001>

<bundles_post_ra>
// kernel: tpu_custom_call.1
= control target key start
LH: loop header
LB: loop body
LE: loop exit
PB: predicated region body
PF: predicated region fallthrough
CT: control target
= control target key end

     0   :  { %13 = vsyncpa [#allocation3], 0  ;;  %s3788_s0 = inlined_call_operand.vmem [shape: f32[32,8], index: 0, kind: input, shape index: {}]   ;;  %s3789_s1 = inlined_call_operand.vmem [shape: f32[8,128], index: 1, kind: input, shape index: {}]   ;;  %s3790_s2 = inlined_call_operand.vmem [shape: f32[1,128], index: 2, kind: input, shape index: {}]   ;;  %s3791_s3 = inlined_call_operand.vmem [shape: f32[32,256], index: 3, kind: input, shape index: {}]   ;;  %s3792_s4 = inlined_call_operand.hbm [shape: f32[32,128], index: 4, kind: input, shape index: {}]   ;;  %s3793_s5 = inlined_call_operand.vmem [shape: f32[1,128], index: 5, kind: input, shape index: {}]   ;;  %s3794_s6 = inlined_call_operand.vmem [shape: f32[32,4], index: 6, kind: input, shape index: {}]   ;;  %s3795_s7 = inlined_call_operand.vmem [shape: f32[1,4], index: 7, kind: input, shape index: {}]   ;;  %s3796_s8 = inlined_call_operand.hbm [shape: f32[4,4], index: 8, kind: output, shape index: {}]  }
   0x1   :  { %14 = vsyncpa [#allocation4], 0  ;;  %s27_s29 = sshll.u32 %s3792_s4, 4  ;;  %s2946_s30 = smov [#allocation2]   ;;  %s28_s29 = int_to_ptr.hbm [resolvable:$true] %s27_s29 }
   0x2   :  { %s29_s9 = sshll.u32 %s2946_s30, 4  ;;  %s2947_s10 = smov 128   ;;  %s30_s9 = int_to_ptr.vmem [resolvable:$true] %s29_s9 }
   0x3   :  { %s2948_s11 = smov 8  }
   0x4   :  { %35 = dma.hbm_to_vmem [thread:$0]  %s28_s29, 512, %s30_s9, [#allocation3], %s2947_s10, %s2947_s10, %s2948_s11  }
   0x5   :  { %2942 = dma.done.wait [#allocation3], 512  }
   0x6   :  { %2943 = vsyncadd [#allocation3], 4294966784  ;;  %vm71_vm0 = vcmask 64512   ;;  %v66_v0 = vld [vmem:[%s3789_s1] sm:$0xff]  ;;  %v63_v2 = vld [vmem:[%s3788_s0 + $0x8] sm:$0xff]  ;;  %s2949_s22 = smov 64  }
   0x7   :  { %v62_v1 = vld [vmem:[%s3788_s0] sm:$0xff]  ;;  %99 = vmatpush.msra.mxu0 %v66_v0  ;;  %v64_v3 = vld [vmem:[%s3788_s0 + $0x10] sm:$0xff]  ;;  %v65_v4 = vld [vmem:[%s3788_s0 + $0x18] sm:$0xff]  ;;  %s2950_s0 = smov 32   ;;  %s2469_s1 = sshll.u32 %s3796_s8, 4  ;;  %s2470_s1 = int_to_ptr.hbm [resolvable:$true] %s2469_s1 }
   0x8   :  { %2479 = vmatmul.msk.f32.vlgmr.msra.gmra.mxu0 %vm71_vm0, %v62_v1  ;;  %v2553_v5 = vld [vmem:[%s3790_s2] ss:$0 sm:$0xff] }
  0x10   :  { %2480 = vmatmul.msk.f32.gmra.mxu0 %vm71_vm0, %v63_v2 }
  0x18   :  { %2481 = vmatmul.msk.f32.gmra.mxu0 %vm71_vm0, %v64_v3 }
  0x20   :  { %2482 = vmatmul.msk.f32.gmra.mxu0 %vm71_vm0, %v65_v4 }
  0x85   :  { %v101_v6 = vpop.f32.mrf.mxu0 }
  0x86   :  { %v3019_v7 = vadd.f32 %v2553_v5, %v101_v6 }
  0x88   :  { %2556 = vtanh.f32 %v3019_v7  ;;  %v2483_v18 = vmul.f32 -1.442695, %v3019_v7 }
  0x8d   :  { %v104_v8 = vpop.f32.mrf.mxu0 }
  0x8e   :  { %v2557_v9 = vpop.eup %2556  ;;  %v3022_v10 = vadd.f32 %v2553_v5, %v104_v8 }
  0x8f   :  { %205 = vrot.lane.b32.xlu1 %v2557_v9, %s2949_s22 }
  0x90   :  { %2558 = vtanh.f32 %v3022_v10  ;;  %v2484_v19 = vmul.f32 -1.442695, %v3022_v10 }
  0x95   :  { %v107_v11 = vpop.f32.mrf.mxu0 }
  0x96   :  { %v2559_v12 = vpop.eup %2558  ;;  %v3026_v13 = vadd.f32 %v2553_v5, %v107_v11 }
  0x97   :  { %207 = vrot.lane.b32.xlu0 %v2559_v12, %s2949_s22 }
  0x98   :  { %2560 = vtanh.f32 %v3026_v13  ;;  %v2485_v22 = vmul.f32 -1.442695, %v3026_v13 }
  0x9d   :  { %v110_v14 = vpop.f32.mrf.mxu0 }
  0x9e   :  { %v2561_v15 = vpop.eup %2560  ;;  %v3030_v16 = vadd.f32 %v2553_v5, %v110_v14 }
  0x9f   :  { %209 = vrot.lane.b32.xlu0 %v2561_v15, %s2949_s22 }
  0xa0   :  { %2562 = vtanh.f32 %v3030_v16  ;;  %v2486_v26 = vmul.f32 -1.442695, %v3030_v16 }
  0xa1   :  { %2564 = vpow2.f32 %v2483_v18 }
  0xa2   :  { %2566 = vpow2.f32 %v2484_v19 }
  0xa6   :  { %v2563_v17 = vpop.eup %2562 }
  0xa7   :  { %211 = vrot.lane.b32.xlu1 %v2563_v17, %s2949_s22  ;;  %v2565_v20 = vpop.eup %2564 }
  0xa8   :  { %v129_v21 = vadd.f32 1.0, %v2565_v20  ;;  %v2567_v23 = vpop.eup %2566 }
  0xa9   :  { %v130_v24 = vadd.f32 1.0, %v2567_v23 }
  0xaa   :  { %2568 = vrcp.f32 %v129_v21  ;;  %v144_v39 = vand.u32 2147483648, %v129_v21  ;;  %vm138_vm2 = vweird.f32 %v129_v21  ;;  %v142_v40 = vand.u32 2147483647, %v129_v21 }
  0xab   :  { %2570 = vpow2.f32 %v2485_v22  ;;  %v159_v51 = vand.u32 2147483648, %v130_v24  ;;  %vm153_vm6 = vweird.f32 %v130_v24  ;;  %v157_v52 = vand.u32 2147483647, %v130_v24 }
  0xac   :  { %2572 = vrcp.f32 %v130_v24  ;;  %v145_v44 = vor.u32 1.1754944e-38, %v144_v39  ;;  %vm143_vm4 = vcmp.eq.f32.partialorder %v142_v40, 8.507059e+37  ;;  %v3095_v39 = vld [vmem:[#allocation2 + $0x10] sm:$0xff] }
  0xad   :  { %2574 = vpow2.f32 %v2486_v26  ;;  %v160_v56 = vor.u32 1.1754944e-38, %v159_v51  ;;  %vm158_vm8 = vcmp.eq.f32.partialorder %v157_v52, 8.507059e+37  ;;  %v3101_v40 = vld [vmem:[%s3791_s3 + $0x10] sm:$0xff] }
  0xb0   :  { %v2569_v25 = vpop.eup %2568 }
  0xb1   :  { %v2571_v27 = vpop.eup %2570  ;;  %v134_v28 = vmul.f32 %v2569_v25, %v129_v21  ;;  %vm139_vm1 = vweird.f32 %v2569_v25 }
  0xb2   :  { %v131_v29 = vadd.f32 1.0, %v2571_v27  ;;  %v2573_v31 = vpop.eup %2572  ;;  %vm140_vm3 = vmor %vm138_vm2, %vm139_vm1  ;;  %vm270_vm1 = vcmask 1041409   ;;  %vm273_vm2 = vcmask 1042434  }
  0xb3   :  { %v135_v30 = vsub.f32 1.0, %v134_v28  ;;  %v2575_v32 = vpop.eup %2574  ;;  %v149_v34 = vmul.f32 %v2573_v31, %v130_v24  ;;  %vm154_vm5 = vweird.f32 %v2573_v31 }
  0xb4   :  { %2576 = vrcp.f32 %v131_v29  ;;  %v132_v35 = vadd.f32 1.0, %v2575_v32  ;;  %vm155_vm7 = vmor %vm153_vm6, %vm154_vm5  ;;  %v174_v62 = vand.u32 2147483648, %v131_v29  ;;  %vm168_vm10 = vweird.f32 %v131_v29 }
  0xb5   :  { %v136_v33 = vmul.f32 %v2569_v25, %v135_v30  ;;  %v150_v37 = vsub.f32 1.0, %v149_v34  ;;  %v172_v63 = vand.u32 2147483647, %v131_v29  ;;  %v3074_v34 = vld [vmem:[%s3791_s3 + $0x30] sm:$0xff] }
  0xb6   :  { %2578 = vrcp.f32 %v132_v35  ;;  %v175_v2 = vor.u32 1.1754944e-38, %v174_v62  ;;  %v189_v8 = vand.u32 2147483648, %v132_v35  ;;  %vm183_vm14 = vweird.f32 %v132_v35  ;;  %295 = vmatpush.msra.mxu1 %v3074_v34  ;;  %1455 = vmatpush.msrb.mxu0 %v3074_v34 }
  0xb7   :  { %v137_v36 = vadd.f32 %v2569_v25, %v136_v33  ;;  %v151_v42 = vmul.f32 %v2573_v31, %v150_v37  ;;  %vm173_vm12 = vcmp.eq.f32.partialorder %v172_v63, 8.507059e+37  ;;  %v187_v9 = vand.u32 2147483647, %v132_v35  ;;  %v3088_v37 = vld [vmem:[%s3791_s3 + $0x20] sm:$0xff] }
  0xb8   :  { %v190_v12 = vor.u32 1.1754944e-38, %v189_v8  ;;  %296 = vmatpush.msra.mxu1 %v3088_v37  ;;  %1456 = vmatpush.msrb.mxu0 %v3088_v37 }
  0xb9   :  { %v141_v41 = vsel %vm140_vm3, %v2569_v25, %v137_v36  ;;  %v152_v48 = vadd.f32 %v2573_v31, %v151_v42  ;;  %vm188_vm0 = vcmp.eq.f32.partialorder %v187_v9, 8.507059e+37  ;;  %v3081_v36 = vld [vmem:[#allocation2 + $0x18] sm:$0xff]  ;;  %v3111_v42 = vld [vmem:[#allocation2 + $0x8] sm:$0xff]  ;;  %vm276_vm3 = vcmask 1043459  }
  0xba   :  { %v2577_v38 = vpop.eup %2576  ;;  %v3039_v46 = vsel %vm143_vm4, %v145_v44, %v141_v41  ;;  %338 = vmatpush.msra.mxu3 %v3081_v36  ;;  %v3106_v41 = vld [vmem:[%s3791_s3 + $0x18] sm:$0xff]  ;;  %297 = vmatpush.msra.mxu1 %v3101_v40  ;;  %vm280_vm4 = vcmask 261120  }
  0xbb   :  { %v164_v43 = vmul.f32 %v2577_v38, %v131_v29  ;;  %v156_v53 = vsel %vm155_vm7, %v2573_v31, %v152_v48  ;;  %vm169_vm9 = vweird.f32 %v2577_v38  ;;  %v197_v25 = vmul.f32 0.0, %v3039_v46  ;;  %1457 = vmatpush.msrb.mxu0 %v3101_v40 }
  0xbc   :  { %v2579_v50 = vpop.eup %2578  ;;  %v3043_v58 = vsel %vm158_vm8, %v160_v56, %v156_v53  ;;  %vm170_vm11 = vmor %vm168_vm10, %vm169_vm9  ;;  %339 = vmatpush.msra.mxu3 %v3095_v39 }
  0xbd   :  { %v165_v49 = vsub.f32 1.0, %v164_v43  ;;  %v179_v55 = vmul.f32 %v2579_v50, %v132_v35  ;;  %vm184_vm13 = vweird.f32 %v2579_v50  ;;  %v198_v18 = vmul.f32 0.0, %v3043_v58  ;;  %v3079_v35 = vld [vmem:[%s3791_s3 + $0x38] sm:$0xff] }
  0xbe   :  { %vm185_vm15 = vmor %vm183_vm14, %vm184_vm13  ;;  %315 = vmatpush.msra.mxu2 %v3079_v35  ;;  %340 = vmatpush.msra.mxu3 %v3111_v42 }
  0xbf   :  { %v166_v54 = vmul.f32 %v2577_v38, %v165_v49  ;;  %v180_v61 = vsub.f32 1.0, %v179_v55 }
  0xc1   :  { %v167_v60 = vadd.f32 %v2577_v38, %v166_v54  ;;  %v181_v1 = vmul.f32 %v2579_v50, %v180_v61 }
  0xc3   :  { %v171_v0 = vsel %vm170_vm11, %v2577_v38, %v167_v60  ;;  %v182_v6 = vadd.f32 %v2579_v50, %v181_v1  ;;  %v3093_v38 = vld [vmem:[%s3791_s3 + $0x28] sm:$0xff]  ;;  %v2951_v60 = vmov 0.0  }
  0xc4   :  { %v3047_v3 = vsel %vm173_vm12, %v175_v2, %v171_v0  ;;  %316 = vmatpush.msra.mxu2 %v3093_v38 }
  0xc5   :  { %v186_v11 = vsel %vm185_vm15, %v2579_v50, %v182_v6  ;;  %v199_v21 = vmul.f32 0.0, %v3047_v3 }
  0xc6   :  { %v191_v14 = vsel %vm188_vm0, %v190_v12, %v186_v11  ;;  %317 = vmatpush.msra.mxu2 %v3106_v41  ;;  %v3179_v11 = vld [vmem:[%s3793_s5] ss:$0 sm:$0xff] }
  0xc7   :  { %v200_v30 = vmul.f32 0.0, %v191_v14 }
 0x101   :  { %v206_v45 = vpop.permute.xlu1 %205 }
 0x102   :  { %v217_v47 = vmul.f32 %v206_v45, %v3039_v46 }
 0x104   :  { %225 = vrot.lane.b32.xlu0 %v217_v47, %s2950_s0 }
 0x109   :  { %v208_v57 = vpop.permute.xlu0 %207 }
 0x10a   :  { %v218_v59 = vmul.f32 %v208_v57, %v3043_v58 }
 0x10c   :  { %227 = vrot.lane.b32.xlu2 %v218_v59, %s2950_s0  ;;  %v3136_v59 = vld [vmem:[#allocation2] sm:$0xff] }
 0x10d   :  { %341 = vmatpush.msra.mxu3 %v3136_v59 }
 0x10e   :  { %342 = vmatmul.f32.vlgmr.msra.gmra.mxu3 %v2951_v60 }
 0x10f   :  { %628 = vmatpush.msrb.mxu3 %v3081_v36 }
 0x111   :  { %v210_v4 = vpop.permute.xlu0 %209  ;;  %629 = vmatpush.msrb.mxu3 %v3095_v39 }
 0x112   :  { %v219_v5 = vmul.f32 %v210_v4, %v3047_v3 }
 0x113   :  { %630 = vmatpush.msrb.mxu3 %v3111_v42 }
 0x114   :  { %229 = vrot.lane.b32.xlu2 %v219_v5, %s2950_s0 }
 0x115   :  { %631 = vmatpush.msrb.mxu3 %v3136_v59 }
 0x117   :  { %918 = vmatpush.msra.mxu3 %v3081_v36 }
 0x119   :  { %v212_v15 = vpop.permute.xlu1 %211  ;;  %919 = vmatpush.msra.mxu3 %v3095_v39 }
 0x11a   :  { %v220_v17 = vmul.f32 %v212_v15, %v191_v14 }
 0x11b   :  { %920 = vmatpush.msra.mxu3 %v3111_v42 }
 0x11c   :  { %231 = vrot.lane.b32.xlu1 %v220_v17, %s2950_s0 }
 0x11d   :  { %921 = vmatpush.msra.mxu3 %v3136_v59 }
 0x166   :  { %v228_v19 = vpop.permute.xlu2 %227 }
 0x167   :  { %v3053_v20 = vadd.f32 %v228_v19, %v198_v18 }
 0x169   :  { %2580 = vtanh.f32 %v3053_v20 }
 0x16e   :  { %v230_v22 = vpop.permute.xlu2 %229 }
 0x16f   :  { %v2581_v23 = vpop.eup %2580  ;;  %v3057_v24 = vadd.f32 %v230_v22, %v199_v21 }
 0x170   :  { %251 = vrot.lane.b32.xlu2 %v2581_v23, %s2949_s22 }
 0x171   :  { %2582 = vtanh.f32 %v3057_v24 }
 0x176   :  { %v226_v26 = vpop.permute.xlu0 %225 }
 0x177   :  { %v2583_v27 = vpop.eup %2582  ;;  %v3062_v28 = vadd.f32 %v226_v26, %v197_v25 }
 0x178   :  { %253 = vrot.lane.b32.xlu0 %v2583_v27, %s2949_s22 }
 0x179   :  { %2584 = vtanh.f32 %v3062_v28 }
 0x17f   :  { %v2585_v29 = vpop.eup %2584 }
 0x180   :  { %249 = vrot.lane.b32.xlu1 %v2585_v29, %s2949_s22 }
 0x18e   :  { %v232_v31 = vpop.permute.xlu1 %231 }
 0x18f   :  { %v3067_v32 = vadd.f32 %v232_v31, %v200_v30 }
 0x191   :  { %2586 = vtanh.f32 %v3067_v32  ;;  %v343_v6 = vpop.f32.mrf.mxu3 }
 0x197   :  { %v2587_v33 = vpop.eup %2586 }
 0x198   :  { %255 = vrot.lane.b32.xlu2 %v2587_v33, %s2949_s22 }
 0x1ca   :  { %v252_v43 = vpop.permute.xlu2 %251 }
 0x1cb   :  { %v262_v45 = vmul.f32 %v252_v43, %v3043_v58  ;;  %v3129_v58 = vld [vmem:[%s3791_s3] sm:$0xff] }
 0x1cc   :  { %298 = vmatpush.msra.mxu1 %v3129_v58  ;;  %1458 = vmatpush.msrb.mxu0 %v3129_v58 }
 0x1cd   :  { %v269_v50 = vrot.slane %v262_v45, 7 }
 0x1ce   :  { %583 = vmatpush.msrb.mxu1 %v3074_v34  ;;  %1767 = vmatpush.msra.mxu0 %v3079_v35 }
 0x1d0   :  { %584 = vmatpush.msrb.mxu1 %v3088_v37  ;;  %1768 = vmatpush.msra.mxu0 %v3093_v38 }
 0x1d2   :  { %585 = vmatpush.msrb.mxu1 %v3101_v40  ;;  %1769 = vmatpush.msra.mxu0 %v3106_v41 }
 0x1d4   :  { %586 = vmatpush.msrb.mxu1 %v3129_v58 }
 0x1ea   :  { %v254_v44 = vpop.permute.xlu0 %253 }
 0x1eb   :  { %v263_v47 = vmul.f32 %v254_v44, %v3047_v3 }
 0x1ed   :  { %v272_v53 = vrot.slane %v263_v47, 6 }
 0x1f2   :  { %v256_v48 = vpop.permute.xlu2 %255  ;;  %v250_v49 = vpop.permute.xlu1 %249 }
 0x1f3   :  { %v264_v51 = vmul.f32 %v256_v48, %v191_v14  ;;  %v261_v52 = vmul.f32 %v250_v49, %v3039_v46  ;;  %v3134_v46 = vld [vmem:[%s3791_s3 + $0x8] sm:$0xff] }
 0x1f4   :  { %318 = vmatpush.msra.mxu2 %v3134_v46  ;;  %1770 = vmatpush.msra.mxu0 %v3134_v46 }
 0x1f5   :  { %v275_v54 = vrot.slane %v264_v51, 5  ;;  %v271_v55 = vsel %vm270_vm1, %v269_v50, %v261_v52 }
 0x1f6   :  { %v274_v56 = vsel %vm273_vm2, %v272_v53, %v271_v55  ;;  %603 = vmatpush.msrb.mxu2 %v3079_v35 }
 0x1f7   :  { %v277_v57 = vsel %vm276_vm3, %v275_v54, %v274_v56 }
 0x1f8   :  { %278 = vrot.lane.b32.xlu0 %v277_v57, %s2950_s0  ;;  %604 = vmatpush.msrb.mxu2 %v3093_v38 }
 0x1fa   :  { %605 = vmatpush.msrb.mxu2 %v3106_v41 }
 0x1fc   :  { %606 = vmatpush.msrb.mxu2 %v3134_v46 }
 0x26a   :  { %v279_v61 = vpop.permute.xlu0 %278 }
 0x26b   :  { %2487 = vmatmul.msk.f32.vlgmr.msra.gmra.mxu1 %vm280_vm4, %v279_v61  ;;  %2488 = vmatmul.msk.f32.vlgmr.msra.gmra.mxu2 %vm280_vm4, %v279_v61 }
 0x26c   :  { %873 = vmatpush.msra.mxu1 %v3074_v34  ;;  %893 = vmatpush.msra.mxu2 %v3079_v35 }
 0x26e   :  { %874 = vmatpush.msra.mxu1 %v3088_v37  ;;  %894 = vmatpush.msra.mxu2 %v3093_v38 }
 0x270   :  { %875 = vmatpush.msra.mxu1 %v3101_v40  ;;  %895 = vmatpush.msra.mxu2 %v3106_v41 }
 0x272   :  { %876 = vmatpush.msra.mxu1 %v3129_v58  ;;  %896 = vmatpush.msra.mxu2 %v3134_v46 }
 0x2e8   :  { %v300_v62 = vpop.f32.mrf.mxu1 }
 0x2e9   :  { %v386_v63 = vrot.slane %v300_v62, 7  ;;  %v394_v0 = vadd.f32 %v300_v62, %v3022_v10  ;;  %v387_v1 = vrot.slane %v300_v62, 1  ;;  %v388_v3 = vrot.slane %v300_v62, 2 }
 0x2eb   :  { %v393_v2 = vadd.f32 %v386_v63, %v3019_v7  ;;  %2588 = vtanh.f32 %v394_v0  ;;  %v395_v4 = vadd.f32 %v387_v1, %v3026_v13  ;;  %v396_v9 = vadd.f32 %v388_v3, %v3030_v16 }
 0x2ec   :  { %v2491_v27 = vmul.f32 -1.442695, %v394_v0 }
 0x2ed   :  { %2590 = vtanh.f32 %v393_v2  ;;  %v2492_v21 = vmul.f32 -1.442695, %v395_v4  ;;  %v2490_v29 = vmul.f32 -1.442695, %v393_v2  ;;  %v2493_v44 = vmul.f32 -1.442695, %v396_v9 }
 0x2ee   :  { %v320_v5 = vpop.f32.mrf.mxu2  ;;  %2592 = vtanh.f32 %v395_v4 }
 0x2ef   :  { %v346_v12 = vadd.f32 %v343_v6, %v320_v5  ;;  %2594 = vtanh.f32 %v396_v9 }
 0x2f1   :  { %v2589_v8 = vpop.eup %2588  ;;  %v347_v15 = vadd.f32 %v3179_v11, %v346_v12 }
 0x2f2   :  { %499 = vrot.lane.b32.xlu0 %v2589_v8, %s2949_s22 }
 0x2f3   :  { %v2591_v14 = vpop.eup %2590  ;;  %2596 = vtanh.f32 %v347_v15  ;;  %v2489_v22 = vmul.f32 -1.442695, %v347_v15 }
 0x2f4   :  { %497 = vrot.lane.b32.xlu1 %v2591_v14, %s2949_s22  ;;  %v2593_v17 = vpop.eup %2592  ;;  %2598 = vpow2.f32 %v2492_v21 }
 0x2f5   :  { %501 = vrot.lane.b32.xlu2 %v2593_v17, %s2949_s22  ;;  %v2595_v18 = vpop.eup %2594  ;;  %2600 = vpow2.f32 %v2489_v22 }
 0x2f9   :  { %v2597_v19 = vpop.eup %2596 }
 0x2fa   :  { %v2599_v23 = vpop.eup %2598 }
 0x2fb   :  { %v411_v25 = vadd.f32 1.0, %v2599_v23  ;;  %v2601_v26 = vpop.eup %2600 }
 0x2fc   :  { %503 = vrot.lane.b32.xlu1 %v2595_v18, %s2949_s22  ;;  %v351_v30 = vadd.f32 1.0, %v2601_v26 }
 0x2fd   :  { %370 = vrot.lane.b32.xlu2 %v2597_v19, %s2949_s22  ;;  %2602 = vrcp.f32 %v411_v25  ;;  %v454_v56 = vand.u32 2147483648, %v411_v25  ;;  %vm448_vm6 = vweird.f32 %v411_v25  ;;  %v452_v57 = vand.u32 2147483647, %v411_v25 }
 0x2fe   :  { %2604 = vpow2.f32 %v2491_v27  ;;  %v363_v9 = vand.u32 2147483648, %v351_v30  ;;  %vm357_vm10 = vweird.f32 %v351_v30  ;;  %v361_v12 = vand.u32 2147483647, %v351_v30 }
 0x2ff   :  { %2606 = vpow2.f32 %v2490_v29  ;;  %v455_v1 = vor.u32 1.1754944e-38, %v454_v56  ;;  %vm453_vm8 = vcmp.eq.f32.partialorder %v452_v57, 8.507059e+37 }
 0x300   :  { %2608 = vrcp.f32 %v351_v30  ;;  %v364_v19 = vor.u32 1.1754944e-38, %v363_v9  ;;  %vm362_vm12 = vcmp.eq.f32.partialorder %v361_v12, 8.507059e+37 }
 0x301   :  { %2610 = vpow2.f32 %v2493_v44 }
 0x303   :  { %v2603_v31 = vpop.eup %2602 }
 0x304   :  { %v444_v33 = vmul.f32 %v2603_v31, %v411_v25  ;;  %v2605_v43 = vpop.eup %2604  ;;  %vm449_vm5 = vweird.f32 %v2603_v31 }
 0x305   :  { %v2607_v45 = vpop.eup %2606  ;;  %v3187_v49 = vadd.f32 1.0, %v2605_v43  ;;  %vm450_vm7 = vmor %vm448_vm6, %vm449_vm5 }
 0x306   :  { %v445_v47 = vsub.f32 1.0, %v444_v33  ;;  %v2609_v48 = vpop.eup %2608  ;;  %v3189_v50 = vadd.f32 1.0, %v2607_v45 }
 0x307   :  { %v353_v52 = vmul.f32 %v2609_v48, %v351_v30  ;;  %2612 = vrcp.f32 %v3187_v49  ;;  %v2611_v53 = vpop.eup %2610  ;;  %vm358_vm9 = vweird.f32 %v2609_v48  ;;  %vm433_vm14 = vweird.f32 %v3187_v49 }
 0x308   :  { %v446_v51 = vmul.f32 %v2603_v31, %v445_v47  ;;  %2614 = vrcp.f32 %v3189_v50  ;;  %v3193_v61 = vadd.f32 1.0, %v2611_v53  ;;  %vm359_vm11 = vmor %vm357_vm10, %vm358_vm9  ;;  %v439_v30 = vand.u32 2147483648, %v3187_v49 }
 0x309   :  { %v354_v55 = vsub.f32 1.0, %v353_v52  ;;  %v424_v44 = vand.u32 2147483648, %v3189_v50  ;;  %vm418_vm5 = vweird.f32 %v3189_v50  ;;  %v422_v47 = vand.u32 2147483647, %v3189_v50 }
 0x30a   :  { %v447_v54 = vadd.f32 %v2603_v31, %v446_v51  ;;  %2616 = vrcp.f32 %v3193_v61  ;;  %vm463_vm10 = vweird.f32 %v3193_v61 }
 0x30b   :  { %v355_v63 = vmul.f32 %v2609_v48, %v354_v55  ;;  %v425_v55 = vor.u32 1.1754944e-38, %v424_v44 }
 0x30c   :  { %v451_v62 = vsel %vm450_vm7, %v2603_v31, %v447_v54  ;;  %v437_v31 = vand.u32 2147483647, %v3187_v49 }
 0x30d   :  { %v2613_v60 = vpop.eup %2612  ;;  %v3197_v4 = vsel %vm453_vm8, %v455_v1, %v451_v62  ;;  %v356_v6 = vadd.f32 %v2609_v48, %v355_v63  ;;  %vm423_vm8 = vcmp.eq.f32.partialorder %v422_v47, 8.507059e+37  ;;  %v469_v63 = vand.u32 2147483648, %v3193_v61 }
 0x30e   :  { %v2615_v0 = vpop.eup %2614  ;;  %v429_v2 = vmul.f32 %v2613_v60, %v3187_v49  ;;  %vm434_vm13 = vweird.f32 %v2613_v60  ;;  %vm438_vm7 = vcmp.eq.f32.partialorder %v437_v31, 8.507059e+37 }
 0x30f   :  { %v414_v8 = vmul.f32 %v2615_v0, %v3189_v50  ;;  %v360_v15 = vsel %vm359_vm11, %v2609_v48, %v356_v6  ;;  %vm419_vm15 = vweird.f32 %v2615_v0  ;;  %vm435_vm0 = vmor %vm433_vm14, %vm434_vm13  ;;  %v440_v48 = vor.u32 1.1754944e-38, %v439_v30 }
 0x310   :  { %v430_v14 = vsub.f32 1.0, %v429_v2  ;;  %v2617_v18 = vpop.eup %2616  ;;  %v3202_v22 = vsel %vm362_vm12, %v364_v19, %v360_v15  ;;  %vm420_vm6 = vmor %vm418_vm5, %vm419_vm15  ;;  %v467_v50 = vand.u32 2147483647, %v3193_v61  ;;  %v470_v1 = vor.u32 1.1754944e-38, %v469_v63 }
 0x311   :  { %v415_v17 = vsub.f32 1.0, %v414_v8  ;;  %v459_v27 = vmul.f32 %v2617_v18, %v3193_v61  ;;  %vm464_vm9 = vweird.f32 %v2617_v18  ;;  %v482_v6 = vrot.slane %v3053_v20, 7 }
 0x312   :  { %v431_v21 = vmul.f32 %v2613_v60, %v430_v14  ;;  %vm465_vm11 = vmor %vm463_vm10, %vm464_vm9  ;;  %vm468_vm12 = vcmp.eq.f32.partialorder %v467_v50, 8.507059e+37  ;;  %v483_v14 = vrot.slane %v3057_v24, 7  ;;  %v368_v20 = vmul.f32 0.0, %v3202_v22 }
 0x313   :  { %v416_v26 = vmul.f32 %v2615_v0, %v415_v17  ;;  %v460_v43 = vsub.f32 1.0, %v459_v27  ;;  %v484_v30 = vrot.slane %v3067_v32, 7 }
 0x314   :  { %v432_v29 = vadd.f32 %v2613_v60, %v431_v21  ;;  %v491_v61 = vmul.f32 %v483_v14, %v3197_v4 }
 0x315   :  { %v417_v33 = vadd.f32 %v2615_v0, %v416_v26  ;;  %v461_v52 = vmul.f32 %v2617_v18, %v460_v43 }
 0x316   :  { %v436_v45 = vsel %vm435_vm0, %v2613_v60, %v432_v29 }
 0x317   :  { %v421_v51 = vsel %vm420_vm6, %v2615_v0, %v417_v33  ;;  %v441_v54 = vsel %vm438_vm7, %v440_v48, %v436_v45  ;;  %v462_v60 = vadd.f32 %v2617_v18, %v461_v52 }
 0x318   :  { %v426_v57 = vsel %vm423_vm8, %v425_v55, %v421_v51  ;;  %v490_v8 = vmul.f32 %v482_v6, %v441_v54 }
 0x319   :  { %v466_v0 = vsel %vm465_vm11, %v2617_v18, %v462_v60 }
 0x31a   :  { %v471_v2 = vsel %vm468_vm12, %v470_v1, %v466_v0 }
 0x31b   :  { %v492_v31 = vmul.f32 %v484_v30, %v471_v2 }
 0x34f   :  { %v502_v3 = vpop.permute.xlu2 %501 }
 0x350   :  { %v511_v5 = vmul.f32 %v502_v3, %v3197_v4 }
 0x352   :  { %521 = vrot.lane.b32.xlu1 %v511_v5, %s2950_s0 }
 0x357   :  { %v371_v23 = vpop.permute.xlu2 %370 }
 0x358   :  { %v373_v25 = vmul.f32 %v371_v23, %v3202_v22 }
 0x35a   :  { %375 = vrot.lane.b32.xlu1 %v373_v25, %s2950_s0  ;;  %v481_v25 = vrot.slane %v3062_v28, 7 }
 0x35c   :  { %v489_v26 = vmul.f32 %v481_v25, %v426_v57 }
 0x364   :  { %v500_v53 = vpop.permute.xlu0 %499 }
 0x365   :  { %v510_v49 = vmul.f32 %v500_v53, %v441_v54 }
 0x366   :  { %v498_v56 = vpop.permute.xlu1 %497 }
 0x367   :  { %v509_v62 = vmul.f32 %v498_v56, %v426_v57  ;;  %519 = vrot.lane.b32.xlu2 %v510_v49, %s2950_s0 }
 0x369   :  { %517 = vrot.lane.b32.xlu0 %v509_v62, %s2950_s0 }
 0x36e   :  { %v504_v3 = vpop.permute.xlu1 %503 }
 0x36f   :  { %v512_v5 = vmul.f32 %v504_v3, %v471_v2 }
 0x371   :  { %523 = vrot.lane.b32.xlu0 %v512_v5, %s2950_s0 }
 0x3c1   :  { %v520_v9 = vpop.permute.xlu2 %519 }
 0x3c2   :  { %v3220_v12 = vadd.f32 %v520_v9, %v490_v8 }
 0x3c4   :  { %2618 = vtanh.f32 %v3220_v12  ;;  %v522_v15 = vpop.permute.xlu1 %521 }
 0x3c5   :  { %v3225_v17 = vadd.f32 %v522_v15, %v491_v61 }
 0x3c7   :  { %2620 = vtanh.f32 %v3225_v17 }
 0x3ca   :  { %v2619_v18 = vpop.eup %2618 }
 0x3cb   :  { %543 = vrot.lane.b32.xlu1 %v2619_v18, %s2949_s22 }
 0x3cc   :  { %v376_v19 = vpop.permute.xlu1 %375 }
 0x3cd   :  { %v2621_v21 = vpop.eup %2620  ;;  %v3230_v23 = vadd.f32 %v376_v19, %v368_v20 }
 0x3ce   :  { %545 = vrot.lane.b32.xlu0 %v2621_v21, %s2949_s22 }
 0x3cf   :  { %2622 = vtanh.f32 %v3230_v23 }
 0x3d5   :  { %v2623_v24 = vpop.eup %2622 }
 0x3d6   :  { %381 = vrot.lane.b32.xlu0 %v2623_v24, %s2949_s22 }
 0x3db   :  { %v518_v27 = vpop.permute.xlu0 %517 }
 0x3dc   :  { %v3236_v29 = vadd.f32 %v518_v27, %v489_v26 }
 0x3de   :  { %2624 = vtanh.f32 %v3236_v29 }
 0x3e3   :  { %v524_v33 = vpop.permute.xlu0 %523 }
 0x3e4   :  { %v2625_v43 = vpop.eup %2624  ;;  %v3240_v44 = vadd.f32 %v524_v33, %v492_v31 }
 0x3e5   :  { %541 = vrot.lane.b32.xlu2 %v2625_v43, %s2949_s22 }
 0x3e6   :  { %2626 = vtanh.f32 %v3240_v44 }
 0x3ec   :  { %v2627_v28 = vpop.eup %2626 }
 0x3ed   :  { %547 = vrot.lane.b32.xlu2 %v2627_v28, %s2949_s22 }
 0x43d   :  { %v544_v48 = vpop.permute.xlu1 %543 }
 0x43e   :  { %v554_v32 = vmul.f32 %v544_v48, %v441_v54 }
 0x43f   :  { %v542_v45 = vpop.permute.xlu2 %541 }
 0x440   :  { %v553_v47 = vmul.f32 %v542_v45, %v426_v57  ;;  %v546_v51 = vpop.permute.xlu0 %545 }
 0x441   :  { %v555_v52 = vmul.f32 %v546_v51, %v3197_v4 }
 0x442   :  { %v561_v53 = vrot.slane %v553_v47, 1 }
 0x443   :  { %v563_v55 = vrot.slane %v555_v52, 7 }
 0x444   :  { %v562_v56 = vsel %vm270_vm1, %v554_v32, %v561_v53 }
 0x445   :  { %v564_v50 = vsel %vm273_vm2, %v563_v55, %v562_v56 }
 0x447   :  { %v548_v49 = vpop.permute.xlu2 %547 }
 0x448   :  { %v556_v62 = vmul.f32 %v548_v49, %v471_v2  ;;  %v382_v63 = vpop.permute.xlu0 %381 }
 0x449   :  { %v384_v0 = vmul.f32 %v382_v63, %v3202_v22 }
 0x44a   :  { %v565_v60 = vrot.slane %v556_v62, 6 }
 0x44b   :  { %612 = vrot.lane.b32.xlu2 %v384_v0, %s2950_s0 }
 0x44c   :  { %v566_v1 = vsel %vm276_vm3, %v565_v60, %v564_v50 }
 0x44d   :  { %567 = vrot.lane.b32.xlu1 %v566_v1, %s2950_s0 }
 0x4a5   :  { %v613_v4 = vpop.permute.xlu2 %612 }
 0x4a6   :  { %2496 = vmatmul.msk.f32.vlgmr.msrb.gmra.mxu3 %vm280_vm4, %v613_v4 }
 0x4a7   :  { %1208 = vmatpush.msrb.mxu3 %v3081_v36 }
 0x4a9   :  { %1209 = vmatpush.msrb.mxu3 %v3095_v39 }
 0x4ab   :  { %1210 = vmatpush.msrb.mxu3 %v3111_v42 }
 0x4ad   :  { %1211 = vmatpush.msrb.mxu3 %v3136_v59 }
 0x4bf   :  { %v568_v54 = vpop.permute.xlu1 %567 }
 0x4c0   :  { %2494 = vmatmul.msk.f32.vlgmr.msrb.gmra.mxu1 %vm280_vm4, %v568_v54  ;;  %2495 = vmatmul.msk.f32.vlgmr.msrb.gmra.mxu2 %vm280_vm4, %v568_v54 }
 0x4c1   :  { %1163 = vmatpush.msrb.mxu1 %v3074_v34  ;;  %1183 = vmatpush.msrb.mxu2 %v3079_v35 }
 0x4c3   :  { %1164 = vmatpush.msrb.mxu1 %v3088_v37  ;;  %1184 = vmatpush.msrb.mxu2 %v3093_v38 }
 0x4c5   :  { %1165 = vmatpush.msrb.mxu1 %v3101_v40  ;;  %1185 = vmatpush.msrb.mxu2 %v3106_v41 }
 0x4c7   :  { %1166 = vmatpush.msrb.mxu1 %v3129_v58  ;;  %1186 = vmatpush.msrb.mxu2 %v3134_v46 }
 0x529   :  { %v633_v14 = vpop.f32.mrf.mxu3 }
 0x53d   :  { %v588_v22 = vpop.f32.mrf.mxu1 }
 0x53e   :  { %v676_v57 = vrot.slane %v588_v22, 6  ;;  %v677_v2 = vrot.slane %v588_v22, 7  ;;  %v678_v3 = vrot.slane %v588_v22, 1  ;;  %v685_v61 = vadd.f32 %v588_v22, %v3026_v13 }
 0x540   :  { %v683_v5 = vadd.f32 %v676_v57, %v3019_v7  ;;  %v684_v6 = vadd.f32 %v677_v2, %v3022_v10  ;;  %v686_v8 = vadd.f32 %v678_v3, %v3030_v16  ;;  %v2500_v45 = vmul.f32 -1.442695, %v685_v61 }
 0x542   :  { %2628 = vtanh.f32 %v683_v5  ;;  %v2501_v26 = vmul.f32 -1.442695, %v686_v8  ;;  %v2498_v31 = vmul.f32 -1.442695, %v683_v5  ;;  %v2499_v43 = vmul.f32 -1.442695, %v684_v6 }
 0x543   :  { %v608_v9 = vpop.f32.mrf.mxu2  ;;  %2630 = vtanh.f32 %v684_v6 }
 0x544   :  { %v636_v15 = vadd.f32 %v633_v14, %v608_v9  ;;  %2632 = vtanh.f32 %v686_v8 }
 0x545   :  { %2634 = vtanh.f32 %v685_v61 }
 0x546   :  { %v637_v20 = vadd.f32 %v3179_v11, %v636_v15 }
 0x548   :  { %v2629_v18 = vpop.eup %2628  ;;  %2636 = vtanh.f32 %v637_v20  ;;  %v2497_v51 = vmul.f32 -1.442695, %v637_v20 }
 0x549   :  { %787 = vrot.lane.b32.xlu0 %v2629_v18, %s2949_s22  ;;  %v2631_v19 = vpop.eup %2630  ;;  %2638 = vpow2.f32 %v2501_v26 }
 0x54a   :  { %v2633_v21 = vpop.eup %2632  ;;  %789 = vrot.lane.b32.xlu1 %v2631_v19, %s2949_s22 }
 0x54b   :  { %793 = vrot.lane.b32.xlu2 %v2633_v21, %s2949_s22  ;;  %v2635_v24 = vpop.eup %2634 }
 0x54e   :  { %v2637_v25 = vpop.eup %2636 }
 0x54f   :  { %v2639_v27 = vpop.eup %2638 }
 0x550   :  { %v702_v30 = vadd.f32 1.0, %v2639_v27 }
 0x551   :  { %791 = vrot.lane.b32.xlu0 %v2635_v24, %s2949_s22 }
 0x552   :  { %660 = vrot.lane.b32.xlu1 %v2637_v25, %s2949_s22  ;;  %2640 = vrcp.f32 %v702_v30  ;;  %v759_v62 = vand.u32 2147483648, %v702_v30  ;;  %vm753_vm14 = vweird.f32 %v702_v30  ;;  %v757_v63 = vand.u32 2147483647, %v702_v30 }
 0x553   :  { %2642 = vpow2.f32 %v2498_v31 }
 0x554   :  { %2644 = vpow2.f32 %v2499_v43  ;;  %v760_v4 = vor.u32 1.1754944e-38, %v759_v62  ;;  %vm758_vm0 = vcmp.eq.f32.partialorder %v757_v63, 8.507059e+37 }
 0x555   :  { %2646 = vpow2.f32 %v2500_v45 }
 0x556   :  { %2648 = vpow2.f32 %v2497_v51 }
 0x558   :  { %v2641_v33 = vpop.eup %2640 }
 0x559   :  { %v749_v28 = vmul.f32 %v2641_v33, %v702_v30  ;;  %v2643_v47 = vpop.eup %2642  ;;  %vm754_vm13 = vweird.f32 %v2641_v33 }
 0x55a   :  { %v699_v52 = vadd.f32 1.0, %v2643_v47  ;;  %v2645_v53 = vpop.eup %2644  ;;  %vm755_vm15 = vmor %vm753_vm14, %vm754_vm13 }
 0x55b   :  { %v750_v48 = vsub.f32 1.0, %v749_v28  ;;  %v700_v55 = vadd.f32 1.0, %v2645_v53  ;;  %v2647_v49 = vpop.eup %2646 }
 0x55c   :  { %2650 = vrcp.f32 %v699_v52  ;;  %v3277_v60 = vadd.f32 1.0, %v2647_v49  ;;  %v2649_v50 = vpop.eup %2648  ;;  %v714_v25 = vand.u32 2147483648, %v699_v52  ;;  %vm708_vm6 = vweird.f32 %v699_v52 }
 0x55d   :  { %v751_v32 = vmul.f32 %v2641_v33, %v750_v48  ;;  %2652 = vrcp.f32 %v700_v55  ;;  %v3280_v54 = vadd.f32 1.0, %v2649_v50  ;;  %v712_v26 = vand.u32 2147483647, %v699_v52 }
 0x55e   :  { %2654 = vrcp.f32 %v3277_v60  ;;  %v729_v43 = vand.u32 2147483648, %v700_v55  ;;  %v715_v28 = vor.u32 1.1754944e-38, %v714_v25  ;;  %vm723_vm9 = vweird.f32 %v700_v55 }
 0x55f   :  { %v752_v56 = vadd.f32 %v2641_v33, %v751_v32  ;;  %2656 = vrcp.f32 %v3280_v54  ;;  %v727_v45 = vand.u32 2147483647, %v700_v55  ;;  %vm713_vm10 = vcmp.eq.f32.partialorder %v712_v26, 8.507059e+37 }
 0x560   :  { %v744_v62 = vand.u32 2147483648, %v3277_v60  ;;  %vm738_vm14 = vweird.f32 %v3277_v60  ;;  %v773_v25 = vrot.slane %v3225_v17, 7  ;;  %v772_v17 = vrot.slane %v3220_v12, 7 }
 0x561   :  { %v756_v1 = vsel %vm755_vm15, %v2641_v33, %v752_v56  ;;  %v730_v56 = vor.u32 1.1754944e-38, %v729_v43  ;;  %vm728_vm13 = vcmp.eq.f32.partialorder %v727_v45, 8.507059e+37 }
 0x562   :  { %v2651_v0 = vpop.eup %2650  ;;  %v3282_v22 = vsel %vm758_vm0, %v760_v4, %v756_v1 }
 0x563   :  { %v704_v2 = vmul.f32 %v2651_v0, %v699_v52  ;;  %v2653_v3 = vpop.eup %2652  ;;  %vm709_vm5 = vweird.f32 %v2651_v0 }
 0x564   :  { %v719_v6 = vmul.f32 %v2653_v3, %v700_v55  ;;  %v2655_v9 = vpop.eup %2654  ;;  %vm724_vm7 = vweird.f32 %v2653_v3  ;;  %vm710_vm8 = vmor %vm708_vm6, %vm709_vm5  ;;  %v742_v55 = vand.u32 2147483647, %v3277_v60  ;;  %vm647_vm6 = vweird.f32 %v3280_v54 }
 0x565   :  { %v705_v8 = vsub.f32 1.0, %v704_v2  ;;  %v734_v15 = vmul.f32 %v2655_v9, %v3277_v60  ;;  %v2657_v18 = vpop.eup %2656  ;;  %vm3289_vm11 = vmor %vm723_vm9, %vm724_vm7  ;;  %vm739_vm12 = vweird.f32 %v2655_v9  ;;  %v653_v2 = vand.u32 2147483648, %v3280_v54 }
 0x566   :  { %v720_v14 = vsub.f32 1.0, %v719_v6  ;;  %v643_v24 = vmul.f32 %v2657_v18, %v3280_v54  ;;  %vm740_vm15 = vmor %vm738_vm14, %vm739_vm12  ;;  %vm648_vm0 = vweird.f32 %v2657_v18  ;;  %vm743_vm5 = vcmp.eq.f32.partialorder %v742_v55, 8.507059e+37 }
 0x567   :  { %v706_v61 = vmul.f32 %v2651_v0, %v705_v8  ;;  %v735_v21 = vsub.f32 1.0, %v734_v15  ;;  %vm649_vm7 = vmor %vm647_vm6, %vm648_vm0 }
 0x568   :  { %v721_v20 = vmul.f32 %v2653_v3, %v720_v14  ;;  %v644_v33 = vsub.f32 1.0, %v643_v24  ;;  %v654_v14 = vor.u32 1.1754944e-38, %v653_v2  ;;  %v774_v24 = vrot.slane %v3240_v44, 7 }
 0x569   :  { %v707_v19 = vadd.f32 %v2651_v0, %v706_v61  ;;  %v736_v31 = vmul.f32 %v2655_v9, %v735_v21 }
 0x56a   :  { %v722_v27 = vadd.f32 %v2653_v3, %v721_v20  ;;  %v645_v49 = vmul.f32 %v2657_v18, %v644_v33  ;;  %v771_v20 = vrot.slane %v3236_v29, 7 }
 0x56b   :  { %v711_v30 = vsel %vm710_vm8, %v2651_v0, %v707_v19  ;;  %v737_v32 = vadd.f32 %v2655_v9, %v736_v31 }
 0x56c   :  { %v3293_v51 = vsel %vm713_vm10, %v715_v28, %v711_v30  ;;  %v726_v52 = vsel %vm3289_vm11, %v2653_v3, %v722_v27  ;;  %v646_v4 = vadd.f32 %v2657_v18, %v645_v49  ;;  %v651_v3 = vand.u32 2147483647, %v3280_v54 }
 0x56d   :  { %v731_v50 = vsel %vm728_vm13, %v730_v56, %v726_v52  ;;  %v741_v1 = vsel %vm740_vm15, %v2655_v9, %v737_v32  ;;  %v779_v19 = vmul.f32 %v771_v20, %v3293_v51 }
 0x56e   :  { %v650_v8 = vsel %vm649_vm7, %v2657_v18, %v646_v4  ;;  %vm652_vm8 = vcmp.eq.f32.partialorder %v651_v3, 8.507059e+37  ;;  %v782_v18 = vmul.f32 %v774_v24, %v3282_v22  ;;  %v780_v28 = vmul.f32 %v772_v17, %v731_v50 }
 0x56f   :  { %v655_v61 = vsel %vm652_vm8, %v654_v14, %v650_v8 }
 0x5a5   :  { %v794_v57 = vpop.permute.xlu2 %793 }
 0x5a6   :  { %v802_v5 = vmul.f32 %v794_v57, %v3282_v22  ;;  %v745_v57 = vor.u32 1.1754944e-38, %v744_v62 }
 0x5a8   :  { %813 = vrot.lane.b32.xlu1 %v802_v5, %s2950_s0  ;;  %v746_v5 = vsel %vm743_vm5, %v745_v57, %v741_v1 }
 0x5a9   :  { %v781_v30 = vmul.f32 %v773_v25, %v746_v5 }
 0x5bb   :  { %v788_v48 = vpop.permute.xlu0 %787 }
 0x5bc   :  { %v799_v53 = vmul.f32 %v788_v48, %v3293_v51  ;;  %v790_v63 = vpop.permute.xlu1 %789  ;;  %v658_v48 = vmul.f32 %v655_v61, %v3230_v23 }
 0x5bd   :  { %v800_v0 = vmul.f32 %v790_v63, %v731_v50 }
 0x5be   :  { %807 = vrot.lane.b32.xlu2 %v799_v53, %s2950_s0 }
 0x5bf   :  { %809 = vrot.lane.b32.xlu0 %v800_v0, %s2950_s0 }
 0x5c3   :  { %v792_v6 = vpop.permute.xlu0 %791 }
 0x5c4   :  { %v801_v60 = vmul.f32 %v792_v6, %v746_v5  ;;  %v661_v9 = vpop.permute.xlu1 %660 }
 0x5c5   :  { %v663_v15 = vmul.f32 %v661_v9, %v655_v61 }
 0x5c6   :  { %811 = vrot.lane.b32.xlu2 %v801_v60, %s2950_s0 }
 0x5c7   :  { %665 = vrot.lane.b32.xlu0 %v663_v15, %s2950_s0 }
 0x618   :  { %v808_v21 = vpop.permute.xlu2 %807 }
 0x619   :  { %v3310_v54 = vadd.f32 %v808_v21, %v779_v19 }
 0x61a   :  { %v814_v26 = vpop.permute.xlu1 %813 }
 0x61b   :  { %2658 = vtanh.f32 %v3310_v54  ;;  %v3316_v27 = vadd.f32 %v814_v26, %v782_v18 }
 0x61d   :  { %2660 = vtanh.f32 %v3316_v27 }
 0x620   :  { %v812_v29 = vpop.permute.xlu2 %811 }
 0x621   :  { %v2659_v31 = vpop.eup %2658  ;;  %v3319_v33 = vadd.f32 %v812_v29, %v781_v30 }
 0x622   :  { %831 = vrot.lane.b32.xlu1 %v2659_v31, %s2949_s22 }
 0x623   :  { %2662 = vtanh.f32 %v3319_v33  ;;  %v2661_v44 = vpop.eup %2660 }
 0x624   :  { %837 = vrot.lane.b32.xlu0 %v2661_v44, %s2949_s22 }
 0x629   :  { %v2663_v43 = vpop.eup %2662 }
 0x62a   :  { %835 = vrot.lane.b32.xlu1 %v2663_v43, %s2949_s22 }
 0x631   :  { %v810_v45 = vpop.permute.xlu0 %809 }
 0x632   :  { %v3326_v47 = vadd.f32 %v810_v45, %v780_v28 }
 0x634   :  { %2664 = vtanh.f32 %v3326_v47 }
 0x639   :  { %v666_v52 = vpop.permute.xlu0 %665 }
 0x63a   :  { %v2665_v53 = vpop.eup %2664  ;;  %v3330_v32 = vadd.f32 %v666_v52, %v658_v48 }
 0x63b   :  { %833 = vrot.lane.b32.xlu2 %v2665_v53, %s2949_s22 }
 0x63c   :  { %2666 = vtanh.f32 %v3330_v32 }
 0x642   :  { %v2667_v49 = vpop.eup %2666 }
 0x643   :  { %671 = vrot.lane.b32.xlu2 %v2667_v49, %s2949_s22 }
 0x694   :  { %v832_v12 = vpop.permute.xlu1 %831 }
 0x695   :  { %v843_v56 = vmul.f32 %v832_v12, %v3293_v51  ;;  %v834_v62 = vpop.permute.xlu2 %833 }
 0x696   :  { %v838_v55 = vpop.permute.xlu0 %837  ;;  %v844_v63 = vmul.f32 %v834_v62, %v731_v50 }
 0x697   :  { %v846_v0 = vmul.f32 %v838_v55, %v3282_v22  ;;  %v851_v23 = vrot.slane %v843_v56, 2 }
 0x698   :  { %v852_v1 = vrot.slane %v844_v63, 1 }
 0x699   :  { %v855_v2 = vrot.slane %v846_v0, 7 }
 0x69a   :  { %v853_v3 = vsel %vm270_vm1, %v852_v1, %v851_v23 }
 0x69c   :  { %v836_v4 = vpop.permute.xlu1 %835 }
 0x69d   :  { %v845_v57 = vmul.f32 %v836_v4, %v746_v5  ;;  %v672_v60 = vpop.permute.xlu2 %671 }
 0x69e   :  { %v674_v14 = vmul.f32 %v672_v60, %v655_v61 }
 0x69f   :  { %v854_v6 = vsel %vm273_vm2, %v845_v57, %v853_v3 }
 0x6a0   :  { %v856_v8 = vsel %vm276_vm3, %v855_v2, %v854_v6  ;;  %902 = vrot.lane.b32.xlu1 %v674_v14, %s2950_s0 }
 0x6a1   :  { %857 = vrot.lane.b32.xlu0 %v856_v8, %s2950_s0 }
 0x712   :  { %v903_v22 = vpop.permute.xlu1 %902 }
 0x713   :  { %v858_v51 = vpop.permute.xlu0 %857  ;;  %2504 = vmatmul.msk.f32.vlgmr.msra.gmra.mxu3 %vm280_vm4, %v903_v22 }
 0x714   :  { %2502 = vmatmul.msk.f32.vlgmr.msra.gmra.mxu1 %vm280_vm4, %v858_v51  ;;  %2503 = vmatmul.msk.f32.vlgmr.msra.gmra.mxu2 %vm280_vm4, %v858_v51 }
 0x715   :  { %1500 = vmatpush.msra.mxu2 %v3081_v36  ;;  %1475 = vmatpush.msra.mxu1 %v3079_v35 }
 0x716   :  { %1747 = vmatpush.msra.mxu3 %v3074_v34 }
 0x717   :  { %1501 = vmatpush.msra.mxu2 %v3095_v39  ;;  %1476 = vmatpush.msra.mxu1 %v3093_v38 }
 0x718   :  { %1748 = vmatpush.msra.mxu3 %v3088_v37 }
 0x719   :  { %1502 = vmatpush.msra.mxu2 %v3111_v42  ;;  %1477 = vmatpush.msra.mxu1 %v3106_v41 }
 0x71a   :  { %1749 = vmatpush.msra.mxu3 %v3101_v40 }
 0x71b   :  { %1503 = vmatpush.msra.mxu2 %v3136_v59  ;;  %1478 = vmatpush.msra.mxu1 %v3134_v46 }
 0x71c   :  { %1750 = vmatpush.msra.mxu3 %v3129_v58 }
 0x791   :  { %v878_v35 = vpop.f32.mrf.mxu1 }
 0x792   :  { %v966_v36 = vrot.slane %v878_v35, 5  ;;  %v967_v39 = vrot.slane %v878_v35, 6  ;;  %v968_v38 = vrot.slane %v878_v35, 7  ;;  %v976_v59 = vadd.f32 %v878_v35, %v3030_v16 }
 0x794   :  { %v973_v34 = vadd.f32 %v966_v36, %v3019_v7  ;;  %v974_v42 = vadd.f32 %v967_v39, %v3022_v10  ;;  %v975_v41 = vadd.f32 %v968_v38, %v3026_v13  ;;  %v2509_v19 = vmul.f32 -1.442695, %v976_v59 }
 0x796   :  { %2668 = vtanh.f32 %v973_v34  ;;  %v923_v50 = vpop.f32.mrf.mxu3  ;;  %v2506_v20 = vmul.f32 -1.442695, %v973_v34  ;;  %v2507_v30 = vmul.f32 -1.442695, %v974_v42  ;;  %v2508_v29 = vmul.f32 -1.442695, %v975_v41 }
 0x797   :  { %v898_v37 = vpop.f32.mrf.mxu2  ;;  %2670 = vtanh.f32 %v974_v42 }
 0x798   :  { %v926_v46 = vadd.f32 %v923_v50, %v898_v37  ;;  %2672 = vtanh.f32 %v975_v41 }
 0x799   :  { %2674 = vtanh.f32 %v976_v59 }
 0x79a   :  { %v927_v58 = vadd.f32 %v3179_v11, %v926_v46 }
 0x79c   :  { %v2669_v40 = vpop.eup %2668  ;;  %2676 = vtanh.f32 %v927_v58  ;;  %v2505_v28 = vmul.f32 -1.442695, %v927_v58 }
 0x79d   :  { %1077 = vrot.lane.b32.xlu2 %v2669_v40, %s2949_s22  ;;  %v2671_v5 = vpop.eup %2670  ;;  %2678 = vpow2.f32 %v2506_v20 }
 0x79e   :  { %v2673_v9 = vpop.eup %2672  ;;  %1079 = vrot.lane.b32.xlu0 %v2671_v5, %s2949_s22  ;;  %2680 = vpow2.f32 %v2509_v19 }
 0x79f   :  { %1081 = vrot.lane.b32.xlu1 %v2673_v9, %s2949_s22  ;;  %v2675_v61 = vpop.eup %2674 }
 0x7a2   :  { %v2677_v15 = vpop.eup %2676 }
 0x7a3   :  { %v2679_v21 = vpop.eup %2678 }
 0x7a4   :  { %v989_v24 = vadd.f32 1.0, %v2679_v21  ;;  %v2681_v11 = vpop.eup %2680 }
 0x7a5   :  { %1083 = vrot.lane.b32.xlu2 %v2675_v61, %s2949_s22  ;;  %v992_v18 = vadd.f32 1.0, %v2681_v11 }
 0x7a6   :  { %950 = vrot.lane.b32.xlu0 %v2677_v15, %s2949_s22  ;;  %2682 = vrcp.f32 %v989_v24  ;;  %v1004_v49 = vand.u32 2147483648, %v989_v24  ;;  %vm998_vm10 = vweird.f32 %v989_v24  ;;  %v1002_v12 = vand.u32 2147483647, %v989_v24 }
 0x7a7   :  { %2684 = vrcp.f32 %v992_v18  ;;  %v1049_v3 = vand.u32 2147483648, %v992_v18  ;;  %vm1043_vm14 = vweird.f32 %v992_v18  ;;  %v1047_v6 = vand.u32 2147483647, %v992_v18 }
 0x7a8   :  { %2686 = vpow2.f32 %v2507_v30  ;;  %v1005_v0 = vor.u32 1.1754944e-38, %v1004_v49  ;;  %vm1003_vm12 = vcmp.eq.f32.partialorder %v1002_v12, 8.507059e+37  ;;  %v1061_v12 = vrot.slane %v3310_v54, 7 }
 0x7a9   :  { %2688 = vpow2.f32 %v2508_v29  ;;  %v1050_v51 = vor.u32 1.1754944e-38, %v1049_v3  ;;  %vm1048_vm0 = vcmp.eq.f32.partialorder %v1047_v6, 8.507059e+37 }
 0x7aa   :  { %2690 = vpow2.f32 %v2505_v28 }
 0x7ac   :  { %v2683_v25 = vpop.eup %2682 }
 0x7ad   :  { %v994_v26 = vmul.f32 %v2683_v25, %v989_v24  ;;  %v2685_v44 = vpop.eup %2684  ;;  %vm999_vm9 = vweird.f32 %v2683_v25 }
 0x7ae   :  { %v1039_v17 = vmul.f32 %v2685_v44, %v992_v18  ;;  %v2687_v45 = vpop.eup %2686  ;;  %vm1000_vm11 = vmor %vm998_vm10, %vm999_vm9  ;;  %vm1044_vm13 = vweird.f32 %v2685_v44 }
 0x7af   :  { %v995_v31 = vsub.f32 1.0, %v994_v26  ;;  %v2689_v53 = vpop.eup %2688  ;;  %v990_v56 = vadd.f32 1.0, %v2687_v45  ;;  %vm1045_vm15 = vmor %vm1043_vm14, %vm1044_vm13 }
 0x7b0   :  { %v1040_v52 = vsub.f32 1.0, %v1039_v17  ;;  %v991_v62 = vadd.f32 1.0, %v2689_v53  ;;  %v2691_v4 = vpop.eup %2690 }
 0x7b1   :  { %v996_v43 = vmul.f32 %v2683_v25, %v995_v31  ;;  %2692 = vrcp.f32 %v990_v56  ;;  %v931_v60 = vadd.f32 1.0, %v2691_v4  ;;  %v1019_v5 = vand.u32 2147483648, %v990_v56 }
 0x7b2   :  { %v1041_v63 = vmul.f32 %v2685_v44, %v1040_v52  ;;  %2694 = vrcp.f32 %v991_v62  ;;  %vm1013_vm7 = vweird.f32 %v990_v56  ;;  %v1017_v61 = vand.u32 2147483647, %v990_v56 }
 0x7b3   :  { %v997_v48 = vadd.f32 %v2683_v25, %v996_v43  ;;  %2696 = vrcp.f32 %v931_v60  ;;  %v1034_v15 = vand.u32 2147483648, %v991_v62  ;;  %vm1028_vm9 = vweird.f32 %v991_v62 }
 0x7b4   :  { %v1042_v2 = vadd.f32 %v2685_v44, %v1041_v63  ;;  %v1032_v20 = vand.u32 2147483647, %v991_v62  ;;  %v1020_v24 = vor.u32 1.1754944e-38, %v1019_v5  ;;  %v943_v17 = vand.u32 2147483648, %v931_v60 }
 0x7b5   :  { %v1001_v55 = vsel %vm1000_vm11, %v2683_v25, %v997_v48  ;;  %vm1018_vm11 = vcmp.eq.f32.partialorder %v1017_v61, 8.507059e+37  ;;  %v1035_v18 = vor.u32 1.1754944e-38, %v1034_v15  ;;  %vm937_vm14 = vweird.f32 %v931_v60 }
 0x7b6   :  { %v3367_v23 = vsel %vm1003_vm12, %v1005_v0, %v1001_v55  ;;  %v1046_v8 = vsel %vm1045_vm15, %v2685_v44, %v1042_v2  ;;  %vm1033_vm12 = vcmp.eq.f32.partialorder %v1032_v20, 8.507059e+37  ;;  %v941_v28 = vand.u32 2147483647, %v931_v60 }
 0x7b7   :  { %v2693_v14 = vpop.eup %2692  ;;  %v3371_v35 = vsel %vm1048_vm0, %v1050_v51, %v1046_v8  ;;  %v944_v48 = vor.u32 1.1754944e-38, %v943_v17  ;;  %v1062_v55 = vrot.slane %v3326_v47, 7  ;;  %v1064_v4 = vrot.slane %v3316_v27, 7  ;;  %v3460_v17 = vld [vmem:[%s3791_s3 + $0x8] sm:$0xff] }
 0x7b8   :  { %v2695_v22 = vpop.eup %2694  ;;  %v1009_v38 = vmul.f32 %v2693_v14, %v990_v56  ;;  %vm1014_vm5 = vweird.f32 %v2693_v14  ;;  %vm942_vm0 = vcmp.eq.f32.partialorder %v941_v28, 8.507059e+37  ;;  %v1069_v56 = vmul.f32 %v1061_v12, %v3367_v23 }
 0x7b9   :  { %v1024_v34 = vmul.f32 %v2695_v22, %v991_v62  ;;  %v2697_v41 = vpop.eup %2696  ;;  %vm1029_vm6 = vweird.f32 %v2695_v22  ;;  %vm1015_vm8 = vmor %vm1013_vm7, %vm1014_vm5  ;;  %v1072_v2 = vmul.f32 %v1064_v4, %v3371_v35 }
 0x7ba   :  { %v1010_v42 = vsub.f32 1.0, %v1009_v38  ;;  %v933_v59 = vmul.f32 %v2697_v41, %v931_v60  ;;  %vm1030_vm10 = vmor %vm1028_vm9, %vm1029_vm6  ;;  %vm938_vm13 = vweird.f32 %v2697_v41 }
 0x7bb   :  { %v1025_v37 = vsub.f32 1.0, %v1024_v34  ;;  %vm939_vm15 = vmor %vm937_vm14, %vm938_vm13 }
 0x7bc   :  { %v1011_v50 = vmul.f32 %v2693_v14, %v1010_v42  ;;  %v934_v58 = vsub.f32 1.0, %v933_v59 }
 0x7bd   :  { %v1026_v46 = vmul.f32 %v2695_v22, %v1025_v37 }
 0x7be   :  { %v1012_v40 = vadd.f32 %v2693_v14, %v1011_v50  ;;  %v935_v21 = vmul.f32 %v2697_v41, %v934_v58 }
 0x7bf   :  { %v1027_v9 = vadd.f32 %v2695_v22, %v1026_v46 }
 0x7c0   :  { %v1016_v19 = vsel %vm1015_vm8, %v2693_v14, %v1012_v40  ;;  %v936_v44 = vadd.f32 %v2697_v41, %v935_v21  ;;  %v3414_v21 = vld [vmem:[#allocation2 + $0x18] sm:$0xff] }
 0x7c1   :  { %v1031_v11 = vsel %vm1030_vm10, %v2695_v22, %v1027_v9  ;;  %v1021_v26 = vsel %vm1018_vm11, %v1020_v24, %v1016_v19  ;;  %v1063_v22 = vrot.slane %v3319_v33, 7  ;;  %v3420_v24 = vld [vmem:[#allocation2 + $0x10] sm:$0xff] }
 0x7c2   :  { %v1036_v29 = vsel %vm1033_vm12, %v1035_v18, %v1031_v11  ;;  %v940_v45 = vsel %vm939_vm15, %v2697_v41, %v936_v44  ;;  %v1070_v0 = vmul.f32 %v1062_v55, %v1021_v26  ;;  %v2883_v11 = vld [vmem:[%s3791_s3 + $0x20] sm:$0xff]  ;;  %v3426_v18 = vld [vmem:[#allocation2 + $0x8] sm:$0xff] }
 0x7c3   :  { %v945_v53 = vsel %vm942_vm0, %v944_v48, %v940_v45  ;;  %v3448_v44 = vld [vmem:[%s3791_s3 + $0x28] sm:$0xff] }
 0x7c4   :  { %v948_v47 = vmul.f32 %v945_v53, %v3330_v32 }
 0x7f7   :  { %v1078_v1 = vpop.permute.xlu2 %1077 }
 0x7f8   :  { %v1089_v57 = vmul.f32 %v1078_v1, %v3367_v23 }
 0x7fa   :  { %1097 = vrot.lane.b32.xlu1 %v1089_v57, %s2950_s0 }
 0x7ff   :  { %v1084_v36 = vpop.permute.xlu2 %1083 }
 0x800   :  { %v1092_v39 = vmul.f32 %v1084_v36, %v3371_v35  ;;  %v1071_v36 = vmul.f32 %v1063_v22, %v1036_v29 }
 0x802   :  { %1103 = vrot.lane.b32.xlu1 %v1092_v39, %s2950_s0 }
 0x810   :  { %v1080_v25 = vpop.permute.xlu0 %1079 }
 0x811   :  { %v1090_v30 = vmul.f32 %v1080_v25, %v1021_v26  ;;  %v1082_v31 = vpop.permute.xlu1 %1081  ;;  %v2885_v25 = vld [vmem:[%s3791_s3 + $0x10] sm:$0xff] }
 0x812   :  { %v1091_v43 = vmul.f32 %v1082_v31, %v1036_v29  ;;  %v3442_v31 = vld [vmem:[%s3791_s3 + $0x38] sm:$0xff] }
 0x813   :  { %1099 = vrot.lane.b32.xlu2 %v1090_v30, %s2950_s0  ;;  %v2887_v30 = vld [vmem:[%s3791_s3] sm:$0xff] }
 0x814   :  { %1101 = vrot.lane.b32.xlu0 %v1091_v43, %s2950_s0  ;;  %v3454_v43 = vld [vmem:[%s3791_s3 + $0x18] sm:$0xff] }
 0x818   :  { %v951_v52 = vpop.permute.xlu0 %950 }
 0x819   :  { %v953_v49 = vmul.f32 %v951_v52, %v945_v53 }
 0x81b   :  { %955 = vrot.lane.b32.xlu2 %v953_v49, %s2950_s0 }
 0x86c   :  { %v1098_v62 = vpop.permute.xlu1 %1097 }
 0x86d   :  { %v3381_v63 = vadd.f32 %v1098_v62, %v1069_v56  ;;  %v1100_v1 = vpop.permute.xlu2 %1099 }
 0x86e   :  { %v3385_v57 = vadd.f32 %v1100_v1, %v1070_v0 }
 0x86f   :  { %2698 = vtanh.f32 %v3381_v63 }
 0x870   :  { %2700 = vtanh.f32 %v3385_v57 }
 0x874   :  { %v1104_v54 = vpop.permute.xlu1 %1103 }
 0x875   :  { %v2699_v3 = vpop.eup %2698  ;;  %v3389_v6 = vadd.f32 %v1104_v54, %v1072_v2  ;;  %v956_v60 = vpop.permute.xlu2 %955 }
 0x876   :  { %1121 = vrot.lane.b32.xlu0 %v2699_v3, %s2949_s22  ;;  %v2701_v8 = vpop.eup %2700  ;;  %v3394_v14 = vadd.f32 %v956_v60, %v948_v47  ;;  %v3474_v47 = vld [vmem:[%s3793_s5] ss:$0 sm:$0xff] }
 0x877   :  { %2702 = vtanh.f32 %v3389_v6  ;;  %1123 = vrot.lane.b32.xlu1 %v2701_v8, %s2949_s22 }
 0x878   :  { %2704 = vtanh.f32 %v3394_v14 }
 0x87d   :  { %v2703_v27 = vpop.eup %2702 }
 0x87e   :  { %1127 = vrot.lane.b32.xlu0 %v2703_v27, %s2949_s22  ;;  %v2705_v51 = vpop.eup %2704 }
 0x87f   :  { %961 = vrot.lane.b32.xlu1 %v2705_v51, %s2949_s22 }
 0x886   :  { %v1102_v39 = vpop.permute.xlu0 %1101 }
 0x887   :  { %v3401_v38 = vadd.f32 %v1102_v39, %v1071_v36 }
 0x889   :  { %2706 = vtanh.f32 %v3401_v38 }
 0x88f   :  { %v2707_v32 = vpop.eup %2706 }
 0x890   :  { %1125 = vrot.lane.b32.xlu2 %v2707_v32, %s2949_s22 }
 0x8e8   :  { %v1122_v34 = vpop.permute.xlu0 %1121 }
 0x8e9   :  { %v1133_v42 = vmul.f32 %v1122_v34, %v3367_v23  ;;  %v1124_v41 = vpop.permute.xlu1 %1123 }
 0x8ea   :  { %v1134_v50 = vmul.f32 %v1124_v41, %v1021_v26  ;;  %v1126_v59 = vpop.permute.xlu2 %1125  ;;  %v3432_v26 = vld [vmem:[#allocation2] sm:$0xff] }
 0x8eb   :  { %v1141_v37 = vrot.slane %v1133_v42, 3  ;;  %v1135_v46 = vmul.f32 %v1126_v59, %v1036_v29 }
 0x8ec   :  { %v1142_v40 = vrot.slane %v1134_v50, 2 }
 0x8ed   :  { %v1144_v58 = vrot.slane %v1135_v46, 1 }
 0x8ee   :  { %v1143_v5 = vsel %vm270_vm1, %v1142_v40, %v1141_v37 }
 0x8ef   :  { %v1145_v61 = vsel %vm273_vm2, %v1144_v58, %v1143_v5 }
 0x8f0   :  { %v1128_v33 = vpop.permute.xlu0 %1127 }
 0x8f1   :  { %v1136_v9 = vmul.f32 %v1128_v33, %v3371_v35  ;;  %v962_v20 = vpop.permute.xlu1 %961  ;;  %v2881_v35 = vld [vmem:[%s3791_s3 + $0x30] sm:$0xff] }
 0x8f2   :  { %v964_v23 = vmul.f32 %v962_v20, %v945_v53 }
 0x8f3   :  { %v1146_v15 = vsel %vm276_vm3, %v1136_v9, %v1145_v61 }
 0x8f4   :  { %1147 = vrot.lane.b32.xlu2 %v1146_v15, %s2950_s0  ;;  %1192 = vrot.lane.b32.xlu0 %v964_v23, %s2950_s0 }
 0x94e   :  { %v1148_v19 = vpop.permute.xlu2 %1147 }
 0x94f   :  { %2510 = vmatmul.msk.f32.vlgmr.msrb.gmra.mxu1 %vm280_vm4, %v1148_v19  ;;  %2511 = vmatmul.msk.f32.vlgmr.msrb.gmra.mxu2 %vm280_vm4, %v1148_v19 }
 0x950   :  { %1792 = vmatpush.msrb.mxu1 %v3414_v21  ;;  %2039 = vmatpush.msrb.mxu2 %v2881_v35 }
 0x952   :  { %1793 = vmatpush.msrb.mxu1 %v3420_v24  ;;  %2040 = vmatpush.msrb.mxu2 %v2883_v11 }
 0x954   :  { %1794 = vmatpush.msrb.mxu1 %v3426_v18  ;;  %2041 = vmatpush.msrb.mxu2 %v2885_v25 }
 0x956   :  { %1795 = vmatpush.msrb.mxu1 %v3432_v26  ;;  %2042 = vmatpush.msrb.mxu2 %v2887_v30 }
 0x966   :  { %v1193_v29 = vpop.permute.xlu0 %1192 }
 0x967   :  { %2512 = vmatmul.msk.f32.vlgmr.msrb.gmra.mxu3 %vm280_vm4, %v1193_v29 }
 0x968   :  { %2059 = vmatpush.msrb.mxu3 %v3442_v31 }
 0x96a   :  { %2060 = vmatpush.msrb.mxu3 %v3448_v44 }
 0x96c   :  { %2061 = vmatpush.msrb.mxu3 %v3454_v43 }
 0x96e   :  { %2062 = vmatpush.msrb.mxu3 %v3460_v17 }
 0x9cc   :  { %v1168_v28 = vpop.f32.mrf.mxu1 }
 0x9cd   :  { %v1256_v45 = vrot.slane %v1168_v28, 4  ;;  %v1257_v48 = vrot.slane %v1168_v28, 5  ;;  %v1258_v52 = vrot.slane %v1168_v28, 6  ;;  %v1259_v12 = vrot.slane %v1168_v28, 7 }
 0x9cf   :  { %v1264_v53 = vadd.f32 %v1256_v45, %v3019_v7  ;;  %v1265_v49 = vadd.f32 %v1257_v48, %v3022_v10  ;;  %v1266_v56 = vadd.f32 %v1258_v52, %v3026_v13  ;;  %v1267_v62 = vadd.f32 %v1259_v12, %v3030_v16 }
 0x9d1   :  { %2708 = vtanh.f32 %v1264_v53  ;;  %v2515_v27 = vmul.f32 -1.442695, %v1265_v49  ;;  %v2514_v39 = vmul.f32 -1.442695, %v1264_v53  ;;  %v2516_v34 = vmul.f32 -1.442695, %v1266_v56 }
 0x9d2   :  { %2710 = vtanh.f32 %v1265_v49  ;;  %v1188_v2 = vpop.f32.mrf.mxu2  ;;  %v2517_v41 = vmul.f32 -1.442695, %v1267_v62 }
 0x9d3   :  { %2712 = vtanh.f32 %v1266_v56 }
 0x9d4   :  { %2714 = vtanh.f32 %v1267_v62 }
 0x9d7   :  { %v2709_v55 = vpop.eup %2708 }
 0x9d8   :  { %v2711_v0 = vpop.eup %2710  ;;  %1368 = vrot.lane.b32.xlu1 %v2709_v55, %s2949_s22 }
 0x9d9   :  { %1370 = vrot.lane.b32.xlu2 %v2711_v0, %s2949_s22  ;;  %v2713_v1 = vpop.eup %2712 }
 0x9da   :  { %1372 = vrot.lane.b32.xlu0 %v2713_v1, %s2949_s22  ;;  %v2715_v4 = vpop.eup %2714 }
 0x9e0   :  { %1374 = vrot.lane.b32.xlu1 %v2715_v4, %s2949_s22 }
 0x9ea   :  { %v1213_v54 = vpop.f32.mrf.mxu3 }
 0x9eb   :  { %v1216_v3 = vadd.f32 %v1213_v54, %v1188_v2 }
 0x9ed   :  { %v1217_v60 = vadd.f32 %v3474_v47, %v1216_v3 }
 0x9ef   :  { %2716 = vtanh.f32 %v1217_v60  ;;  %v2513_v37 = vmul.f32 -1.442695, %v1217_v60 }
 0x9f0   :  { %2718 = vpow2.f32 %v2515_v27 }
 0x9f5   :  { %v2717_v8 = vpop.eup %2716 }
 0x9f6   :  { %1240 = vrot.lane.b32.xlu2 %v2717_v8, %s2949_s22  ;;  %v2719_v51 = vpop.eup %2718 }
 0x9f7   :  { %v1281_v22 = vadd.f32 1.0, %v2719_v51 }
 0x9f9   :  { %2720 = vrcp.f32 %v1281_v22  ;;  %v1310_v33 = vand.u32 2147483648, %v1281_v22  ;;  %vm1304_vm6 = vweird.f32 %v1281_v22  ;;  %v1308_v5 = vand.u32 2147483647, %v1281_v22 }
 0x9fa   :  { %2722 = vpow2.f32 %v2514_v39 }
 0x9fb   :  { %2724 = vpow2.f32 %v2516_v34  ;;  %v1311_v23 = vor.u32 1.1754944e-38, %v1310_v33  ;;  %vm1309_vm8 = vcmp.eq.f32.partialorder %v1308_v5, 8.507059e+37 }
 0x9fc   :  { %2726 = vpow2.f32 %v2517_v41 }
 0x9fd   :  { %2728 = vpow2.f32 %v2513_v37 }
 0x9ff   :  { %v2721_v36 = vpop.eup %2720 }
 0xa00   :  { %v1300_v32 = vmul.f32 %v2721_v36, %v1281_v22  ;;  %v2723_v50 = vpop.eup %2722  ;;  %vm1305_vm5 = vweird.f32 %v2721_v36 }
 0xa01   :  { %v1280_v46 = vadd.f32 1.0, %v2723_v50  ;;  %v2725_v58 = vpop.eup %2724  ;;  %vm1306_vm7 = vmor %vm1304_vm6, %vm1305_vm5 }
 0xa02   :  { %v1301_v42 = vsub.f32 1.0, %v1300_v32  ;;  %v2727_v9 = vpop.eup %2726  ;;  %v1282_v15 = vadd.f32 1.0, %v2725_v58 }
 0xa03   :  { %2730 = vrcp.f32 %v1280_v46  ;;  %v2729_v61 = vpop.eup %2728  ;;  %v3478_v19 = vadd.f32 1.0, %v2727_v9  ;;  %v1295_v4 = vand.u32 2147483648, %v1280_v46  ;;  %vm1289_vm10 = vweird.f32 %v1280_v46 }
 0xa04   :  { %v1302_v59 = vmul.f32 %v2721_v36, %v1301_v42  ;;  %v3480_v35 = vadd.f32 1.0, %v2729_v61  ;;  %2732 = vrcp.f32 %v1282_v15  ;;  %v1293_v3 = vand.u32 2147483647, %v1280_v46 }
 0xa05   :  { %2734 = vrcp.f32 %v3478_v19  ;;  %v1296_v27 = vor.u32 1.1754944e-38, %v1295_v4  ;;  %vm1319_vm14 = vweird.f32 %v1282_v15  ;;  %v1323_v34 = vand.u32 2147483647, %v1282_v15 }
 0xa06   :  { %v1303_v40 = vadd.f32 %v2721_v36, %v1302_v59  ;;  %2736 = vrcp.f32 %v3480_v35  ;;  %vm1294_vm13 = vcmp.eq.f32.partialorder %v1293_v3, 8.507059e+37  ;;  %v1340_v59 = vand.u32 2147483648, %v3478_v19 }
 0xa07   :  { %vm1334_vm6 = vweird.f32 %v3478_v19  ;;  %v1338_v58 = vand.u32 2147483647, %v3478_v19  ;;  %v1231_v5 = vand.u32 2147483647, %v3480_v35  ;;  %v1355_v3 = vrot.slane %v3389_v6, 7 }
 0xa08   :  { %v1307_v20 = vsel %vm1306_vm7, %v2721_v36, %v1303_v40  ;;  %v1325_v36 = vand.u32 2147483648, %v1282_v15  ;;  %v1233_v40 = vand.u32 2147483648, %v3480_v35  ;;  %vm1227_vm7 = vweird.f32 %v3480_v35 }
 0xa09   :  { %v3482_v25 = vsel %vm1309_vm8, %v1311_v23, %v1307_v20  ;;  %v2731_v30 = vpop.eup %2730  ;;  %v1341_v23 = vor.u32 1.1754944e-38, %v1340_v59 }
 0xa0a   :  { %v1285_v28 = vmul.f32 %v2731_v30, %v1280_v46  ;;  %v2733_v45 = vpop.eup %2732  ;;  %vm1290_vm9 = vweird.f32 %v2731_v30  ;;  %v1326_v33 = vor.u32 1.1754944e-38, %v1325_v36 }
 0xa0b   :  { %v2735_v52 = vpop.eup %2734  ;;  %v1315_v49 = vmul.f32 %v2733_v45, %v1282_v15  ;;  %vm1291_vm11 = vmor %vm1289_vm10, %vm1290_vm9  ;;  %vm1320_vm12 = vweird.f32 %v2733_v45  ;;  %vm1324_vm9 = vcmp.eq.f32.partialorder %v1323_v34, 8.507059e+37 }
 0xa0c   :  { %v1286_v48 = vsub.f32 1.0, %v1285_v28  ;;  %v2737_v53 = vpop.eup %2736  ;;  %v1330_v56 = vmul.f32 %v2735_v52, %v3478_v19  ;;  %vm1335_vm15 = vweird.f32 %v2735_v52  ;;  %vm3493_vm0 = vmor %vm1319_vm14, %vm1320_vm12  ;;  %vm1232_vm12 = vcmp.eq.f32.partialorder %v1231_v5, 8.507059e+37 }
 0xa0d   :  { %v1223_v62 = vmul.f32 %v2737_v53, %v3480_v35  ;;  %v1316_v55 = vsub.f32 1.0, %v1315_v49  ;;  %vm1228_vm5 = vweird.f32 %v2737_v53  ;;  %vm1336_vm8 = vmor %vm1334_vm6, %vm1335_vm15 }
 0xa0e   :  { %v1287_v12 = vmul.f32 %v2731_v30, %v1286_v48  ;;  %v1331_v1 = vsub.f32 1.0, %v1330_v56  ;;  %vm1229_vm10 = vmor %vm1227_vm7, %vm1228_vm5  ;;  %v1354_v56 = vrot.slane %v3401_v38, 7 }
 0xa0f   :  { %v1224_v2 = vsub.f32 1.0, %v1223_v62  ;;  %v1317_v54 = vmul.f32 %v2733_v45, %v1316_v55 }
 0xa10   :  { %v1288_v0 = vadd.f32 %v2731_v30, %v1287_v12  ;;  %v1332_v8 = vmul.f32 %v2735_v52, %v1331_v1 }
 0xa11   :  { %v1225_v51 = vmul.f32 %v2737_v53, %v1224_v2  ;;  %v1318_v22 = vadd.f32 %v2733_v45, %v1317_v54 }
 0xa12   :  { %v1292_v60 = vsel %vm1291_vm11, %v2731_v30, %v1288_v0  ;;  %v1333_v41 = vadd.f32 %v2735_v52, %v1332_v8  ;;  %v1234_v30 = vor.u32 1.1754944e-38, %v1233_v40  ;;  %vm1339_vm11 = vcmp.eq.f32.partialorder %v1338_v58, 8.507059e+37 }
 0xa13   :  { %v3490_v32 = vsel %vm1294_vm13, %v1296_v27, %v1292_v60  ;;  %v1226_v50 = vadd.f32 %v2737_v53, %v1225_v51  ;;  %v1322_v46 = vsel %vm3493_vm0, %v2733_v45, %v1318_v22 }
 0xa14   :  { %v1337_v9 = vsel %vm1336_vm8, %v2735_v52, %v1333_v41  ;;  %v1327_v15 = vsel %vm1324_vm9, %v1326_v33, %v1322_v46  ;;  %v1353_v52 = vrot.slane %v3385_v57, 7  ;;  %v1352_v57 = vrot.slane %v3381_v63, 7 }
 0xa15   :  { %v1230_v20 = vsel %vm1229_vm10, %v2737_v53, %v1226_v50  ;;  %v1362_v62 = vmul.f32 %v1354_v56, %v1327_v15 }
 0xa16   :  { %v1235_v19 = vsel %vm1232_vm12, %v1234_v30, %v1230_v20  ;;  %v1361_v53 = vmul.f32 %v1353_v52, %v3482_v25  ;;  %v1360_v2 = vmul.f32 %v1352_v57, %v3490_v32 }
 0xa17   :  { %v1238_v8 = vmul.f32 %v1235_v19, %v3394_v14 }
 0xa33   :  { %v1371_v11 = vpop.permute.xlu2 %1370 }
 0xa34   :  { %v1381_v29 = vmul.f32 %v1371_v11, %v3482_v25 }
 0xa36   :  { %1390 = vrot.lane.b32.xlu1 %v1381_v29, %s2950_s0  ;;  %v1342_v29 = vsel %vm1339_vm11, %v1341_v23, %v1337_v9 }
 0xa37   :  { %v1363_v60 = vmul.f32 %v1355_v3, %v1342_v29 }
 0xa4a   :  { %v1369_v39 = vpop.permute.xlu1 %1368 }
 0xa4b   :  { %v1380_v42 = vmul.f32 %v1369_v39, %v3490_v32 }
 0xa4c   :  { %v1373_v61 = vpop.permute.xlu0 %1372 }
 0xa4d   :  { %1388 = vrot.lane.b32.xlu0 %v1380_v42, %s2950_s0  ;;  %v1382_v11 = vmul.f32 %v1373_v61, %v1327_v15 }
 0xa4f   :  { %1392 = vrot.lane.b32.xlu2 %v1382_v11, %s2950_s0 }
 0xa50   :  { %v1241_v45 = vpop.permute.xlu2 %1240 }
 0xa51   :  { %v1243_v35 = vmul.f32 %v1241_v45, %v1235_v19 }
 0xa52   :  { %v1375_v28 = vpop.permute.xlu1 %1374 }
 0xa53   :  { %v1383_v48 = vmul.f32 %v1375_v28, %v1342_v29  ;;  %1245 = vrot.lane.b32.xlu1 %v1243_v35, %s2950_s0 }
 0xa55   :  { %1394 = vrot.lane.b32.xlu0 %v1383_v48, %s2950_s0 }
 0xaa8   :  { %v1391_v49 = vpop.permute.xlu1 %1390 }
 0xaa9   :  { %v3511_v12 = vadd.f32 %v1391_v49, %v1361_v53  ;;  %v1393_v55 = vpop.permute.xlu2 %1392 }
 0xaaa   :  { %v3515_v0 = vadd.f32 %v1393_v55, %v1362_v62 }
 0xaab   :  { %2738 = vtanh.f32 %v3511_v12 }
 0xaac   :  { %2740 = vtanh.f32 %v3515_v0 }
 0xab1   :  { %v2739_v1 = vpop.eup %2738 }
 0xab2   :  { %1414 = vrot.lane.b32.xlu0 %v2739_v1, %s2949_s22  ;;  %v2741_v4 = vpop.eup %2740 }
 0xab3   :  { %1416 = vrot.lane.b32.xlu1 %v2741_v4, %s2949_s22 }
 0xabf   :  { %v1389_v54 = vpop.permute.xlu0 %1388 }
 0xac0   :  { %v3522_v38 = vadd.f32 %v1389_v54, %v1360_v2 }
 0xac2   :  { %2742 = vtanh.f32 %v3522_v38 }
 0xac5   :  { %v1246_v22 = vpop.permute.xlu1 %1245 }
 0xac6   :  { %v3529_v39 = vadd.f32 %v1246_v22, %v1238_v8 }
 0xac7   :  { %v1395_v27 = vpop.permute.xlu0 %1394 }
 0xac8   :  { %v2743_v51 = vpop.eup %2742  ;;  %v3527_v36 = vadd.f32 %v1395_v27, %v1363_v60 }
 0xac9   :  { %1412 = vrot.lane.b32.xlu2 %v2743_v51, %s2949_s22 }
 0xaca   :  { %2744 = vtanh.f32 %v3527_v36 }
 0xacb   :  { %2746 = vtanh.f32 %v3529_v39 }
 0xad0   :  { %v2745_v63 = vpop.eup %2744 }
 0xad1   :  { %v2747_v34 = vpop.eup %2746  ;;  %1418 = vrot.lane.b32.xlu2 %v2745_v63, %s2949_s22 }
 0xad2   :  { %1251 = vrot.lane.b32.xlu0 %v2747_v34, %s2949_s22 }
 0xb23   :  { %v1413_v6 = vpop.permute.xlu2 %1412 }
 0xb24   :  { %v1415_v14 = vpop.permute.xlu0 %1414  ;;  %v1424_v42 = vmul.f32 %v1413_v6, %v3490_v32 }
 0xb25   :  { %v1425_v41 = vmul.f32 %v1415_v14, %v3482_v25  ;;  %v1417_v59 = vpop.permute.xlu1 %1416 }
 0xb26   :  { %v1432_v50 = vrot.slane %v1424_v42, 4  ;;  %v1426_v46 = vmul.f32 %v1417_v59, %v1327_v15 }
 0xb27   :  { %v1433_v37 = vrot.slane %v1425_v41, 3 }
 0xb28   :  { %v1435_v58 = vrot.slane %v1426_v46, 2 }
 0xb29   :  { %v1434_v33 = vsel %vm270_vm1, %v1433_v37, %v1432_v50 }
 0xb2a   :  { %v1436_v61 = vsel %vm273_vm2, %v1435_v58, %v1434_v33 }
 0xb2b   :  { %v1419_v40 = vpop.permute.xlu2 %1418 }
 0xb2c   :  { %v1427_v5 = vmul.f32 %v1419_v40, %v1342_v29 }
 0xb2e   :  { %v1437_v9 = vrot.slane %v1427_v5, 1 }
 0xb30   :  { %v1438_v20 = vsel %vm276_vm3, %v1437_v9, %v1436_v61 }
 0xb31   :  { %1439 = vrot.lane.b32.xlu1 %v1438_v20, %s2950_s0 }
 0xb44   :  { %v1252_v23 = vpop.permute.xlu0 %1251 }
 0xb45   :  { %v1254_v32 = vmul.f32 %v1252_v23, %v1235_v19 }
 0xb47   :  { %1484 = vrot.lane.b32.xlu2 %v1254_v32, %s2950_s0 }
 0xba1   :  { %v1485_v25 = vpop.permute.xlu2 %1484 }
 0xba2   :  { %2520 = vmatmul.msk.f32.vlgmr.msra.gmra.mxu2 %vm280_vm4, %v1485_v25 }
 0xba3   :  { %v1440_v15 = vpop.permute.xlu1 %1439  ;;  %2356 = vmatpush.msra.mxu2 %v3414_v21 }
 0xba4   :  { %2518 = vmatmul.msk.f32.vlgmr.msrb.gmra.mxu0 %vm280_vm4, %v1440_v15  ;;  %2519 = vmatmul.msk.f32.vlgmr.msra.gmra.mxu1 %vm280_vm4, %v1440_v15 }
 0xba5   :  { %2084 = vmatpush.msrb.mxu0 %v3414_v21  ;;  %2331 = vmatpush.msra.mxu1 %v3442_v31 }
 0xba6   :  { %2357 = vmatpush.msra.mxu2 %v3420_v24 }
 0xba7   :  { %2085 = vmatpush.msrb.mxu0 %v3420_v24  ;;  %2332 = vmatpush.msra.mxu1 %v3448_v44 }
 0xba8   :  { %2358 = vmatpush.msra.mxu2 %v3426_v18 }
 0xba9   :  { %2086 = vmatpush.msrb.mxu0 %v3426_v18  ;;  %2333 = vmatpush.msra.mxu1 %v3454_v43 }
 0xbaa   :  { %2359 = vmatpush.msra.mxu2 %v3432_v26 }
 0xbab   :  { %2087 = vmatpush.msrb.mxu0 %v3432_v26  ;;  %2334 = vmatpush.msra.mxu1 %v3460_v17 }
 0xc21   :  { %v1460_v21 = vpop.f32.mrf.mxu0  ;;  %v1480_v29 = vpop.f32.mrf.mxu1 }
 0xc22   :  { %v1548_v31 = vrot.slane %v1460_v21, 3  ;;  %v1549_v11 = vrot.slane %v1460_v21, 4  ;;  %v1550_v30 = vrot.slane %v1460_v21, 5  ;;  %v1551_v19 = vrot.slane %v1460_v21, 6 }
 0xc24   :  { %v1556_v24 = vadd.f32 %v1548_v31, %v3019_v7  ;;  %v1557_v44 = vadd.f32 %v1549_v11, %v3022_v10  ;;  %v1558_v43 = vadd.f32 %v1550_v30, %v3026_v13  ;;  %v1559_v26 = vadd.f32 %v1551_v19, %v3030_v16 }
 0xc25   :  { %v1505_v28 = vpop.f32.mrf.mxu2 }
 0xc26   :  { %2748 = vtanh.f32 %v1556_v24  ;;  %v1508_v18 = vadd.f32 %v1505_v28, %v1480_v29  ;;  %v2524_v49 = vmul.f32 -1.442695, %v1558_v43  ;;  %v2522_v55 = vmul.f32 -1.442695, %v1556_v24 }
 0xc27   :  { %2750 = vtanh.f32 %v1557_v44  ;;  %v2523_v1 = vmul.f32 -1.442695, %v1557_v44  ;;  %v2525_v57 = vmul.f32 -1.442695, %v1559_v26 }
 0xc28   :  { %v1509_v17 = vadd.f32 %v3474_v47, %v1508_v18  ;;  %2752 = vtanh.f32 %v1558_v43 }
 0xc29   :  { %2754 = vtanh.f32 %v1559_v26 }
 0xc2a   :  { %2756 = vtanh.f32 %v1509_v17  ;;  %v2521_v54 = vmul.f32 -1.442695, %v1509_v17 }
 0xc2b   :  { %2758 = vpow2.f32 %v2524_v49 }
 0xc2c   :  { %v2749_v45 = vpop.eup %2748 }
 0xc2d   :  { %v2751_v48 = vpop.eup %2750  ;;  %1660 = vrot.lane.b32.xlu0 %v2749_v45, %s2949_s22 }
 0xc2e   :  { %1662 = vrot.lane.b32.xlu1 %v2751_v48, %s2949_s22  ;;  %v2753_v35 = vpop.eup %2752 }
 0xc2f   :  { %1664 = vrot.lane.b32.xlu2 %v2753_v35, %s2949_s22  ;;  %v2755_v52 = vpop.eup %2754 }
 0xc30   :  { %v2757_v53 = vpop.eup %2756 }
 0xc31   :  { %v2759_v56 = vpop.eup %2758 }
 0xc32   :  { %v1574_v62 = vadd.f32 1.0, %v2759_v56 }
 0xc34   :  { %2760 = vrcp.f32 %v1574_v62  ;;  %v1617_v42 = vand.u32 2147483648, %v1574_v62  ;;  %vm1611_vm14 = vweird.f32 %v1574_v62  ;;  %v1615_v37 = vand.u32 2147483647, %v1574_v62 }
 0xc35   :  { %1666 = vrot.lane.b32.xlu0 %v2755_v52, %s2949_s22  ;;  %2762 = vpow2.f32 %v2522_v55 }
 0xc36   :  { %1532 = vrot.lane.b32.xlu1 %v2757_v53, %s2949_s22  ;;  %2764 = vpow2.f32 %v2523_v1  ;;  %v1618_v40 = vor.u32 1.1754944e-38, %v1617_v42  ;;  %vm1616_vm0 = vcmp.eq.f32.partialorder %v1615_v37, 8.507059e+37 }
 0xc37   :  { %2766 = vpow2.f32 %v2525_v57 }
 0xc38   :  { %2768 = vpow2.f32 %v2521_v54 }
 0xc3a   :  { %v2761_v4 = vpop.eup %2760 }
 0xc3b   :  { %v1607_v2 = vmul.f32 %v2761_v4, %v1574_v62  ;;  %v2763_v3 = vpop.eup %2762  ;;  %vm1612_vm13 = vweird.f32 %v2761_v4 }
 0xc3c   :  { %v2765_v60 = vpop.eup %2764  ;;  %v1572_v27 = vadd.f32 1.0, %v2763_v3  ;;  %vm1613_vm15 = vmor %vm1611_vm14, %vm1612_vm13 }
 0xc3d   :  { %v1608_v8 = vsub.f32 1.0, %v1607_v2  ;;  %v1573_v51 = vadd.f32 1.0, %v2765_v60  ;;  %v2767_v63 = vpop.eup %2766 }
 0xc3e   :  { %2770 = vrcp.f32 %v1572_v27  ;;  %v2769_v34 = vpop.eup %2768  ;;  %v3568_v14 = vadd.f32 1.0, %v2767_v63  ;;  %v1587_v29 = vand.u32 2147483648, %v1572_v27  ;;  %vm1581_vm7 = vweird.f32 %v1572_v27 }
 0xc3f   :  { %v1609_v22 = vmul.f32 %v2761_v4, %v1608_v8  ;;  %2772 = vrcp.f32 %v1573_v51  ;;  %v3570_v41 = vadd.f32 1.0, %v2769_v34  ;;  %v1602_v19 = vand.u32 2147483648, %v1573_v51 }
 0xc40   :  { %2774 = vrcp.f32 %v3568_v14  ;;  %v1585_v18 = vand.u32 2147483647, %v1572_v27  ;;  %vm1596_vm8 = vweird.f32 %v1573_v51  ;;  %v1600_v43 = vand.u32 2147483647, %v1573_v51 }
 0xc41   :  { %v1610_v6 = vadd.f32 %v2761_v4, %v1609_v22  ;;  %2776 = vrcp.f32 %v3570_v41  ;;  %v1588_v48 = vor.u32 1.1754944e-38, %v1587_v29  ;;  %v1603_v52 = vor.u32 1.1754944e-38, %v1602_v19 }
 0xc42   :  { %vm1586_vm11 = vcmp.eq.f32.partialorder %v1585_v18, 8.507059e+37  ;;  %vm1601_vm12 = vcmp.eq.f32.partialorder %v1600_v43, 8.507059e+37  ;;  %v1632_v57 = vand.u32 2147483648, %v3568_v14  ;;  %v1630_v54 = vand.u32 2147483647, %v3568_v14 }
 0xc43   :  { %v1614_v46 = vsel %vm1613_vm15, %v2761_v4, %v1610_v6  ;;  %vm1626_vm15 = vweird.f32 %v3568_v14  ;;  %v1525_v3 = vand.u32 2147483648, %v3570_v41  ;;  %v1523_v60 = vand.u32 2147483647, %v3570_v41 }
 0xc44   :  { %v2771_v50 = vpop.eup %2770  ;;  %v3574_v33 = vsel %vm1616_vm0, %v1618_v40, %v1614_v46  ;;  %v1646_v40 = vrot.slane %v3515_v0, 7 }
 0xc45   :  { %v2773_v59 = vpop.eup %2772  ;;  %v1577_v58 = vmul.f32 %v2771_v50, %v1572_v27  ;;  %vm1582_vm5 = vweird.f32 %v2771_v50  ;;  %v1633_v27 = vor.u32 1.1754944e-38, %v1632_v57  ;;  %v1526_v22 = vor.u32 1.1754944e-38, %v1525_v3 }
 0xc46   :  { %v1592_v9 = vmul.f32 %v2773_v59, %v1573_v51  ;;  %v2775_v23 = vpop.eup %2774  ;;  %vm1597_vm6 = vweird.f32 %v2773_v59  ;;  %vm1583_vm9 = vmor %vm1581_vm7, %vm1582_vm5  ;;  %vm1519_vm5 = vweird.f32 %v3570_v41  ;;  %vm1631_vm7 = vcmp.eq.f32.partialorder %v1630_v54, 8.507059e+37 }
 0xc47   :  { %v1578_v20 = vsub.f32 1.0, %v1577_v58  ;;  %v2777_v25 = vpop.eup %2776  ;;  %v1622_v21 = vmul.f32 %v2775_v23, %v3568_v14  ;;  %vm1598_vm10 = vmor %vm1596_vm8, %vm1597_vm6  ;;  %vm1627_vm13 = vweird.f32 %v2775_v23  ;;  %vm1524_vm8 = vcmp.eq.f32.partialorder %v1523_v60, 8.507059e+37 }
 0xc48   :  { %v1593_v32 = vsub.f32 1.0, %v1592_v9  ;;  %v1515_v11 = vmul.f32 %v2777_v25, %v3570_v41  ;;  %vm1520_vm14 = vweird.f32 %v2777_v25  ;;  %vm1628_vm0 = vmor %vm1626_vm15, %vm1627_vm13  ;;  %v1647_v58 = vrot.slane %v3527_v36, 7 }
 0xc49   :  { %v1579_v15 = vmul.f32 %v2771_v50, %v1578_v20  ;;  %v1623_v24 = vsub.f32 1.0, %v1622_v21  ;;  %vm1521_vm6 = vmor %vm1519_vm5, %vm1520_vm14 }
 0xc4a   :  { %v1594_v31 = vmul.f32 %v2773_v59, %v1593_v32  ;;  %v1516_v28 = vsub.f32 1.0, %v1515_v11 }
 0xc4b   :  { %v1580_v30 = vadd.f32 %v2771_v50, %v1579_v15  ;;  %v1624_v17 = vmul.f32 %v2775_v23, %v1623_v24 }
 0xc4c   :  { %v1595_v44 = vadd.f32 %v2773_v59, %v1594_v31  ;;  %v1517_v35 = vmul.f32 %v2777_v25, %v1516_v28 }
 0xc4d   :  { %v1584_v26 = vsel %vm1583_vm9, %v2771_v50, %v1580_v30  ;;  %v1625_v1 = vadd.f32 %v2775_v23, %v1624_v17  ;;  %v1644_v50 = vrot.slane %v3522_v38, 7 }
 0xc4e   :  { %v1599_v45 = vsel %vm1598_vm10, %v2773_v59, %v1595_v44  ;;  %v3580_v49 = vsel %vm1586_vm11, %v1588_v48, %v1584_v26  ;;  %v1518_v2 = vadd.f32 %v2777_v25, %v1517_v35 }
 0xc4f   :  { %v3582_v62 = vsel %vm1601_vm12, %v1603_v52, %v1599_v45  ;;  %v1629_v8 = vsel %vm1628_vm0, %v2775_v23, %v1625_v1  ;;  %v1652_v41 = vmul.f32 %v1644_v50, %v3580_v49 }
 0xc50   :  { %v1522_v51 = vsel %vm1521_vm6, %v2777_v25, %v1518_v2  ;;  %v1634_v63 = vsel %vm1631_vm7, %v1633_v27, %v1629_v8  ;;  %v1645_v25 = vrot.slane %v3511_v12, 7 }
 0xc51   :  { %v1527_v42 = vsel %vm1524_vm8, %v1526_v22, %v1522_v51  ;;  %v1655_v20 = vmul.f32 %v1647_v58, %v1634_v63 }
 0xc52   :  { %v1653_v15 = vmul.f32 %v1645_v25, %v3582_v62  ;;  %v1530_v11 = vmul.f32 %v1527_v42, %v3529_v39 }
 0xc89   :  { %v1665_v5 = vpop.permute.xlu2 %1664 }
 0xc8a   :  { %v1674_v61 = vmul.f32 %v1665_v5, %v3574_v33  ;;  %v1654_v5 = vmul.f32 %v1646_v40, %v3574_v33 }
 0xc8c   :  { %1684 = vrot.lane.b32.xlu1 %v1674_v61, %s2950_s0 }
 0xc9f   :  { %v1661_v53 = vpop.permute.xlu0 %1660 }
 0xca0   :  { %v1663_v56 = vpop.permute.xlu1 %1662  ;;  %v1672_v55 = vmul.f32 %v1661_v53, %v3580_v49 }
 0xca1   :  { %v1673_v4 = vmul.f32 %v1663_v56, %v3582_v62 }
 0xca2   :  { %1680 = vrot.lane.b32.xlu2 %v1672_v55, %s2950_s0 }
 0xca3   :  { %1682 = vrot.lane.b32.xlu0 %v1673_v4, %s2950_s0 }
 0xca7   :  { %v1667_v34 = vpop.permute.xlu0 %1666 }
 0xca8   :  { %v1675_v6 = vmul.f32 %v1667_v34, %v1634_v63  ;;  %v1533_v14 = vpop.permute.xlu1 %1532 }
 0xca9   :  { %v1535_v37 = vmul.f32 %v1533_v14, %v1527_v42 }
 0xcaa   :  { %1686 = vrot.lane.b32.xlu2 %v1675_v6, %s2950_s0 }
 0xcab   :  { %1537 = vrot.lane.b32.xlu0 %v1535_v37, %s2950_s0 }
 0xcfc   :  { %v1681_v59 = vpop.permute.xlu2 %1680 }
 0xcfd   :  { %v3598_v46 = vadd.f32 %v1681_v59, %v1652_v41 }
 0xcfe   :  { %v1685_v9 = vpop.permute.xlu1 %1684 }
 0xcff   :  { %2778 = vtanh.f32 %v3598_v46  ;;  %v3604_v61 = vadd.f32 %v1685_v9, %v1654_v5 }
 0xd01   :  { %2780 = vtanh.f32 %v3604_v61 }
 0xd04   :  { %v1687_v23 = vpop.permute.xlu2 %1686 }
 0xd05   :  { %v2779_v32 = vpop.eup %2778  ;;  %v3607_v38 = vadd.f32 %v1687_v23, %v1655_v20 }
 0xd06   :  { %1704 = vrot.lane.b32.xlu1 %v2779_v32, %s2949_s22 }
 0xd07   :  { %2782 = vtanh.f32 %v3607_v38  ;;  %v2781_v0 = vpop.eup %2780 }
 0xd08   :  { %1708 = vrot.lane.b32.xlu0 %v2781_v0, %s2949_s22 }
 0xd0d   :  { %v2783_v36 = vpop.eup %2782 }
 0xd0e   :  { %1710 = vrot.lane.b32.xlu1 %v2783_v36, %s2949_s22 }
 0xd15   :  { %v1683_v21 = vpop.permute.xlu0 %1682 }
 0xd16   :  { %v3615_v31 = vadd.f32 %v1683_v21, %v1653_v15 }
 0xd18   :  { %2784 = vtanh.f32 %v3615_v31 }
 0xd1d   :  { %v1538_v30 = vpop.permute.xlu0 %1537 }
 0xd1e   :  { %v2785_v24 = vpop.eup %2784  ;;  %v3619_v44 = vadd.f32 %v1538_v30, %v1530_v11 }
 0xd1f   :  { %1706 = vrot.lane.b32.xlu2 %v2785_v24, %s2949_s22 }
 0xd20   :  { %2786 = vtanh.f32 %v3619_v44 }
 0xd26   :  { %v2787_v29 = vpop.eup %2786 }
 0xd27   :  { %1543 = vrot.lane.b32.xlu2 %v2787_v29, %s2949_s22 }
 0xd78   :  { %v1705_v12 = vpop.permute.xlu1 %1704 }
 0xd79   :  { %v1716_v28 = vmul.f32 %v1705_v12, %v3580_v49  ;;  %v1707_v19 = vpop.permute.xlu2 %1706 }
 0xd7a   :  { %v1717_v18 = vmul.f32 %v1707_v19, %v3582_v62  ;;  %v1709_v39 = vpop.permute.xlu0 %1708 }
 0xd7b   :  { %v1724_v43 = vrot.slane %v1716_v28, 5  ;;  %v1718_v17 = vmul.f32 %v1709_v39, %v3574_v33 }
 0xd7c   :  { %v1725_v26 = vrot.slane %v1717_v18, 4 }
 0xd7d   :  { %v1727_v48 = vrot.slane %v1718_v17, 3 }
 0xd7e   :  { %v1726_v35 = vsel %vm270_vm1, %v1725_v26, %v1724_v43 }
 0xd7f   :  { %v1728_v49 = vsel %vm273_vm2, %v1727_v48, %v1726_v35 }
 0xd80   :  { %v1711_v45 = vpop.permute.xlu1 %1710 }
 0xd81   :  { %v1719_v52 = vmul.f32 %v1711_v45, %v1634_v63  ;;  %v1544_v53 = vpop.permute.xlu2 %1543 }
 0xd82   :  { %v1546_v56 = vmul.f32 %v1544_v53, %v1527_v42 }
 0xd83   :  { %v1729_v55 = vrot.slane %v1719_v52, 2 }
 0xd84   :  { %1776 = vrot.lane.b32.xlu1 %v1546_v56, %s2950_s0 }
 0xd85   :  { %v1730_v1 = vsel %vm276_vm3, %v1729_v55, %v1728_v49 }
 0xd86   :  { %1731 = vrot.lane.b32.xlu0 %v1730_v1, %s2950_s0 }
 0xdf6   :  { %v1777_v62 = vpop.permute.xlu1 %1776 }
 0xdf7   :  { %2528 = vmatmul.msk.f32.vlgmr.msrb.gmra.mxu1 %vm280_vm4, %v1777_v62 }
 0xdf8   :  { %v1732_v33 = vpop.permute.xlu0 %1731 }
 0xdf9   :  { %2526 = vmatmul.msk.f32.vlgmr.msra.gmra.mxu3 %vm280_vm4, %v1732_v33  ;;  %2527 = vmatmul.msk.f32.vlgmr.msra.gmra.mxu0 %vm280_vm4, %v1732_v33 }
 0xe74   :  { %v1797_v27 = vpop.f32.mrf.mxu1 }
 0xe76   :  { %v1772_v54 = vpop.f32.mrf.mxu0 }
 0xe77   :  { %v1800_v22 = vadd.f32 %v1797_v27, %v1772_v54 }
 0xe79   :  { %v1801_v6 = vadd.f32 %v3474_v47, %v1800_v22 }
 0xe7b   :  { %v2529_v15 = vmul.f32 -1.442695, %v1801_v6 }
 0xe7c   :  { %v1752_v4 = vpop.f32.mrf.mxu3 }
 0xe7d   :  { %v1840_v57 = vrot.slane %v1752_v4, 2  ;;  %v1841_v2 = vrot.slane %v1752_v4, 3  ;;  %v1842_v8 = vrot.slane %v1752_v4, 4  ;;  %v1843_v51 = vrot.slane %v1752_v4, 5 }
 0xe7f   :  { %v1848_v3 = vadd.f32 %v1840_v57, %v3019_v7  ;;  %v1849_v60 = vadd.f32 %v1841_v2, %v3022_v10  ;;  %v1850_v63 = vadd.f32 %v1842_v8, %v3026_v13  ;;  %v1851_v34 = vadd.f32 %v1843_v51, %v3030_v16 }
 0xe81   :  { %2788 = vtanh.f32 %v1848_v3  ;;  %v2530_v59 = vmul.f32 -1.442695, %v1848_v3  ;;  %v2533_v47 = vmul.f32 -1.442695, %v1851_v34  ;;  %v2531_v23 = vmul.f32 -1.442695, %v1849_v60 }
 0xe82   :  { %2790 = vtanh.f32 %v1849_v60  ;;  %v2532_v25 = vmul.f32 -1.442695, %v1850_v63 }
 0xe83   :  { %2792 = vtanh.f32 %v1850_v63 }
 0xe84   :  { %2794 = vtanh.f32 %v1851_v34 }
 0xe85   :  { %2796 = vtanh.f32 %v1801_v6 }
 0xe86   :  { %2798 = vpow2.f32 %v2530_v59 }
 0xe87   :  { %v2789_v14 = vpop.eup %2788  ;;  %2800 = vpow2.f32 %v2533_v47 }
 0xe88   :  { %v2791_v42 = vpop.eup %2790  ;;  %1952 = vrot.lane.b32.xlu2 %v2789_v14, %s2949_s22 }
 0xe89   :  { %1954 = vrot.lane.b32.xlu0 %v2791_v42, %s2949_s22  ;;  %v2793_v37 = vpop.eup %2792 }
 0xe8a   :  { %v2795_v50 = vpop.eup %2794  ;;  %1956 = vrot.lane.b32.xlu1 %v2793_v37, %s2949_s22 }
 0xe8b   :  { %v2797_v41 = vpop.eup %2796 }
 0xe8c   :  { %v2799_v40 = vpop.eup %2798 }
 0xe8d   :  { %v1864_v58 = vadd.f32 1.0, %v2799_v40  ;;  %v2801_v5 = vpop.eup %2800 }
 0xe8e   :  { %v1867_v9 = vadd.f32 1.0, %v2801_v5 }
 0xe8f   :  { %2802 = vrcp.f32 %v1864_v58  ;;  %v1879_v28 = vand.u32 2147483648, %v1864_v58  ;;  %vm1873_vm10 = vweird.f32 %v1864_v58  ;;  %v1877_v19 = vand.u32 2147483647, %v1864_v58 }
 0xe90   :  { %1958 = vrot.lane.b32.xlu2 %v2795_v50, %s2949_s22  ;;  %2804 = vrcp.f32 %v1867_v9  ;;  %v1924_v55 = vand.u32 2147483648, %v1867_v9  ;;  %vm1918_vm14 = vweird.f32 %v1867_v9  ;;  %v1922_v1 = vand.u32 2147483647, %v1867_v9 }
 0xe91   :  { %1824 = vrot.lane.b32.xlu0 %v2797_v41, %s2949_s22  ;;  %2806 = vpow2.f32 %v2531_v23  ;;  %v1880_v17 = vor.u32 1.1754944e-38, %v1879_v28  ;;  %vm1878_vm12 = vcmp.eq.f32.partialorder %v1877_v19, 8.507059e+37  ;;  %v1936_v19 = vrot.slane %v3598_v46, 7 }
 0xe92   :  { %2808 = vpow2.f32 %v2532_v25  ;;  %v1925_v33 = vor.u32 1.1754944e-38, %v1924_v55  ;;  %vm1923_vm0 = vcmp.eq.f32.partialorder %v1922_v1, 8.507059e+37 }
 0xe93   :  { %2810 = vpow2.f32 %v2529_v15 }
 0xe95   :  { %v2803_v20 = vpop.eup %2802 }
 0xe96   :  { %v1869_v32 = vmul.f32 %v2803_v20, %v1864_v58  ;;  %v2805_v36 = vpop.eup %2804  ;;  %vm1874_vm9 = vweird.f32 %v2803_v20 }
 0xe97   :  { %v1914_v11 = vmul.f32 %v2805_v36, %v1867_v9  ;;  %v2807_v30 = vpop.eup %2806  ;;  %vm1875_vm11 = vmor %vm1873_vm10, %vm1874_vm9  ;;  %vm1919_vm13 = vweird.f32 %v2805_v36 }
 0xe98   :  { %v1870_v0 = vsub.f32 1.0, %v1869_v32  ;;  %v1865_v24 = vadd.f32 1.0, %v2807_v30  ;;  %v2809_v18 = vpop.eup %2808  ;;  %vm1920_vm15 = vmor %vm1918_vm14, %vm1919_vm13 }
 0xe99   :  { %v1915_v12 = vsub.f32 1.0, %v1914_v11  ;;  %v2811_v39 = vpop.eup %2810  ;;  %v1866_v45 = vadd.f32 1.0, %v2809_v18  ;;  %v1937_v18 = vrot.slane %v3615_v31, 7 }
 0xe9a   :  { %v1871_v21 = vmul.f32 %v2803_v20, %v1870_v0  ;;  %2812 = vrcp.f32 %v1865_v24  ;;  %v3647_v52 = vadd.f32 1.0, %v2811_v39  ;;  %v1894_v14 = vand.u32 2147483648, %v1865_v24 }
 0xe9b   :  { %v1916_v26 = vmul.f32 %v2805_v36, %v1915_v12  ;;  %2814 = vrcp.f32 %v1866_v45  ;;  %vm1888_vm6 = vweird.f32 %v1865_v24  ;;  %v1892_v42 = vand.u32 2147483647, %v1865_v24 }
 0xe9c   :  { %v1872_v29 = vadd.f32 %v2803_v20, %v1871_v21  ;;  %2816 = vrcp.f32 %v3647_v52  ;;  %v1895_v59 = vor.u32 1.1754944e-38, %v1894_v14  ;;  %vm1903_vm10 = vweird.f32 %v1866_v45 }
 0xe9d   :  { %v1917_v56 = vadd.f32 %v2805_v36, %v1916_v26  ;;  %vm1893_vm8 = vcmp.eq.f32.partialorder %v1892_v42, 8.507059e+37  ;;  %v1909_v5 = vand.u32 2147483648, %v1866_v45  ;;  %v1817_v32 = vand.u32 2147483648, %v3647_v52 }
 0xe9e   :  { %v1876_v43 = vsel %vm1875_vm11, %v2803_v20, %v1872_v29  ;;  %v1907_v20 = vand.u32 2147483647, %v1866_v45  ;;  %vm1811_vm13 = vweird.f32 %v3647_v52 }
 0xe9f   :  { %v3645_v48 = vsel %vm1878_vm12, %v1880_v17, %v1876_v43  ;;  %v1921_v62 = vsel %vm1920_vm15, %v2805_v36, %v1917_v56  ;;  %v1815_v36 = vand.u32 2147483647, %v3647_v52  ;;  %v1910_v25 = vor.u32 1.1754944e-38, %v1909_v5 }
 0xea0   :  { %v2813_v49 = vpop.eup %2812  ;;  %v3652_v57 = vsel %vm1923_vm0, %v1925_v33, %v1921_v62  ;;  %vm1908_vm15 = vcmp.eq.f32.partialorder %v1907_v20, 8.507059e+37  ;;  %v1818_v30 = vor.u32 1.1754944e-38, %v1817_v32  ;;  %v1944_v43 = vmul.f32 %v1936_v19, %v3645_v48 }
 0xea1   :  { %v1884_v4 = vmul.f32 %v2813_v49, %v1865_v24  ;;  %v2815_v54 = vpop.eup %2814  ;;  %vm1889_vm5 = vweird.f32 %v2813_v49  ;;  %vm1816_vm0 = vcmp.eq.f32.partialorder %v1815_v36, 8.507059e+37 }
 0xea2   :  { %v2817_v8 = vpop.eup %2816  ;;  %v1899_v27 = vmul.f32 %v2815_v54, %v1866_v45  ;;  %vm1890_vm7 = vmor %vm1888_vm6, %vm1889_vm5  ;;  %vm1904_vm9 = vweird.f32 %v2815_v54 }
 0xea3   :  { %v1885_v60 = vsub.f32 1.0, %v1884_v4  ;;  %v1807_v22 = vmul.f32 %v2817_v8, %v3647_v52  ;;  %vm1812_vm11 = vweird.f32 %v2817_v8  ;;  %vm1905_vm12 = vmor %vm1903_vm10, %vm1904_vm9  ;;  %v1939_v52 = vrot.slane %v3607_v38, 7 }
 0xea4   :  { %v1900_v63 = vsub.f32 1.0, %v1899_v27  ;;  %vm1813_vm14 = vmor %vm1811_vm13, %vm1812_vm11 }
 0xea5   :  { %v1886_v51 = vmul.f32 %v2813_v49, %v1885_v60  ;;  %v1808_v6 = vsub.f32 1.0, %v1807_v22  ;;  %v1947_v46 = vmul.f32 %v1939_v52, %v3652_v57 }
 0xea6   :  { %v1901_v37 = vmul.f32 %v2815_v54, %v1900_v63 }
 0xea7   :  { %v1887_v34 = vadd.f32 %v2813_v49, %v1886_v51  ;;  %v1809_v41 = vmul.f32 %v2817_v8, %v1808_v6 }
 0xea8   :  { %v1902_v47 = vadd.f32 %v2815_v54, %v1901_v37 }
 0xea9   :  { %v1891_v50 = vsel %vm1890_vm7, %v2813_v49, %v1887_v34  ;;  %v1810_v23 = vadd.f32 %v2817_v8, %v1809_v41 }
 0xeaa   :  { %v3657_v58 = vsel %vm1893_vm8, %v1895_v59, %v1891_v50  ;;  %v1906_v0 = vsel %vm1905_vm12, %v2815_v54, %v1902_v47 }
 0xeab   :  { %v1814_v15 = vsel %vm1813_vm14, %v2817_v8, %v1810_v23  ;;  %v1911_v21 = vsel %vm1908_vm15, %v1910_v25, %v1906_v0  ;;  %v1945_v39 = vmul.f32 %v1937_v18, %v3657_v58 }
 0xeac   :  { %v1819_v12 = vsel %vm1816_vm0, %v1818_v30, %v1814_v15 }
 0xead   :  { %v1822_v31 = vmul.f32 %v1819_v12, %v3619_v44  ;;  %v1938_v44 = vrot.slane %v3604_v61, 7 }
 0xeaf   :  { %v1946_v4 = vmul.f32 %v1938_v44, %v1911_v21 }
 0xee2   :  { %v1953_v35 = vpop.permute.xlu2 %1952 }
 0xee3   :  { %v1964_v53 = vmul.f32 %v1953_v35, %v3645_v48 }
 0xee5   :  { %1972 = vrot.lane.b32.xlu1 %v1964_v53, %s2950_s0 }
 0xeea   :  { %v1959_v2 = vpop.permute.xlu2 %1958 }
 0xeeb   :  { %v1967_v3 = vmul.f32 %v1959_v2, %v3652_v57 }
 0xeed   :  { %1978 = vrot.lane.b32.xlu1 %v1967_v3, %s2950_s0 }
 0xefb   :  { %v1955_v40 = vpop.permute.xlu0 %1954 }
 0xefc   :  { %v1965_v9 = vmul.f32 %v1955_v40, %v3657_v58  ;;  %v1957_v11 = vpop.permute.xlu1 %1956 }
 0xefd   :  { %v1966_v24 = vmul.f32 %v1957_v11, %v1911_v21 }
 0xefe   :  { %1974 = vrot.lane.b32.xlu2 %v1965_v9, %s2950_s0 }
 0xeff   :  { %1976 = vrot.lane.b32.xlu0 %v1966_v24, %s2950_s0 }
 0xf03   :  { %v1825_v29 = vpop.permute.xlu0 %1824 }
 0xf04   :  { %v1827_v28 = vmul.f32 %v1825_v29, %v1819_v12 }
 0xf06   :  { %1829 = vrot.lane.b32.xlu2 %v1827_v28, %s2950_s0 }
 0xf57   :  { %v1973_v26 = vpop.permute.xlu1 %1972 }
 0xf58   :  { %v3670_v17 = vadd.f32 %v1973_v26, %v1944_v43  ;;  %v1975_v45 = vpop.permute.xlu2 %1974 }
 0xf59   :  { %v3672_v35 = vadd.f32 %v1975_v45, %v1945_v39 }
 0xf5a   :  { %2818 = vtanh.f32 %v3670_v17 }
 0xf5b   :  { %2820 = vtanh.f32 %v3672_v35 }
 0xf5f   :  { %v1979_v53 = vpop.permute.xlu1 %1978 }
 0xf60   :  { %v2819_v56 = vpop.eup %2818  ;;  %v3679_v55 = vadd.f32 %v1979_v53, %v1947_v46  ;;  %v1830_v49 = vpop.permute.xlu2 %1829 }
 0xf61   :  { %v2821_v1 = vpop.eup %2820  ;;  %v3681_v62 = vadd.f32 %v1830_v49, %v1822_v31  ;;  %1996 = vrot.lane.b32.xlu0 %v2819_v56, %s2949_s22 }
 0xf62   :  { %2822 = vtanh.f32 %v3679_v55  ;;  %1998 = vrot.lane.b32.xlu1 %v2821_v1, %s2949_s22 }
 0xf63   :  { %2824 = vtanh.f32 %v3681_v62 }
 0xf68   :  { %v2823_v38 = vpop.eup %2822 }
 0xf69   :  { %v2825_v33 = vpop.eup %2824  ;;  %2002 = vrot.lane.b32.xlu0 %v2823_v38, %s2949_s22 }
 0xf6a   :  { %1835 = vrot.lane.b32.xlu1 %v2825_v33, %s2949_s22 }
 0xf71   :  { %v1977_v2 = vpop.permute.xlu0 %1976 }
 0xf72   :  { %v3690_v54 = vadd.f32 %v1977_v2, %v1946_v4 }
 0xf74   :  { %2826 = vtanh.f32 %v3690_v54 }
 0xf7a   :  { %v2827_v3 = vpop.eup %2826 }
 0xf7b   :  { %2000 = vrot.lane.b32.xlu2 %v2827_v3, %s2949_s22 }
 0xfd3   :  { %v1997_v60 = vpop.permute.xlu0 %1996 }
 0xfd4   :  { %v2008_v8 = vmul.f32 %v1997_v60, %v3645_v48  ;;  %v1999_v27 = vpop.permute.xlu1 %1998 }
 0xfd5   :  { %v2009_v51 = vmul.f32 %v1999_v27, %v3657_v58  ;;  %v2001_v34 = vpop.permute.xlu2 %2000 }
 0xfd6   :  { %v2016_v22 = vrot.slane %v2008_v8, 6  ;;  %v2010_v6 = vmul.f32 %v2001_v34, %v1911_v21 }
 0xfd7   :  { %v2017_v63 = vrot.slane %v2009_v51, 5 }
 0xfd8   :  { %v2019_v50 = vrot.slane %v2010_v6, 4 }
 0xfd9   :  { %v2018_v14 = vsel %vm270_vm1, %v2017_v63, %v2016_v22 }
 0xfda   :  { %v2020_v48 = vsel %vm273_vm2, %v2019_v50, %v2018_v14 }
 0xfdb   :  { %v2003_v61 = vpop.permute.xlu0 %2002 }
 0xfdc   :  { %v2011_v42 = vmul.f32 %v2003_v61, %v3652_v57  ;;  %v1836_v37 = vpop.permute.xlu1 %1835 }
 0xfdd   :  { %v1838_v41 = vmul.f32 %v1836_v37, %v1819_v12 }
 0xfde   :  { %v2021_v59 = vrot.slane %v2011_v42, 3 }
 0xfdf   :  { %2068 = vrot.lane.b32.xlu0 %v1838_v41, %s2950_s0 }
 0xfe0   :  { %v2022_v47 = vsel %vm276_vm3, %v2021_v59, %v2020_v48 }
 0xfe1   :  { %2023 = vrot.lane.b32.xlu2 %v2022_v47, %s2950_s0 }
0x103b   :  { %v2024_v40 = vpop.permute.xlu2 %2023 }
0x103c   :  { %2534 = vmatmul.msk.f32.vlgmr.msrb.gmra.mxu2 %vm280_vm4, %v2024_v40  ;;  %2535 = vmatmul.msk.f32.vlgmr.msrb.gmra.mxu3 %vm280_vm4, %v2024_v40 }
0x1051   :  { %v2069_v58 = vpop.permute.xlu0 %2068 }
0x1052   :  { %2536 = vmatmul.msk.f32.vlgmr.msrb.gmra.mxu0 %vm280_vm4, %v2069_v58 }
0x10bf   :  { %v2044_v57 = vpop.f32.mrf.mxu2  ;;  %v2064_v15 = vpop.f32.mrf.mxu3 }
0x10c0   :  { %v2132_v5 = vrot.slane %v2044_v57, 1  ;;  %v2133_v9 = vrot.slane %v2044_v57, 2  ;;  %v2135_v32 = vrot.slane %v2044_v57, 4 }
0x10c2   :  { %v2140_v20 = vadd.f32 %v2132_v5, %v3019_v7  ;;  %v2141_v23 = vadd.f32 %v2133_v9, %v3022_v10  ;;  %v2143_v0 = vadd.f32 %v2135_v32, %v3030_v16  ;;  %v3713_v7 = vld [vmem:[%s3793_s5] ss:$0 sm:$0xff]  ;;  %v2134_v16 = vrot.slane %v2044_v57, 3 }
0x10c4   :  { %2828 = vtanh.f32 %v2140_v20  ;;  %v2142_v24 = vadd.f32 %v2134_v16, %v3026_v13  ;;  %v2538_v28 = vmul.f32 -1.442695, %v2140_v20  ;;  %v2541_v19 = vmul.f32 -1.442695, %v2143_v0 }
0x10c5   :  { %2830 = vtanh.f32 %v2141_v23  ;;  %v2539_v52 = vmul.f32 -1.442695, %v2141_v23 }
0x10c6   :  { %2832 = vtanh.f32 %v2143_v0  ;;  %v2540_v61 = vmul.f32 -1.442695, %v2142_v24 }
0x10ca   :  { %v2829_v36 = vpop.eup %2828 }
0x10cb   :  { %v2831_v25 = vpop.eup %2830  ;;  %2244 = vrot.lane.b32.xlu2 %v2829_v36, %s2949_s22 }
0x10cc   :  { %2246 = vrot.lane.b32.xlu0 %v2831_v25, %s2949_s22  ;;  %v2833_v30 = vpop.eup %2832 }
0x10cf   :  { %v2089_v21 = vpop.f32.mrf.mxu0 }
0x10d0   :  { %v2092_v11 = vadd.f32 %v2089_v21, %v2064_v15 }
0x10d2   :  { %v2093_v10 = vadd.f32 %v3713_v7, %v2092_v11 }
0x10d3   :  { %2250 = vrot.lane.b32.xlu2 %v2833_v30, %s2949_s22 }
0x10d4   :  { %2834 = vtanh.f32 %v2093_v10  ;;  %v2537_v4 = vmul.f32 -1.442695, %v2093_v10 }
0x10d5   :  { %2836 = vtanh.f32 %v2142_v24 }
0x10d6   :  { %2838 = vpow2.f32 %v2538_v28 }
0x10d7   :  { %2840 = vpow2.f32 %v2541_v19 }
0x10da   :  { %v2835_v29 = vpop.eup %2834 }
0x10db   :  { %2116 = vrot.lane.b32.xlu1 %v2835_v29, %s2949_s22  ;;  %v2837_v12 = vpop.eup %2836 }
0x10dc   :  { %v2839_v18 = vpop.eup %2838 }
0x10dd   :  { %v2156_v43 = vadd.f32 1.0, %v2839_v18  ;;  %v2841_v26 = vpop.eup %2840 }
0x10de   :  { %v2159_v39 = vadd.f32 1.0, %v2841_v26 }
0x10df   :  { %2842 = vrcp.f32 %v2156_v43  ;;  %v2171_v44 = vand.u32 2147483648, %v2156_v43  ;;  %vm2165_vm6 = vweird.f32 %v2156_v43  ;;  %v2169_v2 = vand.u32 2147483647, %v2156_v43 }
0x10e0   :  { %2844 = vrcp.f32 %v2159_v39  ;;  %v2216_v34 = vand.u32 2147483648, %v2159_v39  ;;  %vm2210_vm10 = vweird.f32 %v2159_v39  ;;  %v2214_v14 = vand.u32 2147483647, %v2159_v39 }
0x10e1   :  { %2846 = vpow2.f32 %v2539_v52  ;;  %v2172_v8 = vor.u32 1.1754944e-38, %v2171_v44  ;;  %vm2170_vm8 = vcmp.eq.f32.partialorder %v2169_v2, 8.507059e+37  ;;  %v2228_v44 = vrot.slane %v3670_v17, 7 }
0x10e2   :  { %v2217_v50 = vor.u32 1.1754944e-38, %v2216_v34  ;;  %vm2215_vm12 = vcmp.eq.f32.partialorder %v2214_v14, 8.507059e+37 }
0x10e3   :  { %2248 = vrot.lane.b32.xlu1 %v2837_v12, %s2949_s22 }
0x10e5   :  { %v2843_v45 = vpop.eup %2842 }
0x10e6   :  { %v2161_v13 = vmul.f32 %v2843_v45, %v2156_v43  ;;  %v2845_v53 = vpop.eup %2844  ;;  %vm2166_vm5 = vweird.f32 %v2843_v45 }
0x10e7   :  { %v2206_v56 = vmul.f32 %v2845_v53, %v2159_v39  ;;  %v2847_v49 = vpop.eup %2846  ;;  %vm2167_vm7 = vmor %vm2165_vm6, %vm2166_vm5  ;;  %vm2211_vm9 = vweird.f32 %v2845_v53 }
0x10e8   :  { %v2162_v46 = vsub.f32 1.0, %v2161_v13  ;;  %v2157_v1 = vadd.f32 1.0, %v2847_v49  ;;  %vm2212_vm11 = vmor %vm2210_vm10, %vm2211_vm9 }
0x10e9   :  { %v2207_v33 = vsub.f32 1.0, %v2206_v56 }
0x10ea   :  { %v2163_v31 = vmul.f32 %v2843_v45, %v2162_v46  ;;  %2848 = vrcp.f32 %v2157_v1  ;;  %v2186_v32 = vand.u32 2147483648, %v2157_v1  ;;  %vm2180_vm14 = vweird.f32 %v2157_v1 }
0x10eb   :  { %v2208_v60 = vmul.f32 %v2845_v53, %v2207_v33  ;;  %2850 = vpow2.f32 %v2537_v4  ;;  %v2184_v0 = vand.u32 2147483647, %v2157_v1  ;;  %v2229_v4 = vrot.slane %v3672_v35, 7 }
0x10ec   :  { %v2164_v38 = vadd.f32 %v2843_v45, %v2163_v31  ;;  %2852 = vpow2.f32 %v2540_v61  ;;  %v2187_v15 = vor.u32 1.1754944e-38, %v2186_v32 }
0x10ed   :  { %v2209_v63 = vadd.f32 %v2845_v53, %v2208_v60  ;;  %vm2185_vm0 = vcmp.eq.f32.partialorder %v2184_v0, 8.507059e+37 }
0x10ee   :  { %v2168_v3 = vsel %vm2167_vm7, %v2843_v45, %v2164_v38 }
0x10ef   :  { %v3720_v51 = vsel %vm2170_vm8, %v2172_v8, %v2168_v3  ;;  %v2213_v37 = vsel %vm2212_vm11, %v2845_v53, %v2209_v63  ;;  %v2231_v63 = vrot.slane %v3679_v55, 7  ;;  %v2230_v55 = vrot.slane %v3690_v54, 7 }
0x10f0   :  { %v2849_v6 = vpop.eup %2848  ;;  %v3724_v48 = vsel %vm2215_vm12, %v2217_v50, %v2213_v37  ;;  %v2236_v2 = vmul.f32 %v2228_v44, %v3720_v51 }
0x10f1   :  { %v2851_v42 = vpop.eup %2850  ;;  %v2176_v41 = vmul.f32 %v2849_v6, %v2157_v1  ;;  %vm2181_vm13 = vweird.f32 %v2849_v6  ;;  %v2239_v34 = vmul.f32 %v2231_v63, %v3724_v48 }
0x10f2   :  { %v2097_v59 = vadd.f32 1.0, %v2851_v42  ;;  %v2853_v57 = vpop.eup %2852  ;;  %vm2182_vm15 = vmor %vm2180_vm14, %vm2181_vm13  ;;  %vm2436_vm14 = vcmask 27648  }
0x10f3   :  { %v2177_v58 = vsub.f32 1.0, %v2176_v41  ;;  %v2158_v9 = vadd.f32 1.0, %v2853_v57 }
0x10f4   :  { %2854 = vrcp.f32 %v2097_v59  ;;  %v2109_v19 = vand.u32 2147483648, %v2097_v59  ;;  %vm2103_vm6 = vweird.f32 %v2097_v59  ;;  %v2107_v18 = vand.u32 2147483647, %v2097_v59 }
0x10f5   :  { %v2178_v5 = vmul.f32 %v2849_v6, %v2177_v58  ;;  %2856 = vrcp.f32 %v2158_v9  ;;  %v2201_v53 = vand.u32 2147483648, %v2158_v9  ;;  %vm2195_vm10 = vweird.f32 %v2158_v9 }
0x10f6   :  { %v2110_v39 = vor.u32 1.1754944e-38, %v2109_v19  ;;  %vm2108_vm8 = vcmp.eq.f32.partialorder %v2107_v18, 8.507059e+37  ;;  %v2199_v31 = vand.u32 2147483647, %v2158_v9 }
0x10f7   :  { %v2179_v23 = vadd.f32 %v2849_v6, %v2178_v5  ;;  %v2202_v49 = vor.u32 1.1754944e-38, %v2201_v53 }
0x10f8   :  { %vm2200_vm12 = vcmp.eq.f32.partialorder %v2199_v31, 8.507059e+37 }
0x10f9   :  { %v2183_v25 = vsel %vm2182_vm15, %v2849_v6, %v2179_v23 }
0x10fa   :  { %v2855_v20 = vpop.eup %2854  ;;  %v3728_v11 = vsel %vm2185_vm0, %v2187_v15, %v2183_v25 }
0x10fb   :  { %v2099_v36 = vmul.f32 %v2855_v20, %v2097_v59  ;;  %v2857_v10 = vpop.eup %2856  ;;  %vm2104_vm5 = vweird.f32 %v2855_v20  ;;  %v2237_v3 = vmul.f32 %v2229_v4, %v3728_v11 }
0x10fc   :  { %v2191_v29 = vmul.f32 %v2857_v10, %v2158_v9  ;;  %vm2105_vm7 = vmor %vm2103_vm6, %vm2104_vm5  ;;  %vm2196_vm9 = vweird.f32 %v2857_v10 }
0x10fd   :  { %v2100_v30 = vsub.f32 1.0, %v2099_v36  ;;  %vm2197_vm11 = vmor %vm2195_vm10, %vm2196_vm9 }
0x10fe   :  { %v2192_v28 = vsub.f32 1.0, %v2191_v29 }
0x10ff   :  { %v2101_v24 = vmul.f32 %v2855_v20, %v2100_v30 }
0x1100   :  { %v2193_v26 = vmul.f32 %v2857_v10, %v2192_v28 }
0x1101   :  { %v2102_v12 = vadd.f32 %v2855_v20, %v2101_v24 }
0x1102   :  { %v2194_v46 = vadd.f32 %v2857_v10, %v2193_v26 }
0x1103   :  { %v2106_v43 = vsel %vm2105_vm7, %v2855_v20, %v2102_v12 }
0x1104   :  { %v2111_v52 = vsel %vm2108_vm8, %v2110_v39, %v2106_v43  ;;  %v2198_v56 = vsel %vm2197_vm11, %v2857_v10, %v2194_v46 }
0x1105   :  { %v2203_v38 = vsel %vm2200_vm12, %v2202_v49, %v2198_v56  ;;  %v2114_v42 = vmul.f32 %v2111_v52, %v3681_v62 }
0x1106   :  { %v2238_v41 = vmul.f32 %v2230_v55, %v2203_v38 }
0x1125   :  { %v2245_v27 = vpop.permute.xlu2 %2244 }
0x1126   :  { %v2256_v22 = vmul.f32 %v2245_v27, %v3720_v51 }
0x1128   :  { %2264 = vrot.lane.b32.xlu1 %v2256_v22, %s2950_s0 }
0x112d   :  { %v2251_v47 = vpop.permute.xlu2 %2250 }
0x112e   :  { %v2259_v40 = vmul.f32 %v2251_v47, %v3724_v48 }
0x1130   :  { %2270 = vrot.lane.b32.xlu1 %v2259_v40, %s2950_s0 }
0x113e   :  { %v2247_v21 = vpop.permute.xlu0 %2246 }
0x113f   :  { %v2257_v16 = vmul.f32 %v2247_v21, %v3728_v11 }
0x1141   :  { %2266 = vrot.lane.b32.xlu2 %v2257_v16, %s2950_s0 }
0x114d   :  { %v2117_v45 = vpop.permute.xlu1 %2116 }
0x114e   :  { %v2119_v13 = vmul.f32 %v2117_v45, %v2111_v52 }
0x1150   :  { %2121 = vrot.lane.b32.xlu0 %v2119_v13, %s2950_s0 }
0x1155   :  { %v2249_v1 = vpop.permute.xlu1 %2248 }
0x1156   :  { %v2258_v33 = vmul.f32 %v2249_v1, %v2203_v38 }
0x1158   :  { %2268 = vrot.lane.b32.xlu0 %v2258_v33, %s2950_s0 }
0x119a   :  { %v2265_v60 = vpop.permute.xlu1 %2264 }
0x119b   :  { %v2267_v8 = vpop.permute.xlu2 %2266  ;;  %v2276_v27 = vadd.f32 %v2265_v60, %v2236_v2  ;;  %v2405_v60 = vld [vmem:[%s3794_s6 + $0x10] sm:$0xff] }
0x119c   :  { %v2277_v22 = vadd.f32 %v2267_v8, %v2237_v3  ;;  %v2406_v3 = vld [vmem:[%s3794_s6 + $0x18] sm:$0xff]  ;;  %v2404_v8 = vld [vmem:[%s3794_s6 + $0x8] sm:$0xff] }
0x119d   :  { %2858 = vtanh.f32 %v2276_v27  ;;  %2428 = vmatpush.msra.mxu3 %v2406_v3  ;;  %v2403_v27 = vld [vmem:[%s3794_s6] sm:$0xff]  ;;  %s2952_s6 = smov [#allocation5]  }
0x119e   :  { %2860 = vtanh.f32 %v2277_v22 }
0x119f   :  { %2429 = vmatpush.msra.mxu3 %v2405_v60 }
0x11a1   :  { %2430 = vmatpush.msra.mxu3 %v2404_v8 }
0x11a2   :  { %v2271_v6 = vpop.permute.xlu1 %2270 }
0x11a3   :  { %v2859_v61 = vpop.eup %2858  ;;  %v2279_v14 = vadd.f32 %v2271_v6, %v2239_v34  ;;  %2431 = vmatpush.msra.mxu3 %v2403_v27  ;;  %v2555_v6 = vld [vmem:[%s3795_s7] ss:$0 sm:$0xff]  ;;  %s2467_s7 = sshll.u32 %s2952_s6, 4  ;;  %s2468_s7 = int_to_ptr.vmem [resolvable:$true] %s2467_s7 }
0x11a4   :  { %v2861_v17 = vpop.eup %2860  ;;  %2288 = vrot.lane.b32.xlu0 %v2859_v61, %s2949_s22 }
0x11a5   :  { %2862 = vtanh.f32 %v2279_v14  ;;  %2290 = vrot.lane.b32.xlu1 %v2861_v17, %s2949_s22 }
0x11ab   :  { %v2863_v35 = vpop.eup %2862 }
0x11ac   :  { %2294 = vrot.lane.b32.xlu0 %v2863_v35, %s2949_s22 }
0x11c2   :  { %v2122_v37 = vpop.permute.xlu0 %2121 }
0x11c3   :  { %v3744_v50 = vadd.f32 %v2122_v37, %v2114_v42 }
0x11c5   :  { %2864 = vtanh.f32 %v3744_v50 }
0x11ca   :  { %v2269_v59 = vpop.permute.xlu0 %2268 }
0x11cb   :  { %v2865_v47 = vpop.eup %2864  ;;  %v2278_v40 = vadd.f32 %v2269_v59, %v2238_v41 }
0x11cc   :  { %2127 = vrot.lane.b32.xlu2 %v2865_v47, %s2949_s22 }
0x11cd   :  { %2866 = vtanh.f32 %v2278_v40 }
0x11d3   :  { %v2867_v58 = vpop.eup %2866 }
0x11d4   :  { %2292 = vrot.lane.b32.xlu2 %v2867_v58, %s2949_s22 }
0x1216   :  { %v2289_v57 = vpop.permute.xlu0 %2288 }
0x1217   :  { %v2291_v62 = vpop.permute.xlu1 %2290  ;;  %v2300_v54 = vmul.f32 %v2289_v57, %v3720_v51 }
0x1218   :  { %v2301_v20 = vmul.f32 %v2291_v62, %v3728_v11 }
0x1219   :  { %v2308_v0 = vrot.slane %v2300_v54, 7 }
0x121a   :  { %v2309_v32 = vrot.slane %v2301_v20, 6 }
0x121c   :  { %v2310_v30 = vsel %vm270_vm1, %v2309_v32, %v2308_v0 }
0x121e   :  { %v2295_v23 = vpop.permute.xlu0 %2294 }
0x121f   :  { %v2303_v36 = vmul.f32 %v2295_v23, %v3724_v48 }
0x1221   :  { %v2313_v10 = vrot.slane %v2303_v36, 4 }
0x1226   :  { %v2128_v5 = vpop.permute.xlu2 %2127 }
0x1227   :  { %v2130_v9 = vmul.f32 %v2128_v5, %v2111_v52 }
0x1229   :  { %2340 = vrot.lane.b32.xlu1 %v2130_v9, %s2950_s0 }
0x122e   :  { %v2293_v25 = vpop.permute.xlu2 %2292 }
0x122f   :  { %v2302_v15 = vmul.f32 %v2293_v25, %v2203_v38 }
0x1231   :  { %v2311_v21 = vrot.slane %v2302_v15, 5 }
0x1233   :  { %v2312_v16 = vsel %vm273_vm2, %v2311_v21, %v2310_v30 }
0x1234   :  { %v2314_v24 = vsel %vm276_vm3, %v2313_v10, %v2312_v16 }
0x1235   :  { %2315 = vrot.lane.b32.xlu2 %v2314_v24, %s2950_s0 }
0x128f   :  { %v2316_v11 = vpop.permute.xlu2 %2315 }
0x1290   :  { %2542 = vmatmul.msk.f32.vlgmr.msra.gmra.mxu1 %vm280_vm4, %v2316_v11 }
0x129b   :  { %v2341_v51 = vpop.permute.xlu1 %2340 }
0x129c   :  { %2543 = vmatmul.msk.f32.vlgmr.msra.gmra.mxu2 %vm280_vm4, %v2341_v51 }
0x130d   :  { %v2336_v29 = vpop.f32.mrf.mxu1 }
0x131f   :  { %v2361_v48 = vpop.f32.mrf.mxu2 }
0x1320   :  { %v2364_v12 = vadd.f32 %v2361_v48, %v2336_v29 }
0x1322   :  { %v2365_v28 = vadd.f32 %v3713_v7, %v2364_v12 }
0x1324   :  { %2868 = vtanh.f32 %v2365_v28  ;;  %v2544_v18 = vmul.f32 -1.442695, %v2365_v28 }
0x1326   :  { %2870 = vpow2.f32 %v2544_v18 }
0x132a   :  { %v2869_v19 = vpop.eup %2868 }
0x132b   :  { %2388 = vrot.lane.b32.xlu0 %v2869_v19, %s2949_s22 }
0x132c   :  { %v2871_v43 = vpop.eup %2870 }
0x132d   :  { %v2369_v26 = vadd.f32 1.0, %v2871_v43 }
0x132f   :  { %2872 = vrcp.f32 %v2369_v26  ;;  %v2381_v53 = vand.u32 2147483648, %v2369_v26  ;;  %vm2375_vm2 = vweird.f32 %v2369_v26  ;;  %v2379_v31 = vand.u32 2147483647, %v2369_v26 }
0x1331   :  { %v2382_v56 = vor.u32 1.1754944e-38, %v2381_v53  ;;  %vm2380_vm13 = vcmp.eq.f32.partialorder %v2379_v31, 8.507059e+37 }
0x1335   :  { %v2873_v39 = vpop.eup %2872 }
0x1336   :  { %v2371_v45 = vmul.f32 %v2873_v39, %v2369_v26  ;;  %vm2376_vm1 = vweird.f32 %v2873_v39 }
0x1337   :  { %vm2377_vm3 = vmor %vm2375_vm2, %vm2376_vm1 }
0x1338   :  { %v2372_v52 = vsub.f32 1.0, %v2371_v45 }
0x133a   :  { %v2373_v13 = vmul.f32 %v2873_v39, %v2372_v52 }
0x133c   :  { %v2374_v46 = vadd.f32 %v2873_v39, %v2373_v13 }
0x133e   :  { %v2378_v7 = vsel %vm2377_vm3, %v2873_v39, %v2374_v46 }
0x133f   :  { %v2383_v1 = vsel %vm2380_vm13, %v2382_v56, %v2378_v7 }
0x1340   :  { %v2386_v33 = vmul.f32 %v2383_v1, %v3744_v50 }
0x139d   :  { %v2389_v49 = vpop.permute.xlu0 %2388 }
0x139e   :  { %v2391_v38 = vmul.f32 %v2389_v49, %v2383_v1 }
0x13a0   :  { %2393 = vrot.lane.b32.xlu1 %v2391_v38, %s2950_s0 }
0x1412   :  { %v2394_v44 = vpop.permute.xlu1 %2393 }
0x1413   :  { %v2396_v4 = vadd.f32 %v2394_v44, %v2386_v33 }
0x1415   :  { %2874 = vtanh.f32 %v2396_v4 }
0x141b   :  { %v2875_v2 = vpop.eup %2874 }
0x141c   :  { %2399 = vrot.lane.b32.xlu2 %v2875_v2, %s2949_s22 }
0x1476   :  { %v2400_v22 = vpop.permute.xlu2 %2399 }
0x1477   :  { %v2402_v63 = vmul.f32 %v2400_v22, %v2383_v1 }
0x1479   :  { %2412 = vrot.lane.b32.xlu0 %v2402_v63, %s2950_s0 }
0x14eb   :  { %v2413_v34 = vpop.permute.xlu0 %2412 }
0x14ec   :  { %2545 = vmatmul.msk.f32.vlgmr.msra.gmra.mxu3 %vm280_vm4, %v2413_v34 }
0x156f   :  { %v2433_v61 = vpop.f32.mrf.mxu3 }
0x1570   :  { %v2434_v14 = vadd.f32 %v2555_v6, %v2433_v61 }
0x1572   :  { %v2437_v17 = vsel %vm2436_vm14, %v2434_v14, -inf }
0x1573   :  { %2438 = vmax.xlane.f32.xlu1 %v2437_v17 }
0x15e6   :  { %v2439_v35 = vpop.xlane.xlu1 %2438 }
0x15e7   :  { %v2440_v42 = vsub.f32 %v2434_v14, %v2439_v35 }
0x15e9   :  { %v2441_v37 = vmul.f32 1.442695, %v2440_v42 }
0x15eb   :  { %2876 = vpow2.f32 %v2441_v37 }
0x15f1   :  { %v2877_v50 = vpop.eup %2876 }
0x15f2   :  { %v2443_v55 = vsel %vm2436_vm14, %v2877_v50, 0.0 }
0x15f3   :  { %2444 = vadd.xlane.f32.xlu2 %v2443_v55 }
0x1666   :  { %v2445_v41 = vpop.xlane.xlu2 %2444 }
0x1667   :  { %2878 = vrcp.f32 %v2445_v41  ;;  %v2457_v58 = vand.u32 2147483648, %v2445_v41  ;;  %v2455_v5 = vand.u32 2147483647, %v2445_v41  ;;  %vm2451_vm15 = vweird.f32 %v2445_v41 }
0x1669   :  { %v2458_v9 = vor.u32 1.1754944e-38, %v2457_v58  ;;  %vm2456_vm5 = vcmp.eq.f32.partialorder %v2455_v5, 8.507059e+37 }
0x166d   :  { %v2879_v59 = vpop.eup %2878 }
0x166e   :  { %v2447_v47 = vmul.f32 %v2879_v59, %v2445_v41  ;;  %vm2452_vm4 = vweird.f32 %v2879_v59 }
0x166f   :  { %vm2453_vm0 = vmor %vm2451_vm15, %vm2452_vm4 }
0x1670   :  { %v2448_v40 = vsub.f32 1.0, %v2447_v47 }
0x1672   :  { %v2449_v57 = vmul.f32 %v2879_v59, %v2448_v40 }
0x1674   :  { %v2450_v62 = vadd.f32 %v2879_v59, %v2449_v57 }
0x1676   :  { %v2454_v20 = vsel %vm2453_vm0, %v2879_v59, %v2450_v62 }
0x1677   :  { %v2459_v54 = vsel %vm2456_vm5, %v2458_v9, %v2454_v20 }
0x1678   :  { %v2460_v23 = vmul.f32 %v2877_v50, %v2459_v54 }
0x167a   :  { %2461 = vst.msk [vmem:[#allocation5] sm:$0xf] %vm2436_vm14, %v2460_v23 }
0x167b   :  { %2472 = dma.vmem_to_hbm [thread:$0]  %s2468_s7, 64, %s2470_s1, [#allocation4]  }
0x167c   :  { %2944 = dma.done.wait [#allocation4], 64  }
0x167d   :  { %2945 = vsyncadd [#allocation4], 4294967232 }
0x167e   :  { %2477 = vsyncpa [#allocation3], 1 }
0x167f   :  { %2478 = vsyncpa [#allocation4], 1 }

</bundles_post_ra>
